<compile_context>
chip_gen: v6e
topology: v6e:2x2x1
jax: 0.10.0
libtpu: 0.0.40
codegen_flags: <defaults>
</compile_context>

<pallas_src>
import jax
import jax.numpy as jnp
from jax.experimental import pallas as pl
from jax.experimental.pallas import tpu as pltpu  # noqa: F401  (kept for TPU-specific extensions)

# ---------------- synthetic small config (mirrors CLIP vision config fields) ----
B      = 2             # batch
C_IN   = 3             # RGB
IMG    = 16            # image_size
PATCH  = 4             # patch_size
N      = IMG // PATCH  # patches per side = 4
T      = N * N         # num patches = 16
S      = T + 1         # sequence length incl. CLS = 17
S_PAD  = 24            # in-kernel sequence length padded to a multiple of 8
BS     = B * S_PAD     # flattened (batch, seq) rows = 48
D      = 32            # hidden_size
H      = 4             # num attention heads
DH     = D // H        # head dim = 8
FF     = 4 * D         # intermediate_size = 128
LAYERS = 2             # num hidden layers
EPS    = 1e-5          # layer_norm_eps
K_PATCH = C_IN * PATCH * PATCH  # flattened patch dim = 48

# ---- row layout of the consolidated (DSLAB_ROWS, D) parameter slab -------------
# rows [0, R_VEC)            : (1, D) vectors
#   0: pre_ln gamma   1: pre_ln beta
#   per layer l, base = 2 + 9*l:
#     +0 ln1_g  +1 ln1_b  +2 bq*scale  +3 bk  +4 bv  +5 bo  +6 ln2_g  +7 ln2_b  +8 b2
# rows [R_VEC, VEC_PAD)      : zero padding (8-row alignment)
# rows [ROW_WPATCH, +K_PATCH): patch-embed weight (K_PATCH, D)
# rows [ROW_POSCLS, +B*S_PAD): additive CLS + positional slab (B*S_PAD, D)
R_VEC      = 2 + 9 * LAYERS
VEC_PAD    = ((R_VEC + 7) // 8) * 8
ROW_WPATCH = VEC_PAD
ROW_POSCLS = VEC_PAD + K_PATCH
DSLAB_ROWS = ROW_POSCLS + BS


# ---------------- fused Pallas kernel -------------------------------------------

def _fused_clip_kernel(patches_ref, dslab_ref, w_attn_ref, w1_ref, b1_ref, w2_ref,
                       o_ref):
    """Entire CLIP-vision forward for the whole (padded, flattened) batch."""
    f32 = jnp.float32

    def ln(v, g, b):
        mu = jnp.mean(v, axis=-1, keepdims=True)
        var = jnp.mean((v - mu) ** 2, axis=-1, keepdims=True)
        return (v - mu) * jax.lax.rsqrt(var + EPS) * g + b

    def vrow(i):                       # (1, D) parameter row from the slab
        return dslab_ref[i:i + 1, :]

    # ---- patch embedding + CLS/positional additive slab ----
    # patches_ref already has a zero row where CLS goes and zero pad rows, so
    # pad rows of x stay exactly zero; no scratch / partial stores needed.
    w_patch = dslab_ref[ROW_WPATCH:ROW_WPATCH + K_PATCH, :]       # (K_PATCH, D)
    poscls  = dslab_ref[ROW_POSCLS:ROW_POSCLS + BS, :]            # (BS, D)
    x = jnp.dot(patches_ref[...], w_patch, preferred_element_type=f32) + poscls
    x = ln(x, vrow(0), vrow(1))                                    # pre-LayerNorm

    # ---- additive attention mask, built ONCE, (BS, BS) ----
    # allowed(q_row, k_col) iff same batch block AND k_col is a real (non-pad)
    # sequence position of that block.  exp(-1e30 - rowmax) underflows to 0.
    r_idx = jax.lax.broadcasted_iota(jnp.int32, (BS, BS), 0)
    c_idx = jax.lax.broadcasted_iota(jnp.int32, (BS, BS), 1)
    ok = None
    for b in range(B):                                             # static, B = 2
        lo = b * S_PAD
        term = ((r_idx >= lo) & (r_idx < lo + S_PAD)
                & (c_idx >= lo) & (c_idx < lo + S))
        ok = term if ok is None else (ok | term)
    mask_bias = jnp.where(ok, 0.0, -1e30).astype(f32)              # (BS, BS)

    # ---- encoder layers (static unroll) ----
    for l in range(LAYERS):
        base = 2 + 9 * l

        # -- self attention: pre-LN, full-width QKV, flattened-batch scores --
        t = ln(x, vrow(base + 0), vrow(base + 1))                  # (BS, D)
        q = jnp.dot(t, w_attn_ref[4 * l + 0], preferred_element_type=f32) + vrow(base + 2)
        k = jnp.dot(t, w_attn_ref[4 * l + 1], preferred_element_type=f32) + vrow(base + 3)
        v = jnp.dot(t, w_attn_ref[4 * l + 2], preferred_element_type=f32) + vrow(base + 4)
        wo_l = w_attn_ref[4 * l + 3]                               # (D, D)

        attn = jnp.zeros((BS, D), f32)
        for hd in range(H):                                        # static, H = 4
            c0 = hd * DH
            qh = q[:, c0:c0 + DH]                                  # (BS, DH) lane slice
            kh = k[:, c0:c0 + DH]
            vh = v[:, c0:c0 + DH]
            s = jnp.einsum("qd,kd->qk", qh, kh,
                           preferred_element_type=f32) + mask_bias  # (BS, BS)
            s = s - jnp.max(s, axis=-1, keepdims=True)
            p = jnp.exp(s)
            p = p * pl.reciprocal(jnp.sum(p, axis=-1, keepdims=True), approx=True)
            ctx = jnp.dot(p, vh, preferred_element_type=f32)        # (BS, DH)
            attn = attn + jnp.dot(ctx, wo_l[c0:c0 + DH, :],
                                  preferred_element_type=f32)       # (BS, D)
        x = x + attn + vrow(base + 5)                               # residual + bo

        # -- MLP (pre-LN, quick_gelu) --
        t = ln(x, vrow(base + 6), vrow(base + 7))
        f = jnp.dot(t, w1_ref[l], preferred_element_type=f32) + b1_ref[l]
        f = f * jax.nn.sigmoid(1.702 * f)                           # CLIP quick_gelu
        x = x + jnp.dot(f, w2_ref[l], preferred_element_type=f32) + vrow(base + 8)

    # write back in the internal (BS, D) layout; wrapper does the slicing.
    o_ref[...] = x


def fused_clip_forward(patches_pad, prepared):
    # Single launch, no grid: weights + activations (< 300 KB) are VMEM resident.
    return pl.pallas_call(
        _fused_clip_kernel,
        out_shape=jax.ShapeDtypeStruct((BS, D), jnp.float32),
    )(patches_pad, *prepared)


# ---------------- glue (plain JAX: reshapes / parameter setup) ------------------

def extract_patches(x):
    # x: (B, C_IN, IMG, IMG) NCHW -> (B, T, C_IN*PATCH*PATCH), matching the
    # Conv2d(kernel=stride=PATCH) flattening order (c, p, q).
    xp = x.reshape(B, C_IN, N, PATCH, N, PATCH)
    xp = xp.transpose(0, 2, 4, 1, 3, 5)       # (B, N, N, C, P, P)
    return xp.reshape(B, T, K_PATCH)


def pad_patches(x):
    # (B, T, K_PATCH) -> (B*S_PAD, K_PATCH) with a zero row where CLS goes and
    # zero pad rows (wrapper-side layout plumbing; free in XLA).
    p = extract_patches(x)
    pp = jnp.zeros((B, S_PAD, K_PATCH), jnp.float32)
    pp = pp.at[:, 1:S, :].set(p)
    return pp.reshape(BS, K_PATCH)


def prepare_params(params):
    """One-time parameter transform (NOT per-call work): fold 1/sqrt(DH) into
    the q projection, stack per-layer weights, and consolidate every (1, D)
    parameter + the patch-embed weight + the CLS/positional additive slab into
    a single (DSLAB_ROWS, D) slab -> 5 parameter DMAs instead of ~22."""
    scale = DH ** -0.5
    L = params["layers"]

    vec_rows = [params["pre_ln_g"], params["pre_ln_b"]]
    w_attn, w1_l, b1_l, w2_l = [], [], [], []
    for (g1, bb1, wq, bq, wk, bk, wv, bv, wo, bo,
         g2, bb2, w1, b1, w2, b2) in L:
        vec_rows += [g1, bb1, bq * scale, bk, bv, bo, g2, bb2, b2]
        w_attn += [wq * scale, wk, wv, wo]
        w1_l.append(w1); b1_l.append(b1); w2_l.append(w2)

    vec = jnp.concatenate([r.reshape(1, D) for r in vec_rows], axis=0)
    assert vec.shape[0] == R_VEC
    vec = jnp.pad(vec, ((0, VEC_PAD - R_VEC), (0, 0)))

    # additive CLS + positional slab; pad rows stay zero.
    poscls = jnp.zeros((B, S_PAD, D), jnp.float32)
    poscls = poscls.at[:, 0, :].set(params["class_emb"].reshape(D) + params["pos_emb"][0])
    poscls = poscls.at[:, 1:S, :].set(params["pos_emb"][1:S][None])
    poscls = poscls.reshape(BS, D)

    dslab = jnp.concatenate([vec, params["w_patch"], poscls], axis=0)
    assert dslab.shape == (DSLAB_ROWS, D)

    return (
        dslab,                                   # (DSLAB_ROWS, D)
        jnp.stack(w_attn),                       # (LAYERS*4, D, D)  [wq*s, wk, wv, wo]
        jnp.stack(w1_l),                         # (LAYERS, D, FF)
        jnp.stack(b1_l),                         # (LAYERS, 1, FF)
        jnp.stack(w2_l),                         # (LAYERS, FF, D)
    )


def clip_patches_forward(x, prepared):
    patches_pad = pad_patches(x)                               # (B*S_PAD, K_PATCH)
    h = fused_clip_forward(patches_pad, prepared)              # (B*S_PAD, D)
    # last_hidden_state -> drop CLS + pad rows -> (B, N, N, D) -> permute(0, 3, 1, 2)
    h = h.reshape(B, S_PAD, D)[:, 1:S, :]
    return h.reshape(B, N, N, D).transpose(0, 3, 1, 2)


def init_params(key):
    keys = iter(jax.random.split(key, 8 + 16 * LAYERS))

    def nrm(shape, scale=0.02):
        return (scale * jax.random.normal(next(keys), shape)).astype(jnp.float32)

    params = {
        "w_patch": nrm((K_PATCH, D)),          # conv weight, pre-flattened/transposed
        "class_emb": nrm((D,)),
        "pos_emb": nrm((S, D)),
        "pre_ln_g": jnp.ones((1, D), jnp.float32),
        "pre_ln_b": jnp.zeros((1, D), jnp.float32),
        "layers": [],
    }
    for _ in range(LAYERS):
        lp = [
            jnp.ones((1, D), jnp.float32), jnp.zeros((1, D), jnp.float32),  # ln1
            nrm((D, D)), nrm((1, D)),                                       # q
            nrm((D, D)), nrm((1, D)),                                       # k
            nrm((D, D)), nrm((1, D)),                                       # v
            nrm((D, D)), nrm((1, D)),                                       # out_proj
            jnp.ones((1, D), jnp.float32), jnp.zeros((1, D), jnp.float32),  # ln2
            nrm((D, FF)), nrm((1, FF)),                                     # fc1
            nrm((FF, D)), nrm((1, D)),                                      # fc2
        ]
        params["layers"].append(lp)
    return params


# ---------------- pure-JAX reference (for correctness check) --------------------

def reference_forward(x, params):
    def ln(v, g, b):
        mu = v.mean(-1, keepdims=True)
        var = ((v - mu) ** 2).mean(-1, keepdims=True)
        return (v - mu) / jnp.sqrt(var + EPS) * g + b

    patches = extract_patches(x).reshape(B * T, K_PATCH)
    pe = (patches @ params["w_patch"]).reshape(B, T, D)
    cls = jnp.broadcast_to(params["class_emb"].reshape(1, 1, D), (B, 1, D))
    h = jnp.concatenate([cls, pe], axis=1) + params["pos_emb"][None]
    h = ln(h, params["pre_ln_g"], params["pre_ln_b"])

    for (g1, bb1, wq, bq, wk, bk, wv, bv, wo, bo,
         g2, bb2, w1, b1, w2, b2) in params["layers"]:
        r = h
        t = ln(h, g1, bb1)
        q = (t @ wq + bq).reshape(B, S, H, DH).transpose(0, 2, 1, 3) * (DH ** -0.5)
        k = (t @ wk + bk).reshape(B, S, H, DH).transpose(0, 2, 1, 3)
        v = (t @ wv + bv).reshape(B, S, H, DH).transpose(0, 2, 1, 3)
        s = jnp.einsum("bhqd,bhkd->bhqk", q, k)
        p = jax.nn.softmax(s, axis=-1)
        a = jnp.einsum("bhqk,bhkd->bhqd", p, v).transpose(0, 2, 1, 3).reshape(B, S, D)
        h = r + a @ wo + bo
        r = h
        t = ln(h, g2, bb2)
        f = t @ w1 + b1
        f = f * jax.nn.sigmoid(1.702 * f)
        h = r + f @ w2 + b2

    return h[:, 1:].reshape(B, N, N, D).transpose(0, 3, 1, 2)


# ---------------- main ----------------------------------------------------------

if __name__ == "__main__":
    key = jax.random.PRNGKey(0)
    kx, kp = jax.random.split(key)
    x = jax.random.normal(kx, (B, C_IN, IMG, IMG), jnp.float32)
    params = init_params(kp)
    prepared = prepare_params(params)      # one-time weight transform

    fwd = jax.jit(clip_patches_forward)
    out = jax.block_until_ready(fwd(x, prepared))
    assert out.shape == (B, D, N, N), out.shape

    ref = reference_forward(x, params)
    err = float(jnp.max(jnp.abs(out - ref)))
    assert err < 1e-2, f"max abs error vs reference: {err}"

    print("KERNEL_OK")
</pallas_src>

<mosaic_0001>
module attributes {stable_mosaic.version = 11 : i64} {
  func.func @_fused_clip_kernel(%arg0: memref<48x48xf32, #tpu.memory_space<vmem>>, %arg1: memref<120x32xf32, #tpu.memory_space<vmem>>, %arg2: memref<8x32x32xf32, #tpu.memory_space<vmem>>, %arg3: memref<2x32x128xf32, #tpu.memory_space<vmem>>, %arg4: memref<2x1x128xf32, #tpu.memory_space<vmem>>, %arg5: memref<2x128x32xf32, #tpu.memory_space<vmem>>, %arg6: memref<48x32xf32, #tpu.memory_space<vmem>>) attributes {dimension_semantics = [], scalar_prefetch = 0 : i64, scratch_operands = 0 : i64, tpu.core_type = #tpu.core_type<tc>} {
    %c24 = arith.constant 24 : index
    %c0 = arith.constant 0 : index
    %0 = vector.load %arg1[%c24, %c0] : memref<120x32xf32, #tpu.memory_space<vmem>>, vector<48x32xf32>
    %c72 = arith.constant 72 : index
    %c0_0 = arith.constant 0 : index
    %1 = vector.load %arg1[%c72, %c0_0] : memref<120x32xf32, #tpu.memory_space<vmem>>, vector<48x32xf32>
    %c0_1 = arith.constant 0 : index
    %c0_2 = arith.constant 0 : index
    %2 = vector.load %arg0[%c0_1, %c0_2] : memref<48x48xf32, #tpu.memory_space<vmem>>, vector<48x48xf32>
    %cst = arith.constant dense<0.000000e+00> : vector<48x32xf32>
    %3 = tpu.matmul %2, %0, %cst {dimension_numbers = #tpu.dot_dimension_numbers<[1], [0], [0], [1], [0, 0, 1, 1], [], []>} : vector<48x48xf32>, vector<48x32xf32>, vector<48x32xf32> -> vector<48x32xf32>
    %4 = arith.addf %3, %1 : vector<48x32xf32>
    %c0_3 = arith.constant 0 : index
    %c0_4 = arith.constant 0 : index
    %5 = vector.load %arg1[%c0_3, %c0_4] : memref<120x32xf32, #tpu.memory_space<vmem>>, vector<1x32xf32>
    %c1 = arith.constant 1 : index
    %c0_5 = arith.constant 0 : index
    %6 = vector.load %arg1[%c1, %c0_5] : memref<120x32xf32, #tpu.memory_space<vmem>>, vector<1x32xf32>
    %cst_6 = arith.constant dense<0.000000e+00> : vector<48xf32>
    %7 = vector.multi_reduction <add>, %4, %cst_6 [1] : vector<48x32xf32> to vector<48xf32>
    %8 = vector.shape_cast %7 : vector<48xf32> to vector<48x1xf32>
    %cst_7 = arith.constant 3.200000e+01 : f32
    %9 = vector.broadcast %cst_7 : f32 to vector<48x1xf32>
    %10 = arith.divf %8, %9 : vector<48x1xf32>
    %11 = vector.broadcast %10 : vector<48x1xf32> to vector<48x32xf32>
    %12 = arith.subf %4, %11 : vector<48x32xf32>
    %13 = arith.mulf %12, %12 : vector<48x32xf32>
    %cst_8 = arith.constant dense<0.000000e+00> : vector<48xf32>
    %14 = vector.multi_reduction <add>, %13, %cst_8 [1] : vector<48x32xf32> to vector<48xf32>
    %15 = vector.shape_cast %14 : vector<48xf32> to vector<48x1xf32>
    %cst_9 = arith.constant 3.200000e+01 : f32
    %16 = vector.broadcast %cst_9 : f32 to vector<48x1xf32>
    %17 = arith.divf %15, %16 : vector<48x1xf32>
    %18 = vector.broadcast %10 : vector<48x1xf32> to vector<48x32xf32>
    %19 = arith.subf %4, %18 : vector<48x32xf32>
    %cst_10 = arith.constant 9.99999974E-6 : f32
    %20 = vector.broadcast %cst_10 : f32 to vector<48x1xf32>
    %21 = arith.addf %17, %20 : vector<48x1xf32>
    %22 = math.rsqrt %21 : vector<48x1xf32>
    %23 = vector.broadcast %22 : vector<48x1xf32> to vector<48x32xf32>
    %24 = arith.mulf %19, %23 : vector<48x32xf32>
    %25 = vector.broadcast %5 : vector<1x32xf32> to vector<48x32xf32>
    %26 = arith.mulf %24, %25 : vector<48x32xf32>
    %27 = vector.broadcast %6 : vector<1x32xf32> to vector<48x32xf32>
    %28 = arith.addf %26, %27 : vector<48x32xf32>
    %29 = tpu.iota {dimensions = array<i32: 0>} : vector<48x48xi32>
    %30 = tpu.iota {dimensions = array<i32: 1>} : vector<48x48xi32>
    %c0_i32 = arith.constant 0 : i32
    %31 = vector.broadcast %c0_i32 : i32 to vector<48x48xi32>
    %32 = arith.cmpi sge, %29, %31 : vector<48x48xi32>
    %c24_i32 = arith.constant 24 : i32
    %33 = vector.broadcast %c24_i32 : i32 to vector<48x48xi32>
    %34 = arith.cmpi slt, %29, %33 : vector<48x48xi32>
    %35 = arith.andi %32, %34 : vector<48x48xi1>
    %c0_i32_11 = arith.constant 0 : i32
    %36 = vector.broadcast %c0_i32_11 : i32 to vector<48x48xi32>
    %37 = arith.cmpi sge, %30, %36 : vector<48x48xi32>
    %38 = arith.andi %35, %37 : vector<48x48xi1>
    %c17_i32 = arith.constant 17 : i32
    %39 = vector.broadcast %c17_i32 : i32 to vector<48x48xi32>
    %40 = arith.cmpi slt, %30, %39 : vector<48x48xi32>
    %41 = arith.andi %38, %40 : vector<48x48xi1>
    %c24_i32_12 = arith.constant 24 : i32
    %42 = vector.broadcast %c24_i32_12 : i32 to vector<48x48xi32>
    %43 = arith.cmpi sge, %29, %42 : vector<48x48xi32>
    %c48_i32 = arith.constant 48 : i32
    %44 = vector.broadcast %c48_i32 : i32 to vector<48x48xi32>
    %45 = arith.cmpi slt, %29, %44 : vector<48x48xi32>
    %46 = arith.andi %43, %45 : vector<48x48xi1>
    %c24_i32_13 = arith.constant 24 : i32
    %47 = vector.broadcast %c24_i32_13 : i32 to vector<48x48xi32>
    %48 = arith.cmpi sge, %30, %47 : vector<48x48xi32>
    %49 = arith.andi %46, %48 : vector<48x48xi1>
    %c41_i32 = arith.constant 41 : i32
    %50 = vector.broadcast %c41_i32 : i32 to vector<48x48xi32>
    %51 = arith.cmpi slt, %30, %50 : vector<48x48xi32>
    %52 = arith.andi %49, %51 : vector<48x48xi1>
    %53 = arith.ori %41, %52 : vector<48x48xi1>
    %cst_14 = arith.constant 0.000000e+00 : f32
    %cst_15 = arith.constant -1.000000e+30 : f32
    %54 = vector.broadcast %cst_14 : f32 to vector<48x48xf32>
    %55 = vector.broadcast %cst_15 : f32 to vector<48x48xf32>
    %56 = arith.select %53, %54, %55 : vector<48x48xi1>, vector<48x48xf32>
    %c2 = arith.constant 2 : index
    %c0_16 = arith.constant 0 : index
    %57 = vector.load %arg1[%c2, %c0_16] : memref<120x32xf32, #tpu.memory_space<vmem>>, vector<1x32xf32>
    %c3 = arith.constant 3 : index
    %c0_17 = arith.constant 0 : index
    %58 = vector.load %arg1[%c3, %c0_17] : memref<120x32xf32, #tpu.memory_space<vmem>>, vector<1x32xf32>
    %cst_18 = arith.constant dense<0.000000e+00> : vector<48xf32>
    %59 = vector.multi_reduction <add>, %28, %cst_18 [1] : vector<48x32xf32> to vector<48xf32>
    %60 = vector.shape_cast %59 : vector<48xf32> to vector<48x1xf32>
    %cst_19 = arith.constant 3.200000e+01 : f32
    %61 = vector.broadcast %cst_19 : f32 to vector<48x1xf32>
    %62 = arith.divf %60, %61 : vector<48x1xf32>
    %63 = vector.broadcast %62 : vector<48x1xf32> to vector<48x32xf32>
    %64 = arith.subf %28, %63 : vector<48x32xf32>
    %65 = arith.mulf %64, %64 : vector<48x32xf32>
    %cst_20 = arith.constant dense<0.000000e+00> : vector<48xf32>
    %66 = vector.multi_reduction <add>, %65, %cst_20 [1] : vector<48x32xf32> to vector<48xf32>
    %67 = vector.shape_cast %66 : vector<48xf32> to vector<48x1xf32>
    %cst_21 = arith.constant 3.200000e+01 : f32
    %68 = vector.broadcast %cst_21 : f32 to vector<48x1xf32>
    %69 = arith.divf %67, %68 : vector<48x1xf32>
    %70 = vector.broadcast %62 : vector<48x1xf32> to vector<48x32xf32>
    %71 = arith.subf %28, %70 : vector<48x32xf32>
    %cst_22 = arith.constant 9.99999974E-6 : f32
    %72 = vector.broadcast %cst_22 : f32 to vector<48x1xf32>
    %73 = arith.addf %69, %72 : vector<48x1xf32>
    %74 = math.rsqrt %73 : vector<48x1xf32>
    %75 = vector.broadcast %74 : vector<48x1xf32> to vector<48x32xf32>
    %76 = arith.mulf %71, %75 : vector<48x32xf32>
    %77 = vector.broadcast %57 : vector<1x32xf32> to vector<48x32xf32>
    %78 = arith.mulf %76, %77 : vector<48x32xf32>
    %79 = vector.broadcast %58 : vector<1x32xf32> to vector<48x32xf32>
    %80 = arith.addf %78, %79 : vector<48x32xf32>
    %c0_23 = arith.constant 0 : index
    %c0_24 = arith.constant 0 : index
    %c0_25 = arith.constant 0 : index
    %81 = vector.load %arg2[%c0_23, %c0_24, %c0_25] : memref<8x32x32xf32, #tpu.memory_space<vmem>>, vector<1x32x32xf32>
    %82 = vector.shape_cast %81 : vector<1x32x32xf32> to vector<32x32xf32>
    %cst_26 = arith.constant dense<0.000000e+00> : vector<48x32xf32>
    %83 = tpu.matmul %80, %82, %cst_26 {dimension_numbers = #tpu.dot_dimension_numbers<[1], [0], [0], [1], [0, 0, 1, 1], [], []>} : vector<48x32xf32>, vector<32x32xf32>, vector<48x32xf32> -> vector<48x32xf32>
    %c4 = arith.constant 4 : index
    %c0_27 = arith.constant 0 : index
    %84 = vector.load %arg1[%c4, %c0_27] : memref<120x32xf32, #tpu.memory_space<vmem>>, vector<1x32xf32>
    %85 = vector.broadcast %84 : vector<1x32xf32> to vector<48x32xf32>
    %86 = arith.addf %83, %85 : vector<48x32xf32>
    %c1_28 = arith.constant 1 : index
    %c0_29 = arith.constant 0 : index
    %c0_30 = arith.constant 0 : index
    %87 = vector.load %arg2[%c1_28, %c0_29, %c0_30] : memref<8x32x32xf32, #tpu.memory_space<vmem>>, vector<1x32x32xf32>
    %88 = vector.shape_cast %87 : vector<1x32x32xf32> to vector<32x32xf32>
    %cst_31 = arith.constant dense<0.000000e+00> : vector<48x32xf32>
    %89 = tpu.matmul %80, %88, %cst_31 {dimension_numbers = #tpu.dot_dimension_numbers<[1], [0], [0], [1], [0, 0, 1, 1], [], []>} : vector<48x32xf32>, vector<32x32xf32>, vector<48x32xf32> -> vector<48x32xf32>
    %c5 = arith.constant 5 : index
    %c0_32 = arith.constant 0 : index
    %90 = vector.load %arg1[%c5, %c0_32] : memref<120x32xf32, #tpu.memory_space<vmem>>, vector<1x32xf32>
    %91 = vector.broadcast %90 : vector<1x32xf32> to vector<48x32xf32>
    %92 = arith.addf %89, %91 : vector<48x32xf32>
    %c2_33 = arith.constant 2 : index
    %c0_34 = arith.constant 0 : index
    %c0_35 = arith.constant 0 : index
    %93 = vector.load %arg2[%c2_33, %c0_34, %c0_35] : memref<8x32x32xf32, #tpu.memory_space<vmem>>, vector<1x32x32xf32>
    %94 = vector.shape_cast %93 : vector<1x32x32xf32> to vector<32x32xf32>
    %cst_36 = arith.constant dense<0.000000e+00> : vector<48x32xf32>
    %95 = tpu.matmul %80, %94, %cst_36 {dimension_numbers = #tpu.dot_dimension_numbers<[1], [0], [0], [1], [0, 0, 1, 1], [], []>} : vector<48x32xf32>, vector<32x32xf32>, vector<48x32xf32> -> vector<48x32xf32>
    %c6 = arith.constant 6 : index
    %c0_37 = arith.constant 0 : index
    %96 = vector.load %arg1[%c6, %c0_37] : memref<120x32xf32, #tpu.memory_space<vmem>>, vector<1x32xf32>
    %97 = vector.broadcast %96 : vector<1x32xf32> to vector<48x32xf32>
    %98 = arith.addf %95, %97 : vector<48x32xf32>
    %c3_38 = arith.constant 3 : index
    %c0_39 = arith.constant 0 : index
    %c0_40 = arith.constant 0 : index
    %99 = vector.load %arg2[%c3_38, %c0_39, %c0_40] : memref<8x32x32xf32, #tpu.memory_space<vmem>>, vector<1x32x32xf32>
    %100 = vector.shape_cast %99 : vector<1x32x32xf32> to vector<32x32xf32>
    %cst_41 = arith.constant 0.000000e+00 : f32
    %101 = vector.broadcast %cst_41 : f32 to vector<48x32xf32>
    %102 = vector.extract_strided_slice %86 {offsets = [0, 0], sizes = [48, 8], strides = [1, 1]} : vector<48x32xf32> to vector<48x8xf32>
    %103 = vector.extract_strided_slice %92 {offsets = [0, 0], sizes = [48, 8], strides = [1, 1]} : vector<48x32xf32> to vector<48x8xf32>
    %104 = vector.extract_strided_slice %98 {offsets = [0, 0], sizes = [48, 8], strides = [1, 1]} : vector<48x32xf32> to vector<48x8xf32>
    "tpu.trace_start"() <{level = 10 : i32, message = "qd,kd->qk"}> : () -> ()
    %cst_42 = arith.constant dense<0.000000e+00> : vector<48x48xf32>
    %105 = tpu.matmul %102, %103, %cst_42 {dimension_numbers = #tpu.dot_dimension_numbers<[1], [1], [0], [0], [0, 0, 1, 0], [], []>} : vector<48x8xf32>, vector<48x8xf32>, vector<48x48xf32> -> vector<48x48xf32>
    "tpu.trace_stop"() : () -> ()
    %106 = arith.addf %105, %56 : vector<48x48xf32>
    %cst_43 = arith.constant dense<0xFF800000> : vector<48xf32>
    %107 = vector.multi_reduction <maximumf>, %106, %cst_43 [1] : vector<48x48xf32> to vector<48xf32>
    %108 = vector.shape_cast %107 : vector<48xf32> to vector<48x1xf32>
    %109 = vector.broadcast %108 : vector<48x1xf32> to vector<48x48xf32>
    %110 = arith.subf %106, %109 : vector<48x48xf32>
    %111 = math.exp %110 : vector<48x48xf32>
    %cst_44 = arith.constant dense<0.000000e+00> : vector<48xf32>
    %112 = vector.multi_reduction <add>, %111, %cst_44 [1] : vector<48x48xf32> to vector<48xf32>
    %113 = vector.shape_cast %112 : vector<48xf32> to vector<48x1xf32>
    %114 = tpu.reciprocal %113 {approx = true} : vector<48x1xf32> -> vector<48x1xf32>
    %115 = vector.broadcast %114 : vector<48x1xf32> to vector<48x48xf32>
    %116 = arith.mulf %111, %115 : vector<48x48xf32>
    %cst_45 = arith.constant dense<0.000000e+00> : vector<48x8xf32>
    %117 = tpu.matmul %116, %104, %cst_45 {dimension_numbers = #tpu.dot_dimension_numbers<[1], [0], [0], [1], [0, 0, 1, 1], [], []>} : vector<48x48xf32>, vector<48x8xf32>, vector<48x8xf32> -> vector<48x8xf32>
    %118 = vector.extract_strided_slice %100 {offsets = [0, 0], sizes = [8, 32], strides = [1, 1]} : vector<32x32xf32> to vector<8x32xf32>
    %cst_46 = arith.constant dense<0.000000e+00> : vector<48x32xf32>
    %119 = tpu.matmul %117, %118, %cst_46 {dimension_numbers = #tpu.dot_dimension_numbers<[1], [0], [0], [1], [0, 0, 1, 1], [], []>} : vector<48x8xf32>, vector<8x32xf32>, vector<48x32xf32> -> vector<48x32xf32>
    %120 = arith.addf %101, %119 : vector<48x32xf32>
    %121 = vector.extract_strided_slice %86 {offsets = [0, 8], sizes = [48, 8], strides = [1, 1]} : vector<48x32xf32> to vector<48x8xf32>
    %122 = vector.extract_strided_slice %92 {offsets = [0, 8], sizes = [48, 8], strides = [1, 1]} : vector<48x32xf32> to vector<48x8xf32>
    %123 = vector.extract_strided_slice %98 {offsets = [0, 8], sizes = [48, 8], strides = [1, 1]} : vector<48x32xf32> to vector<48x8xf32>
    "tpu.trace_start"() <{level = 10 : i32, message = "qd,kd->qk"}> : () -> ()
    %cst_47 = arith.constant dense<0.000000e+00> : vector<48x48xf32>
    %124 = tpu.matmul %121, %122, %cst_47 {dimension_numbers = #tpu.dot_dimension_numbers<[1], [1], [0], [0], [0, 0, 1, 0], [], []>} : vector<48x8xf32>, vector<48x8xf32>, vector<48x48xf32> -> vector<48x48xf32>
    "tpu.trace_stop"() : () -> ()
    %125 = arith.addf %124, %56 : vector<48x48xf32>
    %cst_48 = arith.constant dense<0xFF800000> : vector<48xf32>
    %126 = vector.multi_reduction <maximumf>, %125, %cst_48 [1] : vector<48x48xf32> to vector<48xf32>
    %127 = vector.shape_cast %126 : vector<48xf32> to vector<48x1xf32>
    %128 = vector.broadcast %127 : vector<48x1xf32> to vector<48x48xf32>
    %129 = arith.subf %125, %128 : vector<48x48xf32>
    %130 = math.exp %129 : vector<48x48xf32>
    %cst_49 = arith.constant dense<0.000000e+00> : vector<48xf32>
    %131 = vector.multi_reduction <add>, %130, %cst_49 [1] : vector<48x48xf32> to vector<48xf32>
    %132 = vector.shape_cast %131 : vector<48xf32> to vector<48x1xf32>
    %133 = tpu.reciprocal %132 {approx = true} : vector<48x1xf32> -> vector<48x1xf32>
    %134 = vector.broadcast %133 : vector<48x1xf32> to vector<48x48xf32>
    %135 = arith.mulf %130, %134 : vector<48x48xf32>
    %cst_50 = arith.constant dense<0.000000e+00> : vector<48x8xf32>
    %136 = tpu.matmul %135, %123, %cst_50 {dimension_numbers = #tpu.dot_dimension_numbers<[1], [0], [0], [1], [0, 0, 1, 1], [], []>} : vector<48x48xf32>, vector<48x8xf32>, vector<48x8xf32> -> vector<48x8xf32>
    %137 = vector.extract_strided_slice %100 {offsets = [8, 0], sizes = [8, 32], strides = [1, 1]} : vector<32x32xf32> to vector<8x32xf32>
    %cst_51 = arith.constant dense<0.000000e+00> : vector<48x32xf32>
    %138 = tpu.matmul %136, %137, %cst_51 {dimension_numbers = #tpu.dot_dimension_numbers<[1], [0], [0], [1], [0, 0, 1, 1], [], []>} : vector<48x8xf32>, vector<8x32xf32>, vector<48x32xf32> -> vector<48x32xf32>
    %139 = arith.addf %120, %138 : vector<48x32xf32>
    %140 = vector.extract_strided_slice %86 {offsets = [0, 16], sizes = [48, 8], strides = [1, 1]} : vector<48x32xf32> to vector<48x8xf32>
    %141 = vector.extract_strided_slice %92 {offsets = [0, 16], sizes = [48, 8], strides = [1, 1]} : vector<48x32xf32> to vector<48x8xf32>
    %142 = vector.extract_strided_slice %98 {offsets = [0, 16], sizes = [48, 8], strides = [1, 1]} : vector<48x32xf32> to vector<48x8xf32>
    "tpu.trace_start"() <{level = 10 : i32, message = "qd,kd->qk"}> : () -> ()
    %cst_52 = arith.constant dense<0.000000e+00> : vector<48x48xf32>
    %143 = tpu.matmul %140, %141, %cst_52 {dimension_numbers = #tpu.dot_dimension_numbers<[1], [1], [0], [0], [0, 0, 1, 0], [], []>} : vector<48x8xf32>, vector<48x8xf32>, vector<48x48xf32> -> vector<48x48xf32>
    "tpu.trace_stop"() : () -> ()
    %144 = arith.addf %143, %56 : vector<48x48xf32>
    %cst_53 = arith.constant dense<0xFF800000> : vector<48xf32>
    %145 = vector.multi_reduction <maximumf>, %144, %cst_53 [1] : vector<48x48xf32> to vector<48xf32>
    %146 = vector.shape_cast %145 : vector<48xf32> to vector<48x1xf32>
    %147 = vector.broadcast %146 : vector<48x1xf32> to vector<48x48xf32>
    %148 = arith.subf %144, %147 : vector<48x48xf32>
    %149 = math.exp %148 : vector<48x48xf32>
    %cst_54 = arith.constant dense<0.000000e+00> : vector<48xf32>
    %150 = vector.multi_reduction <add>, %149, %cst_54 [1] : vector<48x48xf32> to vector<48xf32>
    %151 = vector.shape_cast %150 : vector<48xf32> to vector<48x1xf32>
    %152 = tpu.reciprocal %151 {approx = true} : vector<48x1xf32> -> vector<48x1xf32>
    %153 = vector.broadcast %152 : vector<48x1xf32> to vector<48x48xf32>
    %154 = arith.mulf %149, %153 : vector<48x48xf32>
    %cst_55 = arith.constant dense<0.000000e+00> : vector<48x8xf32>
    %155 = tpu.matmul %154, %142, %cst_55 {dimension_numbers = #tpu.dot_dimension_numbers<[1], [0], [0], [1], [0, 0, 1, 1], [], []>} : vector<48x48xf32>, vector<48x8xf32>, vector<48x8xf32> -> vector<48x8xf32>
    %156 = vector.extract_strided_slice %100 {offsets = [16, 0], sizes = [8, 32], strides = [1, 1]} : vector<32x32xf32> to vector<8x32xf32>
    %cst_56 = arith.constant dense<0.000000e+00> : vector<48x32xf32>
    %157 = tpu.matmul %155, %156, %cst_56 {dimension_numbers = #tpu.dot_dimension_numbers<[1], [0], [0], [1], [0, 0, 1, 1], [], []>} : vector<48x8xf32>, vector<8x32xf32>, vector<48x32xf32> -> vector<48x32xf32>
    %158 = arith.addf %139, %157 : vector<48x32xf32>
    %159 = vector.extract_strided_slice %86 {offsets = [0, 24], sizes = [48, 8], strides = [1, 1]} : vector<48x32xf32> to vector<48x8xf32>
    %160 = vector.extract_strided_slice %92 {offsets = [0, 24], sizes = [48, 8], strides = [1, 1]} : vector<48x32xf32> to vector<48x8xf32>
    %161 = vector.extract_strided_slice %98 {offsets = [0, 24], sizes = [48, 8], strides = [1, 1]} : vector<48x32xf32> to vector<48x8xf32>
    "tpu.trace_start"() <{level = 10 : i32, message = "qd,kd->qk"}> : () -> ()
    %cst_57 = arith.constant dense<0.000000e+00> : vector<48x48xf32>
    %162 = tpu.matmul %159, %160, %cst_57 {dimension_numbers = #tpu.dot_dimension_numbers<[1], [1], [0], [0], [0, 0, 1, 0], [], []>} : vector<48x8xf32>, vector<48x8xf32>, vector<48x48xf32> -> vector<48x48xf32>
    "tpu.trace_stop"() : () -> ()
    %163 = arith.addf %162, %56 : vector<48x48xf32>
    %cst_58 = arith.constant dense<0xFF800000> : vector<48xf32>
    %164 = vector.multi_reduction <maximumf>, %163, %cst_58 [1] : vector<48x48xf32> to vector<48xf32>
    %165 = vector.shape_cast %164 : vector<48xf32> to vector<48x1xf32>
    %166 = vector.broadcast %165 : vector<48x1xf32> to vector<48x48xf32>
    %167 = arith.subf %163, %166 : vector<48x48xf32>
    %168 = math.exp %167 : vector<48x48xf32>
    %cst_59 = arith.constant dense<0.000000e+00> : vector<48xf32>
    %169 = vector.multi_reduction <add>, %168, %cst_59 [1] : vector<48x48xf32> to vector<48xf32>
    %170 = vector.shape_cast %169 : vector<48xf32> to vector<48x1xf32>
    %171 = tpu.reciprocal %170 {approx = true} : vector<48x1xf32> -> vector<48x1xf32>
    %172 = vector.broadcast %171 : vector<48x1xf32> to vector<48x48xf32>
    %173 = arith.mulf %168, %172 : vector<48x48xf32>
    %cst_60 = arith.constant dense<0.000000e+00> : vector<48x8xf32>
    %174 = tpu.matmul %173, %161, %cst_60 {dimension_numbers = #tpu.dot_dimension_numbers<[1], [0], [0], [1], [0, 0, 1, 1], [], []>} : vector<48x48xf32>, vector<48x8xf32>, vector<48x8xf32> -> vector<48x8xf32>
    %175 = vector.extract_strided_slice %100 {offsets = [24, 0], sizes = [8, 32], strides = [1, 1]} : vector<32x32xf32> to vector<8x32xf32>
    %cst_61 = arith.constant dense<0.000000e+00> : vector<48x32xf32>
    %176 = tpu.matmul %174, %175, %cst_61 {dimension_numbers = #tpu.dot_dimension_numbers<[1], [0], [0], [1], [0, 0, 1, 1], [], []>} : vector<48x8xf32>, vector<8x32xf32>, vector<48x32xf32> -> vector<48x32xf32>
    %177 = arith.addf %158, %176 : vector<48x32xf32>
    %178 = arith.addf %28, %177 : vector<48x32xf32>
    %c7 = arith.constant 7 : index
    %c0_62 = arith.constant 0 : index
    %179 = vector.load %arg1[%c7, %c0_62] : memref<120x32xf32, #tpu.memory_space<vmem>>, vector<1x32xf32>
    %180 = vector.broadcast %179 : vector<1x32xf32> to vector<48x32xf32>
    %181 = arith.addf %178, %180 : vector<48x32xf32>
    %c8 = arith.constant 8 : index
    %c0_63 = arith.constant 0 : index
    %182 = vector.load %arg1[%c8, %c0_63] : memref<120x32xf32, #tpu.memory_space<vmem>>, vector<1x32xf32>
    %c9 = arith.constant 9 : index
    %c0_64 = arith.constant 0 : index
    %183 = vector.load %arg1[%c9, %c0_64] : memref<120x32xf32, #tpu.memory_space<vmem>>, vector<1x32xf32>
    %cst_65 = arith.constant dense<0.000000e+00> : vector<48xf32>
    %184 = vector.multi_reduction <add>, %181, %cst_65 [1] : vector<48x32xf32> to vector<48xf32>
    %185 = vector.shape_cast %184 : vector<48xf32> to vector<48x1xf32>
    %cst_66 = arith.constant 3.200000e+01 : f32
    %186 = vector.broadcast %cst_66 : f32 to vector<48x1xf32>
    %187 = arith.divf %185, %186 : vector<48x1xf32>
    %188 = vector.broadcast %187 : vector<48x1xf32> to vector<48x32xf32>
    %189 = arith.subf %181, %188 : vector<48x32xf32>
    %190 = arith.mulf %189, %189 : vector<48x32xf32>
    %cst_67 = arith.constant dense<0.000000e+00> : vector<48xf32>
    %191 = vector.multi_reduction <add>, %190, %cst_67 [1] : vector<48x32xf32> to vector<48xf32>
    %192 = vector.shape_cast %191 : vector<48xf32> to vector<48x1xf32>
    %cst_68 = arith.constant 3.200000e+01 : f32
    %193 = vector.broadcast %cst_68 : f32 to vector<48x1xf32>
    %194 = arith.divf %192, %193 : vector<48x1xf32>
    %195 = vector.broadcast %187 : vector<48x1xf32> to vector<48x32xf32>
    %196 = arith.subf %181, %195 : vector<48x32xf32>
    %cst_69 = arith.constant 9.99999974E-6 : f32
    %197 = vector.broadcast %cst_69 : f32 to vector<48x1xf32>
    %198 = arith.addf %194, %197 : vector<48x1xf32>
    %199 = math.rsqrt %198 : vector<48x1xf32>
    %200 = vector.broadcast %199 : vector<48x1xf32> to vector<48x32xf32>
    %201 = arith.mulf %196, %200 : vector<48x32xf32>
    %202 = vector.broadcast %182 : vector<1x32xf32> to vector<48x32xf32>
    %203 = arith.mulf %201, %202 : vector<48x32xf32>
    %204 = vector.broadcast %183 : vector<1x32xf32> to vector<48x32xf32>
    %205 = arith.addf %203, %204 : vector<48x32xf32>
    %c0_70 = arith.constant 0 : index
    %c0_71 = arith.constant 0 : index
    %c0_72 = arith.constant 0 : index
    %206 = vector.load %arg3[%c0_70, %c0_71, %c0_72] : memref<2x32x128xf32, #tpu.memory_space<vmem>>, vector<1x32x128xf32>
    %207 = vector.shape_cast %206 : vector<1x32x128xf32> to vector<32x128xf32>
    %cst_73 = arith.constant dense<0.000000e+00> : vector<48x128xf32>
    %208 = tpu.matmul %205, %207, %cst_73 {dimension_numbers = #tpu.dot_dimension_numbers<[1], [0], [0], [1], [0, 0, 1, 1], [], []>} : vector<48x32xf32>, vector<32x128xf32>, vector<48x128xf32> -> vector<48x128xf32>
    %c0_74 = arith.constant 0 : index
    %c0_75 = arith.constant 0 : index
    %c0_76 = arith.constant 0 : index
    %209 = vector.load %arg4[%c0_74, %c0_75, %c0_76] : memref<2x1x128xf32, #tpu.memory_space<vmem>>, vector<1x1x128xf32>
    %210 = vector.shape_cast %209 : vector<1x1x128xf32> to vector<1x128xf32>
    %211 = vector.broadcast %210 : vector<1x128xf32> to vector<48x128xf32>
    %212 = arith.addf %208, %211 : vector<48x128xf32>
    %cst_77 = arith.constant 1.702000e+00 : f32
    %213 = vector.broadcast %cst_77 : f32 to vector<48x128xf32>
    %214 = arith.mulf %213, %212 : vector<48x128xf32>
    %215 = arith.negf %214 : vector<48x128xf32>
    %216 = math.exp %215 : vector<48x128xf32>
    %cst_78 = arith.constant 1.000000e+00 : f32
    %217 = vector.broadcast %cst_78 : f32 to vector<48x128xf32>
    %218 = arith.addf %217, %216 : vector<48x128xf32>
    %219 = arith.divf %217, %218 : vector<48x128xf32>
    %220 = arith.mulf %212, %219 : vector<48x128xf32>
    %c0_79 = arith.constant 0 : index
    %c0_80 = arith.constant 0 : index
    %c0_81 = arith.constant 0 : index
    %221 = vector.load %arg5[%c0_79, %c0_80, %c0_81] : memref<2x128x32xf32, #tpu.memory_space<vmem>>, vector<1x128x32xf32>
    %222 = vector.shape_cast %221 : vector<1x128x32xf32> to vector<128x32xf32>
    %cst_82 = arith.constant dense<0.000000e+00> : vector<48x32xf32>
    %223 = tpu.matmul %220, %222, %cst_82 {dimension_numbers = #tpu.dot_dimension_numbers<[1], [0], [0], [1], [0, 0, 1, 1], [], []>} : vector<48x128xf32>, vector<128x32xf32>, vector<48x32xf32> -> vector<48x32xf32>
    %224 = arith.addf %181, %223 : vector<48x32xf32>
    %c10 = arith.constant 10 : index
    %c0_83 = arith.constant 0 : index
    %225 = vector.load %arg1[%c10, %c0_83] : memref<120x32xf32, #tpu.memory_space<vmem>>, vector<1x32xf32>
    %226 = vector.broadcast %225 : vector<1x32xf32> to vector<48x32xf32>
    %227 = arith.addf %224, %226 : vector<48x32xf32>
    %c11 = arith.constant 11 : index
    %c0_84 = arith.constant 0 : index
    %228 = vector.load %arg1[%c11, %c0_84] : memref<120x32xf32, #tpu.memory_space<vmem>>, vector<1x32xf32>
    %c12 = arith.constant 12 : index
    %c0_85 = arith.constant 0 : index
    %229 = vector.load %arg1[%c12, %c0_85] : memref<120x32xf32, #tpu.memory_space<vmem>>, vector<1x32xf32>
    %cst_86 = arith.constant dense<0.000000e+00> : vector<48xf32>
    %230 = vector.multi_reduction <add>, %227, %cst_86 [1] : vector<48x32xf32> to vector<48xf32>
    %231 = vector.shape_cast %230 : vector<48xf32> to vector<48x1xf32>
    %cst_87 = arith.constant 3.200000e+01 : f32
    %232 = vector.broadcast %cst_87 : f32 to vector<48x1xf32>
    %233 = arith.divf %231, %232 : vector<48x1xf32>
    %234 = vector.broadcast %233 : vector<48x1xf32> to vector<48x32xf32>
    %235 = arith.subf %227, %234 : vector<48x32xf32>
    %236 = arith.mulf %235, %235 : vector<48x32xf32>
    %cst_88 = arith.constant dense<0.000000e+00> : vector<48xf32>
    %237 = vector.multi_reduction <add>, %236, %cst_88 [1] : vector<48x32xf32> to vector<48xf32>
    %238 = vector.shape_cast %237 : vector<48xf32> to vector<48x1xf32>
    %cst_89 = arith.constant 3.200000e+01 : f32
    %239 = vector.broadcast %cst_89 : f32 to vector<48x1xf32>
    %240 = arith.divf %238, %239 : vector<48x1xf32>
    %241 = vector.broadcast %233 : vector<48x1xf32> to vector<48x32xf32>
    %242 = arith.subf %227, %241 : vector<48x32xf32>
    %cst_90 = arith.constant 9.99999974E-6 : f32
    %243 = vector.broadcast %cst_90 : f32 to vector<48x1xf32>
    %244 = arith.addf %240, %243 : vector<48x1xf32>
    %245 = math.rsqrt %244 : vector<48x1xf32>
    %246 = vector.broadcast %245 : vector<48x1xf32> to vector<48x32xf32>
    %247 = arith.mulf %242, %246 : vector<48x32xf32>
    %248 = vector.broadcast %228 : vector<1x32xf32> to vector<48x32xf32>
    %249 = arith.mulf %247, %248 : vector<48x32xf32>
    %250 = vector.broadcast %229 : vector<1x32xf32> to vector<48x32xf32>
    %251 = arith.addf %249, %250 : vector<48x32xf32>
    %c4_91 = arith.constant 4 : index
    %c0_92 = arith.constant 0 : index
    %c0_93 = arith.constant 0 : index
    %252 = vector.load %arg2[%c4_91, %c0_92, %c0_93] : memref<8x32x32xf32, #tpu.memory_space<vmem>>, vector<1x32x32xf32>
    %253 = vector.shape_cast %252 : vector<1x32x32xf32> to vector<32x32xf32>
    %cst_94 = arith.constant dense<0.000000e+00> : vector<48x32xf32>
    %254 = tpu.matmul %251, %253, %cst_94 {dimension_numbers = #tpu.dot_dimension_numbers<[1], [0], [0], [1], [0, 0, 1, 1], [], []>} : vector<48x32xf32>, vector<32x32xf32>, vector<48x32xf32> -> vector<48x32xf32>
    %c13 = arith.constant 13 : index
    %c0_95 = arith.constant 0 : index
    %255 = vector.load %arg1[%c13, %c0_95] : memref<120x32xf32, #tpu.memory_space<vmem>>, vector<1x32xf32>
    %256 = vector.broadcast %255 : vector<1x32xf32> to vector<48x32xf32>
    %257 = arith.addf %254, %256 : vector<48x32xf32>
    %c5_96 = arith.constant 5 : index
    %c0_97 = arith.constant 0 : index
    %c0_98 = arith.constant 0 : index
    %258 = vector.load %arg2[%c5_96, %c0_97, %c0_98] : memref<8x32x32xf32, #tpu.memory_space<vmem>>, vector<1x32x32xf32>
    %259 = vector.shape_cast %258 : vector<1x32x32xf32> to vector<32x32xf32>
    %cst_99 = arith.constant dense<0.000000e+00> : vector<48x32xf32>
    %260 = tpu.matmul %251, %259, %cst_99 {dimension_numbers = #tpu.dot_dimension_numbers<[1], [0], [0], [1], [0, 0, 1, 1], [], []>} : vector<48x32xf32>, vector<32x32xf32>, vector<48x32xf32> -> vector<48x32xf32>
    %c14 = arith.constant 14 : index
    %c0_100 = arith.constant 0 : index
    %261 = vector.load %arg1[%c14, %c0_100] : memref<120x32xf32, #tpu.memory_space<vmem>>, vector<1x32xf32>
    %262 = vector.broadcast %261 : vector<1x32xf32> to vector<48x32xf32>
    %263 = arith.addf %260, %262 : vector<48x32xf32>
    %c6_101 = arith.constant 6 : index
    %c0_102 = arith.constant 0 : index
    %c0_103 = arith.constant 0 : index
    %264 = vector.load %arg2[%c6_101, %c0_102, %c0_103] : memref<8x32x32xf32, #tpu.memory_space<vmem>>, vector<1x32x32xf32>
    %265 = vector.shape_cast %264 : vector<1x32x32xf32> to vector<32x32xf32>
    %cst_104 = arith.constant dense<0.000000e+00> : vector<48x32xf32>
    %266 = tpu.matmul %251, %265, %cst_104 {dimension_numbers = #tpu.dot_dimension_numbers<[1], [0], [0], [1], [0, 0, 1, 1], [], []>} : vector<48x32xf32>, vector<32x32xf32>, vector<48x32xf32> -> vector<48x32xf32>
    %c15 = arith.constant 15 : index
    %c0_105 = arith.constant 0 : index
    %267 = vector.load %arg1[%c15, %c0_105] : memref<120x32xf32, #tpu.memory_space<vmem>>, vector<1x32xf32>
    %268 = vector.broadcast %267 : vector<1x32xf32> to vector<48x32xf32>
    %269 = arith.addf %266, %268 : vector<48x32xf32>
    %c7_106 = arith.constant 7 : index
    %c0_107 = arith.constant 0 : index
    %c0_108 = arith.constant 0 : index
    %270 = vector.load %arg2[%c7_106, %c0_107, %c0_108] : memref<8x32x32xf32, #tpu.memory_space<vmem>>, vector<1x32x32xf32>
    %271 = vector.shape_cast %270 : vector<1x32x32xf32> to vector<32x32xf32>
    %cst_109 = arith.constant 0.000000e+00 : f32
    %272 = vector.broadcast %cst_109 : f32 to vector<48x32xf32>
    %273 = vector.extract_strided_slice %257 {offsets = [0, 0], sizes = [48, 8], strides = [1, 1]} : vector<48x32xf32> to vector<48x8xf32>
    %274 = vector.extract_strided_slice %263 {offsets = [0, 0], sizes = [48, 8], strides = [1, 1]} : vector<48x32xf32> to vector<48x8xf32>
    %275 = vector.extract_strided_slice %269 {offsets = [0, 0], sizes = [48, 8], strides = [1, 1]} : vector<48x32xf32> to vector<48x8xf32>
    "tpu.trace_start"() <{level = 10 : i32, message = "qd,kd->qk"}> : () -> ()
    %cst_110 = arith.constant dense<0.000000e+00> : vector<48x48xf32>
    %276 = tpu.matmul %273, %274, %cst_110 {dimension_numbers = #tpu.dot_dimension_numbers<[1], [1], [0], [0], [0, 0, 1, 0], [], []>} : vector<48x8xf32>, vector<48x8xf32>, vector<48x48xf32> -> vector<48x48xf32>
    "tpu.trace_stop"() : () -> ()
    %277 = arith.addf %276, %56 : vector<48x48xf32>
    %cst_111 = arith.constant dense<0xFF800000> : vector<48xf32>
    %278 = vector.multi_reduction <maximumf>, %277, %cst_111 [1] : vector<48x48xf32> to vector<48xf32>
    %279 = vector.shape_cast %278 : vector<48xf32> to vector<48x1xf32>
    %280 = vector.broadcast %279 : vector<48x1xf32> to vector<48x48xf32>
    %281 = arith.subf %277, %280 : vector<48x48xf32>
    %282 = math.exp %281 : vector<48x48xf32>
    %cst_112 = arith.constant dense<0.000000e+00> : vector<48xf32>
    %283 = vector.multi_reduction <add>, %282, %cst_112 [1] : vector<48x48xf32> to vector<48xf32>
    %284 = vector.shape_cast %283 : vector<48xf32> to vector<48x1xf32>
    %285 = tpu.reciprocal %284 {approx = true} : vector<48x1xf32> -> vector<48x1xf32>
    %286 = vector.broadcast %285 : vector<48x1xf32> to vector<48x48xf32>
    %287 = arith.mulf %282, %286 : vector<48x48xf32>
    %cst_113 = arith.constant dense<0.000000e+00> : vector<48x8xf32>
    %288 = tpu.matmul %287, %275, %cst_113 {dimension_numbers = #tpu.dot_dimension_numbers<[1], [0], [0], [1], [0, 0, 1, 1], [], []>} : vector<48x48xf32>, vector<48x8xf32>, vector<48x8xf32> -> vector<48x8xf32>
    %289 = vector.extract_strided_slice %271 {offsets = [0, 0], sizes = [8, 32], strides = [1, 1]} : vector<32x32xf32> to vector<8x32xf32>
    %cst_114 = arith.constant dense<0.000000e+00> : vector<48x32xf32>
    %290 = tpu.matmul %288, %289, %cst_114 {dimension_numbers = #tpu.dot_dimension_numbers<[1], [0], [0], [1], [0, 0, 1, 1], [], []>} : vector<48x8xf32>, vector<8x32xf32>, vector<48x32xf32> -> vector<48x32xf32>
    %291 = arith.addf %272, %290 : vector<48x32xf32>
    %292 = vector.extract_strided_slice %257 {offsets = [0, 8], sizes = [48, 8], strides = [1, 1]} : vector<48x32xf32> to vector<48x8xf32>
    %293 = vector.extract_strided_slice %263 {offsets = [0, 8], sizes = [48, 8], strides = [1, 1]} : vector<48x32xf32> to vector<48x8xf32>
    %294 = vector.extract_strided_slice %269 {offsets = [0, 8], sizes = [48, 8], strides = [1, 1]} : vector<48x32xf32> to vector<48x8xf32>
    "tpu.trace_start"() <{level = 10 : i32, message = "qd,kd->qk"}> : () -> ()
    %cst_115 = arith.constant dense<0.000000e+00> : vector<48x48xf32>
    %295 = tpu.matmul %292, %293, %cst_115 {dimension_numbers = #tpu.dot_dimension_numbers<[1], [1], [0], [0], [0, 0, 1, 0], [], []>} : vector<48x8xf32>, vector<48x8xf32>, vector<48x48xf32> -> vector<48x48xf32>
    "tpu.trace_stop"() : () -> ()
    %296 = arith.addf %295, %56 : vector<48x48xf32>
    %cst_116 = arith.constant dense<0xFF800000> : vector<48xf32>
    %297 = vector.multi_reduction <maximumf>, %296, %cst_116 [1] : vector<48x48xf32> to vector<48xf32>
    %298 = vector.shape_cast %297 : vector<48xf32> to vector<48x1xf32>
    %299 = vector.broadcast %298 : vector<48x1xf32> to vector<48x48xf32>
    %300 = arith.subf %296, %299 : vector<48x48xf32>
    %301 = math.exp %300 : vector<48x48xf32>
    %cst_117 = arith.constant dense<0.000000e+00> : vector<48xf32>
    %302 = vector.multi_reduction <add>, %301, %cst_117 [1] : vector<48x48xf32> to vector<48xf32>
    %303 = vector.shape_cast %302 : vector<48xf32> to vector<48x1xf32>
    %304 = tpu.reciprocal %303 {approx = true} : vector<48x1xf32> -> vector<48x1xf32>
    %305 = vector.broadcast %304 : vector<48x1xf32> to vector<48x48xf32>
    %306 = arith.mulf %301, %305 : vector<48x48xf32>
    %cst_118 = arith.constant dense<0.000000e+00> : vector<48x8xf32>
    %307 = tpu.matmul %306, %294, %cst_118 {dimension_numbers = #tpu.dot_dimension_numbers<[1], [0], [0], [1], [0, 0, 1, 1], [], []>} : vector<48x48xf32>, vector<48x8xf32>, vector<48x8xf32> -> vector<48x8xf32>
    %308 = vector.extract_strided_slice %271 {offsets = [8, 0], sizes = [8, 32], strides = [1, 1]} : vector<32x32xf32> to vector<8x32xf32>
    %cst_119 = arith.constant dense<0.000000e+00> : vector<48x32xf32>
    %309 = tpu.matmul %307, %308, %cst_119 {dimension_numbers = #tpu.dot_dimension_numbers<[1], [0], [0], [1], [0, 0, 1, 1], [], []>} : vector<48x8xf32>, vector<8x32xf32>, vector<48x32xf32> -> vector<48x32xf32>
    %310 = arith.addf %291, %309 : vector<48x32xf32>
    %311 = vector.extract_strided_slice %257 {offsets = [0, 16], sizes = [48, 8], strides = [1, 1]} : vector<48x32xf32> to vector<48x8xf32>
    %312 = vector.extract_strided_slice %263 {offsets = [0, 16], sizes = [48, 8], strides = [1, 1]} : vector<48x32xf32> to vector<48x8xf32>
    %313 = vector.extract_strided_slice %269 {offsets = [0, 16], sizes = [48, 8], strides = [1, 1]} : vector<48x32xf32> to vector<48x8xf32>
    "tpu.trace_start"() <{level = 10 : i32, message = "qd,kd->qk"}> : () -> ()
    %cst_120 = arith.constant dense<0.000000e+00> : vector<48x48xf32>
    %314 = tpu.matmul %311, %312, %cst_120 {dimension_numbers = #tpu.dot_dimension_numbers<[1], [1], [0], [0], [0, 0, 1, 0], [], []>} : vector<48x8xf32>, vector<48x8xf32>, vector<48x48xf32> -> vector<48x48xf32>
    "tpu.trace_stop"() : () -> ()
    %315 = arith.addf %314, %56 : vector<48x48xf32>
    %cst_121 = arith.constant dense<0xFF800000> : vector<48xf32>
    %316 = vector.multi_reduction <maximumf>, %315, %cst_121 [1] : vector<48x48xf32> to vector<48xf32>
    %317 = vector.shape_cast %316 : vector<48xf32> to vector<48x1xf32>
    %318 = vector.broadcast %317 : vector<48x1xf32> to vector<48x48xf32>
    %319 = arith.subf %315, %318 : vector<48x48xf32>
    %320 = math.exp %319 : vector<48x48xf32>
    %cst_122 = arith.constant dense<0.000000e+00> : vector<48xf32>
    %321 = vector.multi_reduction <add>, %320, %cst_122 [1] : vector<48x48xf32> to vector<48xf32>
    %322 = vector.shape_cast %321 : vector<48xf32> to vector<48x1xf32>
    %323 = tpu.reciprocal %322 {approx = true} : vector<48x1xf32> -> vector<48x1xf32>
    %324 = vector.broadcast %323 : vector<48x1xf32> to vector<48x48xf32>
    %325 = arith.mulf %320, %324 : vector<48x48xf32>
    %cst_123 = arith.constant dense<0.000000e+00> : vector<48x8xf32>
    %326 = tpu.matmul %325, %313, %cst_123 {dimension_numbers = #tpu.dot_dimension_numbers<[1], [0], [0], [1], [0, 0, 1, 1], [], []>} : vector<48x48xf32>, vector<48x8xf32>, vector<48x8xf32> -> vector<48x8xf32>
    %327 = vector.extract_strided_slice %271 {offsets = [16, 0], sizes = [8, 32], strides = [1, 1]} : vector<32x32xf32> to vector<8x32xf32>
    %cst_124 = arith.constant dense<0.000000e+00> : vector<48x32xf32>
    %328 = tpu.matmul %326, %327, %cst_124 {dimension_numbers = #tpu.dot_dimension_numbers<[1], [0], [0], [1], [0, 0, 1, 1], [], []>} : vector<48x8xf32>, vector<8x32xf32>, vector<48x32xf32> -> vector<48x32xf32>
    %329 = arith.addf %310, %328 : vector<48x32xf32>
    %330 = vector.extract_strided_slice %257 {offsets = [0, 24], sizes = [48, 8], strides = [1, 1]} : vector<48x32xf32> to vector<48x8xf32>
    %331 = vector.extract_strided_slice %263 {offsets = [0, 24], sizes = [48, 8], strides = [1, 1]} : vector<48x32xf32> to vector<48x8xf32>
    %332 = vector.extract_strided_slice %269 {offsets = [0, 24], sizes = [48, 8], strides = [1, 1]} : vector<48x32xf32> to vector<48x8xf32>
    "tpu.trace_start"() <{level = 10 : i32, message = "qd,kd->qk"}> : () -> ()
    %cst_125 = arith.constant dense<0.000000e+00> : vector<48x48xf32>
    %333 = tpu.matmul %330, %331, %cst_125 {dimension_numbers = #tpu.dot_dimension_numbers<[1], [1], [0], [0], [0, 0, 1, 0], [], []>} : vector<48x8xf32>, vector<48x8xf32>, vector<48x48xf32> -> vector<48x48xf32>
    "tpu.trace_stop"() : () -> ()
    %334 = arith.addf %333, %56 : vector<48x48xf32>
    %cst_126 = arith.constant dense<0xFF800000> : vector<48xf32>
    %335 = vector.multi_reduction <maximumf>, %334, %cst_126 [1] : vector<48x48xf32> to vector<48xf32>
    %336 = vector.shape_cast %335 : vector<48xf32> to vector<48x1xf32>
    %337 = vector.broadcast %336 : vector<48x1xf32> to vector<48x48xf32>
    %338 = arith.subf %334, %337 : vector<48x48xf32>
    %339 = math.exp %338 : vector<48x48xf32>
    %cst_127 = arith.constant dense<0.000000e+00> : vector<48xf32>
    %340 = vector.multi_reduction <add>, %339, %cst_127 [1] : vector<48x48xf32> to vector<48xf32>
    %341 = vector.shape_cast %340 : vector<48xf32> to vector<48x1xf32>
    %342 = tpu.reciprocal %341 {approx = true} : vector<48x1xf32> -> vector<48x1xf32>
    %343 = vector.broadcast %342 : vector<48x1xf32> to vector<48x48xf32>
    %344 = arith.mulf %339, %343 : vector<48x48xf32>
    %cst_128 = arith.constant dense<0.000000e+00> : vector<48x8xf32>
    %345 = tpu.matmul %344, %332, %cst_128 {dimension_numbers = #tpu.dot_dimension_numbers<[1], [0], [0], [1], [0, 0, 1, 1], [], []>} : vector<48x48xf32>, vector<48x8xf32>, vector<48x8xf32> -> vector<48x8xf32>
    %346 = vector.extract_strided_slice %271 {offsets = [24, 0], sizes = [8, 32], strides = [1, 1]} : vector<32x32xf32> to vector<8x32xf32>
    %cst_129 = arith.constant dense<0.000000e+00> : vector<48x32xf32>
    %347 = tpu.matmul %345, %346, %cst_129 {dimension_numbers = #tpu.dot_dimension_numbers<[1], [0], [0], [1], [0, 0, 1, 1], [], []>} : vector<48x8xf32>, vector<8x32xf32>, vector<48x32xf32> -> vector<48x32xf32>
    %348 = arith.addf %329, %347 : vector<48x32xf32>
    %349 = arith.addf %227, %348 : vector<48x32xf32>
    %c16 = arith.constant 16 : index
    %c0_130 = arith.constant 0 : index
    %350 = vector.load %arg1[%c16, %c0_130] : memref<120x32xf32, #tpu.memory_space<vmem>>, vector<1x32xf32>
    %351 = vector.broadcast %350 : vector<1x32xf32> to vector<48x32xf32>
    %352 = arith.addf %349, %351 : vector<48x32xf32>
    %c17 = arith.constant 17 : index
    %c0_131 = arith.constant 0 : index
    %353 = vector.load %arg1[%c17, %c0_131] : memref<120x32xf32, #tpu.memory_space<vmem>>, vector<1x32xf32>
    %c18 = arith.constant 18 : index
    %c0_132 = arith.constant 0 : index
    %354 = vector.load %arg1[%c18, %c0_132] : memref<120x32xf32, #tpu.memory_space<vmem>>, vector<1x32xf32>
    %cst_133 = arith.constant dense<0.000000e+00> : vector<48xf32>
    %355 = vector.multi_reduction <add>, %352, %cst_133 [1] : vector<48x32xf32> to vector<48xf32>
    %356 = vector.shape_cast %355 : vector<48xf32> to vector<48x1xf32>
    %cst_134 = arith.constant 3.200000e+01 : f32
    %357 = vector.broadcast %cst_134 : f32 to vector<48x1xf32>
    %358 = arith.divf %356, %357 : vector<48x1xf32>
    %359 = vector.broadcast %358 : vector<48x1xf32> to vector<48x32xf32>
    %360 = arith.subf %352, %359 : vector<48x32xf32>
    %361 = arith.mulf %360, %360 : vector<48x32xf32>
    %cst_135 = arith.constant dense<0.000000e+00> : vector<48xf32>
    %362 = vector.multi_reduction <add>, %361, %cst_135 [1] : vector<48x32xf32> to vector<48xf32>
    %363 = vector.shape_cast %362 : vector<48xf32> to vector<48x1xf32>
    %cst_136 = arith.constant 3.200000e+01 : f32
    %364 = vector.broadcast %cst_136 : f32 to vector<48x1xf32>
    %365 = arith.divf %363, %364 : vector<48x1xf32>
    %366 = vector.broadcast %358 : vector<48x1xf32> to vector<48x32xf32>
    %367 = arith.subf %352, %366 : vector<48x32xf32>
    %cst_137 = arith.constant 9.99999974E-6 : f32
    %368 = vector.broadcast %cst_137 : f32 to vector<48x1xf32>
    %369 = arith.addf %365, %368 : vector<48x1xf32>
    %370 = math.rsqrt %369 : vector<48x1xf32>
    %371 = vector.broadcast %370 : vector<48x1xf32> to vector<48x32xf32>
    %372 = arith.mulf %367, %371 : vector<48x32xf32>
    %373 = vector.broadcast %353 : vector<1x32xf32> to vector<48x32xf32>
    %374 = arith.mulf %372, %373 : vector<48x32xf32>
    %375 = vector.broadcast %354 : vector<1x32xf32> to vector<48x32xf32>
    %376 = arith.addf %374, %375 : vector<48x32xf32>
    %c1_138 = arith.constant 1 : index
    %c0_139 = arith.constant 0 : index
    %c0_140 = arith.constant 0 : index
    %377 = vector.load %arg3[%c1_138, %c0_139, %c0_140] : memref<2x32x128xf32, #tpu.memory_space<vmem>>, vector<1x32x128xf32>
    %378 = vector.shape_cast %377 : vector<1x32x128xf32> to vector<32x128xf32>
    %cst_141 = arith.constant dense<0.000000e+00> : vector<48x128xf32>
    %379 = tpu.matmul %376, %378, %cst_141 {dimension_numbers = #tpu.dot_dimension_numbers<[1], [0], [0], [1], [0, 0, 1, 1], [], []>} : vector<48x32xf32>, vector<32x128xf32>, vector<48x128xf32> -> vector<48x128xf32>
    %c1_142 = arith.constant 1 : index
    %c0_143 = arith.constant 0 : index
    %c0_144 = arith.constant 0 : index
    %380 = vector.load %arg4[%c1_142, %c0_143, %c0_144] : memref<2x1x128xf32, #tpu.memory_space<vmem>>, vector<1x1x128xf32>
    %381 = vector.shape_cast %380 : vector<1x1x128xf32> to vector<1x128xf32>
    %382 = vector.broadcast %381 : vector<1x128xf32> to vector<48x128xf32>
    %383 = arith.addf %379, %382 : vector<48x128xf32>
    %cst_145 = arith.constant 1.702000e+00 : f32
    %384 = vector.broadcast %cst_145 : f32 to vector<48x128xf32>
    %385 = arith.mulf %384, %383 : vector<48x128xf32>
    %386 = arith.negf %385 : vector<48x128xf32>
    %387 = math.exp %386 : vector<48x128xf32>
    %cst_146 = arith.constant 1.000000e+00 : f32
    %388 = vector.broadcast %cst_146 : f32 to vector<48x128xf32>
    %389 = arith.addf %388, %387 : vector<48x128xf32>
    %390 = arith.divf %388, %389 : vector<48x128xf32>
    %391 = arith.mulf %383, %390 : vector<48x128xf32>
    %c1_147 = arith.constant 1 : index
    %c0_148 = arith.constant 0 : index
    %c0_149 = arith.constant 0 : index
    %392 = vector.load %arg5[%c1_147, %c0_148, %c0_149] : memref<2x128x32xf32, #tpu.memory_space<vmem>>, vector<1x128x32xf32>
    %393 = vector.shape_cast %392 : vector<1x128x32xf32> to vector<128x32xf32>
    %cst_150 = arith.constant dense<0.000000e+00> : vector<48x32xf32>
    %394 = tpu.matmul %391, %393, %cst_150 {dimension_numbers = #tpu.dot_dimension_numbers<[1], [0], [0], [1], [0, 0, 1, 1], [], []>} : vector<48x128xf32>, vector<128x32xf32>, vector<48x32xf32> -> vector<48x32xf32>
    %395 = arith.addf %352, %394 : vector<48x32xf32>
    %c19 = arith.constant 19 : index
    %c0_151 = arith.constant 0 : index
    %396 = vector.load %arg1[%c19, %c0_151] : memref<120x32xf32, #tpu.memory_space<vmem>>, vector<1x32xf32>
    %397 = vector.broadcast %396 : vector<1x32xf32> to vector<48x32xf32>
    %398 = arith.addf %395, %397 : vector<48x32xf32>
    %c0_152 = arith.constant 0 : index
    %c0_153 = arith.constant 0 : index
    %399 = vector.load %arg6[%c0_152, %c0_153] : memref<48x32xf32, #tpu.memory_space<vmem>>, vector<48x32xf32>
    tpu.vector_store %arg6[%c0_152, %c0_153], %398 {strides = array<i32>} : memref<48x32xf32, #tpu.memory_space<vmem>>, vector<48x32xf32>,
    return
  }
}

</mosaic_0001>

<bundles_post_ra>
// kernel: clip_patches_forward.1
= control target key start
LH: loop header
LB: loop body
LE: loop exit
PB: predicated region body
PF: predicated region fallthrough
CT: control target
= control target key end

     0   :  { %vm41_vm0 = vcmask 392192   ;;  %vm157_vm1 = vcmask 261120   ;;  %vm779_vm2 = vcmask 64512   ;;  %s7346_s21 = smov 120   ;;  %s7347_s24 = smov 112   ;;  %s9114_s1 = inlined_call_operand.vmem [shape: f32[120,32], index: 1, kind: input, shape index: {}]   ;;  %s9115_s0 = inlined_call_operand.vmem [shape: f32[48,48], index: 0, kind: input, shape index: {}]   ;;  %s9116_s2 = inlined_call_operand.vmem [shape: f32[8,32,32], index: 2, kind: input, shape index: {}]   ;;  %s9117_s3 = inlined_call_operand.vmem [shape: f32[2,32,128], index: 3, kind: input, shape index: {}]   ;;  %s9118_s5 = inlined_call_operand.vmem [shape: f32[2,128,32], index: 5, kind: input, shape index: {}]   ;;  %s9119_s4 = inlined_call_operand.vmem [shape: f32[2,1,128], index: 4, kind: input, shape index: {}]   ;;  %s9120_s6 = inlined_call_operand.vmem [shape: f32[48,32], index: 6, kind: output, shape index: {}]  }
   0x1   :  { %v28_v0 = vld [vmem:[%s9114_s1 + $0x40] sm:$0xff]  ;;  %v27_v1 = vld [vmem:[%s9114_s1 + $0x38] sm:$0xff]  ;;  %v26_v2 = vld [vmem:[%s9114_s1 + $0x30] sm:$0xff]  ;;  %s7348_s25 = smov 104  }
   0x2   :  { %6378 = vmatprep.subr.mxu1 %v28_v0  ;;  %v35_v3 = vld [vmem:[%s9115_s0] sm:$0xff]  ;;  %v25_v4 = vld [vmem:[%s9114_s1 + $0x28] sm:$0xff]  ;;  %v23_v6 = vld [vmem:[%s9114_s1 + $0x18] sm:$0xff] }
   0x3   :  { %6379 = vmatpush3.msra.mxu1 %v28_v0  ;;  %6390 = vmatprep.mubr.msk.f32.mxu1 %vm41_vm0, %v35_v3  ;;  %v24_v5 = vld [vmem:[%s9114_s1 + $0x20] sm:$0xff]  ;;  %v36_v7 = vld [vmem:[%s9115_s0 + $0x8] sm:$0xff]  ;;  %v37_v8 = vld [vmem:[%s9115_s0 + $0x10] sm:$0xff] }
   0x4   :  { %6380 = vmatprep.subr.mxu1 %v27_v1  ;;  %v38_v9 = vld [vmem:[%s9115_s0 + $0x18] sm:$0xff]  ;;  %v39_v10 = vld [vmem:[%s9115_s0 + $0x20] sm:$0xff]  ;;  %v40_v11 = vld [vmem:[%s9115_s0 + $0x28] sm:$0xff] }
   0x5   :  { %6381 = vmatpush3.msra.mxu1 %v27_v1  ;;  %v29_v13 = vld [vmem:[%s9114_s1 + $0x48] sm:$0xff]  ;;  %v30_v14 = vld [vmem:[%s9114_s1 + $0x50] sm:$0xff]  ;;  %v31_v18 = vld [vmem:[%s9114_s1 + $0x58] sm:$0xff] }
   0x6   :  { %6382 = vmatprep.subr.mxu1 %v26_v2  ;;  %v32_v21 = vld [vmem:[%s9114_s1 + $0x60] sm:$0xff]  ;;  %v33_v25 = vld [vmem:[%s9114_s1 + $0x68] sm:$0xff]  ;;  %v34_v29 = vld [vmem:[%s9114_s1 + $0x70] sm:$0xff] }
   0x7   :  { %6383 = vmatpush3.msra.mxu1 %v26_v2 }
   0x8   :  { %6384 = vmatprep.subr.mxu1 %v25_v4 }
   0x9   :  { %6385 = vmatpush3.msra.mxu1 %v25_v4 }
   0xa   :  { %6386 = vmatprep.subr.mxu1 %v24_v5 }
   0xb   :  { %6387 = vmatpush3.msra.mxu1 %v24_v5 }
   0xc   :  { %6388 = vmatprep.subr.mxu1 %v23_v6 }
   0xd   :  { %6389 = vmatpush3.msra.mxu1 %v23_v6 }
   0xe   :  { %6391 = vmatmul.mubr.msk.f32.vlgmr.msra.gmra.mxu1 %vm41_vm0, %v36_v7 }
   0xf   :  { %6393 = vmatprep.mubr.msk.f32.mxu1 %vm41_vm0, %v37_v8 }
  0x12   :  { %6394 = vmatmul.mubr.msk.f32.gmra.mxu1 %vm41_vm0, %v38_v9 }
  0x13   :  { %6396 = vmatprep.mubr.msk.f32.mxu1 %vm41_vm0, %v39_v10 }
  0x16   :  { %6397 = vmatmul.mubr.msk.f32.gmra.mxu1 %vm41_vm0, %v40_v11 }
  0xce   :  { %v6392_v12 = vpop.f32.mrf.mxu1 }
  0xcf   :  { %v132_v19 = vadd.f32 %v6392_v12, %v30_v14 }
  0xd0   :  { %v126_v15 = vpop.f32.mrf.mxu1 }
  0xd1   :  { %v127_v16 = vadd.f32 %v126_v15, %v29_v13  ;;  %v161_v28 = vsel %vm157_vm1, %v132_v19, 0.0 }
  0xd2   :  { %v6395_v17 = vpop.f32.mrf.mxu1 }
  0xd3   :  { %v158_v20 = vsel %vm157_vm1, %v127_v16, 0.0  ;;  %v142_v26 = vadd.f32 %v6395_v17, %v32_v21  ;;  %v5671_v21 = vld [vmem:[%s9114_s1] ss:$0 sm:$0xff] }
  0xd4   :  { %v136_v22 = vpop.f32.mrf.mxu1  ;;  %159 = vadd.xlane.f32.xlu0 %v158_v20 }
  0xd5   :  { %v137_v23 = vadd.f32 %v136_v22, %v31_v18  ;;  %v167_v33 = vsel %vm157_vm1, %v142_v26, 0.0 }
  0xd6   :  { %v6398_v24 = vpop.f32.mrf.mxu1 }
  0xd7   :  { %v164_v27 = vsel %vm157_vm1, %v137_v23, 0.0  ;;  %v152_v32 = vadd.f32 %v6398_v24, %v34_v29 }
  0xd8   :  { %v146_v30 = vpop.f32.mrf.mxu1  ;;  %165 = vadd.xlane.f32.xlu1 %v164_v27  ;;  %162 = vadd.xlane.f32.xlu0 %v161_v28 }
  0xd9   :  { %v147_v31 = vadd.f32 %v146_v30, %v33_v25  ;;  %v173_v35 = vsel %vm157_vm1, %v152_v32, 0.0 }
  0xdb   :  { %v170_v34 = vsel %vm157_vm1, %v147_v31, 0.0 }
  0xdc   :  { %168 = vadd.xlane.f32.xlu1 %v167_v33  ;;  %171 = vadd.xlane.f32.xlu0 %v170_v34 }
  0xe0   :  { %174 = vadd.xlane.f32.xlu1 %v173_v35 }
 0x15d   :  { %v160_v36 = vpop.xlane.xlu0 %159 }
 0x15e   :  { %v177_v37 = vmul.f32 0.03125, %v160_v36 }
 0x160   :  { %v183_v38 = vsub.f32 %v127_v16, %v177_v37 }
 0x161   :  { %v166_v39 = vpop.xlane.xlu1 %165  ;;  %v163_v40 = vpop.xlane.xlu0 %162 }
 0x162   :  { %v179_v41 = vmul.f32 0.03125, %v166_v39  ;;  %v178_v42 = vmul.f32 0.03125, %v163_v40  ;;  %v189_v43 = vmul.f32 %v183_v38, %v183_v38 }
 0x164   :  { %v185_v44 = vsub.f32 %v137_v23, %v179_v41  ;;  %v184_v45 = vsub.f32 %v132_v19, %v178_v42  ;;  %v195_v46 = vsel %vm157_vm1, %v189_v43, 0.0  ;;  %v5672_v23 = vld [vmem:[%s9114_s1 + $0x1] ss:$0 sm:$0xff] }
 0x165   :  { %v169_v47 = vpop.xlane.xlu1 %168  ;;  %196 = vadd.xlane.f32.xlu0 %v195_v46  ;;  %v172_v48 = vpop.xlane.xlu0 %171 }
 0x166   :  { %v180_v49 = vmul.f32 0.03125, %v169_v47  ;;  %v181_v50 = vmul.f32 0.03125, %v172_v48  ;;  %v191_v51 = vmul.f32 %v185_v44, %v185_v44  ;;  %v190_v52 = vmul.f32 %v184_v45, %v184_v45 }
 0x168   :  { %v186_v53 = vsub.f32 %v142_v26, %v180_v49  ;;  %v187_v54 = vsub.f32 %v147_v31, %v181_v50  ;;  %v201_v55 = vsel %vm157_vm1, %v191_v51, 0.0  ;;  %v198_v56 = vsel %vm157_vm1, %v190_v52, 0.0 }
 0x169   :  { %v175_v57 = vpop.xlane.xlu1 %174  ;;  %202 = vadd.xlane.f32.xlu0 %v201_v55  ;;  %199 = vadd.xlane.f32.xlu1 %v198_v56 }
 0x16a   :  { %v182_v58 = vmul.f32 0.03125, %v175_v57  ;;  %v192_v59 = vmul.f32 %v186_v53, %v186_v53  ;;  %v193_v60 = vmul.f32 %v187_v54, %v187_v54 }
 0x16c   :  { %v188_v61 = vsub.f32 %v152_v32, %v182_v58  ;;  %v204_v62 = vsel %vm157_vm1, %v192_v59, 0.0  ;;  %v207_v63 = vsel %vm157_vm1, %v193_v60, 0.0 }
 0x16d   :  { %205 = vadd.xlane.f32.xlu1 %v204_v62  ;;  %208 = vadd.xlane.f32.xlu0 %v207_v63 }
 0x16e   :  { %v194_v0 = vmul.f32 %v188_v61, %v188_v61 }
 0x170   :  { %v210_v1 = vsel %vm157_vm1, %v194_v0, 0.0 }
 0x171   :  { %211 = vadd.xlane.f32.xlu1 %v210_v1 }
 0x1ee   :  { %v197_v2 = vpop.xlane.xlu0 %196 }
 0x1ef   :  { %v213_v3 = vmul.f32 0.03125, %v197_v2 }
 0x1f1   :  { %v219_v4 = vadd.f32 1e-05, %v213_v3 }
 0x1f2   :  { %v200_v5 = vpop.xlane.xlu1 %199  ;;  %v203_v6 = vpop.xlane.xlu0 %202 }
 0x1f3   :  { %7045 = vrsqrt.f32 %v219_v4  ;;  %v214_v7 = vmul.f32 0.03125, %v200_v5  ;;  %v215_v8 = vmul.f32 0.03125, %v203_v6 }
 0x1f5   :  { %v220_v9 = vadd.f32 1e-05, %v214_v7  ;;  %v221_v10 = vadd.f32 1e-05, %v215_v8 }
 0x1f6   :  { %v206_v11 = vpop.xlane.xlu1 %205  ;;  %v209_v12 = vpop.xlane.xlu0 %208 }
 0x1f7   :  { %7047 = vrsqrt.f32 %v220_v9  ;;  %v216_v13 = vmul.f32 0.03125, %v206_v11  ;;  %v217_v14 = vmul.f32 0.03125, %v209_v12 }
 0x1f8   :  { %7049 = vrsqrt.f32 %v221_v10 }
 0x1f9   :  { %v222_v15 = vadd.f32 1e-05, %v216_v13  ;;  %v223_v16 = vadd.f32 1e-05, %v217_v14 }
 0x1fa   :  { %v212_v17 = vpop.xlane.xlu1 %211 }
 0x1fb   :  { %7051 = vrsqrt.f32 %v222_v15  ;;  %v218_v18 = vmul.f32 0.03125, %v212_v17 }
 0x1fc   :  { %7053 = vrsqrt.f32 %v223_v16 }
 0x1fd   :  { %v224_v19 = vadd.f32 1e-05, %v218_v18  ;;  %v445_v18 = vld [vmem:[%s9116_s2 + $0x18] sm:$0xff] }
 0x1fe   :  { %6399 = vmatprep.subr.mxu1 %v445_v18 }
 0x1ff   :  { %7055 = vrsqrt.f32 %v224_v19  ;;  %v5696_v19 = vld [vmem:[%s9116_s2 + $0x58] sm:$0xff]  ;;  %6400 = vmatpush3.msra.mxu1 %v445_v18  ;;  %v7591_v18 = vld [vmem:[%s9114_s1 + $0x4] ss:$0 sm:$0xff] }
 0x200   :  { %v7046_v20 = vpop.eup %7045  ;;  %6433 = vmatprep.subr.mxu0 %v5696_v19 }
 0x201   :  { %v231_v22 = vmul.f32 %v7046_v20, %v183_v38  ;;  %v444_v20 = vld [vmem:[%s9116_s2 + $0x10] sm:$0xff]  ;;  %6434 = vmatpush3.msra.mxu0 %v5696_v19 }
 0x202   :  { %6401 = vmatprep.subr.mxu1 %v444_v20 }
 0x203   :  { %v241_v24 = vmul.f32 %v5671_v21, %v231_v22  ;;  %v5695_v22 = vld [vmem:[%s9116_s2 + $0x50] sm:$0xff]  ;;  %6402 = vmatpush3.msra.mxu1 %v444_v20 }
 0x204   :  { %v7048_v25 = vpop.eup %7047  ;;  %6435 = vmatprep.subr.mxu0 %v5695_v22 }
 0x205   :  { %v7050_v26 = vpop.eup %7049  ;;  %v7462_v27 = vadd.f32 %v5672_v23, %v241_v24  ;;  %v232_v28 = vmul.f32 %v7048_v25, %v184_v45  ;;  %6436 = vmatpush3.msra.mxu0 %v5695_v22  ;;  %v442_v24 = vld [vmem:[%s9116_s2] sm:$0xff] }
 0x206   :  { %v233_v29 = vmul.f32 %v7050_v26, %v185_v44  ;;  %v5693_v25 = vld [vmem:[%s9116_s2 + $0x40] sm:$0xff]  ;;  %v5685_v26 = vld [vmem:[%s9116_s2 + $0x38] sm:$0xff] }
 0x207   :  { %v344_v30 = vsel %vm157_vm1, %v7462_v27, 0.0  ;;  %v242_v31 = vmul.f32 %v5671_v21, %v232_v28 }
 0x208   :  { %v7052_v32 = vpop.eup %7051  ;;  %345 = vadd.xlane.f32.xlu0 %v344_v30  ;;  %v243_v33 = vmul.f32 %v5671_v21, %v233_v29 }
 0x209   :  { %v7054_v34 = vpop.eup %7053  ;;  %v7466_v35 = vadd.f32 %v5672_v23, %v242_v31  ;;  %v234_v36 = vmul.f32 %v7052_v32, %v186_v53 }
 0x20a   :  { %v7468_v37 = vadd.f32 %v5672_v23, %v243_v33  ;;  %v235_v38 = vmul.f32 %v7054_v34, %v187_v54 }
 0x20b   :  { %v347_v39 = vsel %vm157_vm1, %v7466_v35, 0.0  ;;  %v244_v40 = vmul.f32 %v5671_v21, %v234_v36 }
 0x20c   :  { %v7056_v41 = vpop.eup %7055  ;;  %348 = vadd.xlane.f32.xlu1 %v347_v39  ;;  %v350_v42 = vsel %vm157_vm1, %v7468_v37, 0.0  ;;  %v245_v43 = vmul.f32 %v5671_v21, %v235_v38 }
 0x20d   :  { %351 = vadd.xlane.f32.xlu0 %v350_v42  ;;  %v7474_v44 = vadd.f32 %v5672_v23, %v244_v40  ;;  %v236_v45 = vmul.f32 %v7056_v41, %v188_v61 }
 0x20e   :  { %v7476_v46 = vadd.f32 %v5672_v23, %v245_v43 }
 0x20f   :  { %v353_v47 = vsel %vm157_vm1, %v7474_v44, 0.0  ;;  %v246_v48 = vmul.f32 %v5671_v21, %v236_v45  ;;  %v443_v21 = vld [vmem:[%s9116_s2 + $0x8] sm:$0xff] }
 0x210   :  { %354 = vadd.xlane.f32.xlu1 %v353_v47  ;;  %v356_v49 = vsel %vm157_vm1, %v7476_v46, 0.0  ;;  %6403 = vmatprep.subr.mxu1 %v443_v21 }
 0x211   :  { %357 = vadd.xlane.f32.xlu0 %v356_v49  ;;  %v7482_v50 = vadd.f32 %v5672_v23, %v246_v48  ;;  %v5694_v23 = vld [vmem:[%s9116_s2 + $0x48] sm:$0xff]  ;;  %6404 = vmatpush3.msra.mxu1 %v443_v21 }
 0x212   :  { %6437 = vmatprep.subr.mxu0 %v5694_v23  ;;  %6405 = vmatprep.subr.mxu1 %v442_v24 }
 0x213   :  { %v359_v51 = vsel %vm157_vm1, %v7482_v50, 0.0  ;;  %6438 = vmatpush3.msra.mxu0 %v5694_v23  ;;  %6406 = vmatpush3.msra.mxu1 %v442_v24 }
 0x214   :  { %360 = vadd.xlane.f32.xlu1 %v359_v51  ;;  %6439 = vmatprep.subr.mxu0 %v5693_v25 }
 0x215   :  { %6440 = vmatpush3.msra.mxu0 %v5693_v25  ;;  %6416 = vmatprep.subr.mxu1 %v5685_v26 }
 0x291   :  { %v346_v52 = vpop.xlane.xlu0 %345 }
 0x292   :  { %v362_v53 = vmul.f32 0.03125, %v346_v52  ;;  %v5673_v52 = vld [vmem:[%s9114_s1 + $0x2] ss:$0 sm:$0xff] }
 0x294   :  { %v7487_v54 = vsub.f32 %v7462_v27, %v362_v53 }
 0x295   :  { %v349_v55 = vpop.xlane.xlu1 %348 }
 0x296   :  { %v363_v56 = vmul.f32 0.03125, %v349_v55  ;;  %v352_v57 = vpop.xlane.xlu0 %351  ;;  %v374_v58 = vmul.f32 %v7487_v54, %v7487_v54  ;;  %v5674_v55 = vld [vmem:[%s9114_s1 + $0x3] ss:$0 sm:$0xff] }
 0x297   :  { %v364_v59 = vmul.f32 0.03125, %v352_v57 }
 0x298   :  { %v7492_v60 = vsub.f32 %v7466_v35, %v363_v56  ;;  %v380_v61 = vsel %vm157_vm1, %v374_v58, 0.0 }
 0x299   :  { %v7496_v62 = vsub.f32 %v7468_v37, %v364_v59  ;;  %v355_v63 = vpop.xlane.xlu1 %354  ;;  %381 = vadd.xlane.f32.xlu0 %v380_v61 }
 0x29a   :  { %v365_v0 = vmul.f32 0.03125, %v355_v63  ;;  %v358_v1 = vpop.xlane.xlu0 %357  ;;  %v375_v2 = vmul.f32 %v7492_v60, %v7492_v60 }
 0x29b   :  { %v366_v3 = vmul.f32 0.03125, %v358_v1  ;;  %v376_v4 = vmul.f32 %v7496_v62, %v7496_v62 }
 0x29c   :  { %v7503_v5 = vsub.f32 %v7474_v44, %v365_v0  ;;  %v383_v6 = vsel %vm157_vm1, %v375_v2, 0.0 }
 0x29d   :  { %v7507_v7 = vsub.f32 %v7476_v46, %v366_v3  ;;  %384 = vadd.xlane.f32.xlu1 %v383_v6  ;;  %v361_v8 = vpop.xlane.xlu1 %360  ;;  %v386_v9 = vsel %vm157_vm1, %v376_v4, 0.0 }
 0x29e   :  { %v367_v10 = vmul.f32 0.03125, %v361_v8  ;;  %387 = vadd.xlane.f32.xlu0 %v386_v9  ;;  %v377_v11 = vmul.f32 %v7503_v5, %v7503_v5  ;;  %v5684_v8 = vld [vmem:[%s9116_s2 + $0x30] sm:$0xff] }
 0x29f   :  { %v378_v12 = vmul.f32 %v7507_v7, %v7507_v7 }
 0x2a0   :  { %v7515_v13 = vsub.f32 %v7482_v50, %v367_v10  ;;  %v389_v14 = vsel %vm157_vm1, %v377_v11, 0.0 }
 0x2a1   :  { %390 = vadd.xlane.f32.xlu1 %v389_v14  ;;  %v392_v15 = vsel %vm157_vm1, %v378_v12, 0.0 }
 0x2a2   :  { %393 = vadd.xlane.f32.xlu0 %v392_v15  ;;  %v379_v16 = vmul.f32 %v7515_v13, %v7515_v13 }
 0x2a4   :  { %v395_v17 = vsel %vm157_vm1, %v379_v16, 0.0 }
 0x2a5   :  { %396 = vadd.xlane.f32.xlu1 %v395_v17 }
 0x322   :  { %v382_v28 = vpop.xlane.xlu0 %381 }
 0x323   :  { %v398_v29 = vmul.f32 0.03125, %v382_v28 }
 0x325   :  { %v404_v30 = vadd.f32 1e-05, %v398_v29 }
 0x326   :  { %v385_v31 = vpop.xlane.xlu1 %384 }
 0x327   :  { %7057 = vrsqrt.f32 %v404_v30  ;;  %v399_v32 = vmul.f32 0.03125, %v385_v31  ;;  %v388_v33 = vpop.xlane.xlu0 %387 }
 0x328   :  { %v400_v34 = vmul.f32 0.03125, %v388_v33 }
 0x329   :  { %v405_v36 = vadd.f32 1e-05, %v399_v32 }
 0x32a   :  { %v406_v38 = vadd.f32 1e-05, %v400_v34  ;;  %v391_v39 = vpop.xlane.xlu1 %390 }
 0x32b   :  { %7059 = vrsqrt.f32 %v405_v36  ;;  %v401_v40 = vmul.f32 0.03125, %v391_v39  ;;  %v394_v41 = vpop.xlane.xlu0 %393 }
 0x32c   :  { %7061 = vrsqrt.f32 %v406_v38  ;;  %v402_v42 = vmul.f32 0.03125, %v394_v41 }
 0x32d   :  { %v407_v43 = vadd.f32 1e-05, %v401_v40 }
 0x32e   :  { %v408_v45 = vadd.f32 1e-05, %v402_v42  ;;  %v397_v47 = vpop.xlane.xlu1 %396 }
 0x32f   :  { %7063 = vrsqrt.f32 %v407_v43  ;;  %v403_v48 = vmul.f32 0.03125, %v397_v47 }
 0x330   :  { %7065 = vrsqrt.f32 %v408_v45  ;;  %v5686_v45 = vld [vmem:[%s9114_s1 + $0x5] ss:$0 sm:$0xff] }
 0x331   :  { %v409_v49 = vadd.f32 1e-05, %v403_v48 }
 0x333   :  { %7067 = vrsqrt.f32 %v409_v49 }
 0x334   :  { %v7058_v51 = vpop.eup %7057 }
 0x335   :  { %v416_v53 = vmul.f32 %v7058_v51, %v7487_v54 }
 0x337   :  { %v426_v56 = vmul.f32 %v5673_v52, %v416_v53 }
 0x338   :  { %v7060_v57 = vpop.eup %7059 }
 0x339   :  { %v7062_v58 = vpop.eup %7061  ;;  %v417_v59 = vmul.f32 %v7060_v57, %v7492_v60  ;;  %v436_v61 = vadd.f32 %v5674_v55, %v426_v56 }
 0x33a   :  { %v418_v63 = vmul.f32 %v7062_v58, %v7496_v62 }
 0x33b   :  { %6407 = vmatprep.mubr.msk.f32.mxu1 %vm157_vm1, %v436_v61  ;;  %6441 = vmatprep.mubr.msk.f32.mxu0 %vm157_vm1, %v436_v61  ;;  %v427_v0 = vmul.f32 %v5673_v52, %v417_v59 }
 0x33c   :  { %v7064_v1 = vpop.eup %7063  ;;  %v428_v2 = vmul.f32 %v5673_v52, %v418_v63 }
 0x33d   :  { %v7066_v54 = vpop.eup %7065  ;;  %v437_v3 = vadd.f32 %v5674_v55, %v427_v0  ;;  %v419_v4 = vmul.f32 %v7064_v1, %v7503_v5  ;;  %v264_v0 = vlaneseq }
 0x33e   :  { %v438_v6 = vadd.f32 %v5674_v55, %v428_v2  ;;  %v420_v60 = vmul.f32 %v7066_v54, %v7507_v7  ;;  %v5683_v7 = vld [vmem:[%s9116_s2 + $0x28] sm:$0xff]  ;;  %v7345_v2 = vmov -1e+30  }
 0x33f   :  { %6408 = vmatmul.mubr.msk.f32.vlgmr.msra.gmra.mxu1 %vm157_vm1, %v437_v3  ;;  %6442 = vmatmul.mubr.msk.f32.vlgmr.msra.gmra.mxu0 %vm157_vm1, %v437_v3  ;;  %v429_v62 = vmul.f32 %v5673_v52, %v419_v4  ;;  %v265_v1 = vand.u32 127, %v264_v0 }
 0x340   :  { %v7068_v9 = vpop.eup %7067  ;;  %6410 = vmatprep.mubr.msk.f32.mxu1 %vm157_vm1, %v438_v6  ;;  %6417 = vmatpush3.msra.mxu1 %v5685_v26  ;;  %v430_v10 = vmul.f32 %v5673_v52, %v420_v60  ;;  %v5697_v26 = vld [vmem:[%s9114_s1 + $0x6] ss:$0 sm:$0xff] }
 0x341   :  { %6444 = vmatprep.mubr.msk.f32.mxu0 %vm157_vm1, %v438_v6  ;;  %6418 = vmatprep.subr.mxu1 %v5684_v8  ;;  %v439_v5 = vadd.f32 %v5674_v55, %v429_v62  ;;  %v421_v11 = vmul.f32 %v7068_v9, %v7515_v13  ;;  %v5682_v13 = vld [vmem:[%s9116_s2 + $0x20] sm:$0xff]  ;;  %vm291_vm3 = vcmp.lt.s32.totalorder %v265_v1, 17  ;;  %vm316_vm4 = vcmp.ge.s32.totalorder %v265_v1, 24 }
 0x342   :  { %6419 = vmatpush3.msra.mxu1 %v5684_v8  ;;  %v440_v12 = vadd.f32 %v5674_v55, %v430_v10  ;;  %vm323_vm5 = vcmp.lt.s32.totalorder %v265_v1, 41  ;;  %v7689_v54 = vsel %vm291_vm3, 0.0, %v7345_v2 }
 0x343   :  { %6411 = vmatmul.mubr.msk.f32.gmra.mxu1 %vm157_vm1, %v439_v5  ;;  %6445 = vmatmul.mubr.msk.f32.gmra.mxu0 %vm157_vm1, %v439_v5  ;;  %v431_v14 = vmul.f32 %v5673_v52, %v421_v11  ;;  %vm327_vm6 = vmand %vm316_vm4, %vm323_vm5 }
 0x344   :  { %6413 = vmatprep.mubr.msk.f32.mxu1 %vm157_vm1, %v440_v12  ;;  %6447 = vmatprep.mubr.msk.f32.mxu0 %vm157_vm1, %v440_v12  ;;  %v7692_v8 = vsel %vm327_vm6, 0.0, %v7345_v2 }
 0x345   :  { %6420 = vmatprep.subr.mxu1 %v5683_v7  ;;  %v441_v15 = vadd.f32 %v5674_v55, %v431_v14 }
 0x346   :  { %6421 = vmatpush3.msra.mxu1 %v5683_v7 }
 0x347   :  { %6414 = vmatmul.mubr.msk.f32.gmra.mxu1 %vm157_vm1, %v441_v15  ;;  %6448 = vmatmul.mubr.msk.f32.gmra.mxu0 %vm157_vm1, %v441_v15 }
 0x348   :  { %6422 = vmatprep.subr.mxu1 %v5682_v13  ;;  %6424 = vmatprep.mubr.msk.f32.mxu1 %vm157_vm1, %v436_v61 }
 0x349   :  { %6423 = vmatpush3.msra.mxu1 %v5682_v13 }
 0x34b   :  { %6425 = vmatmul.mubr.msk.f32.vlgmr.msra.gmra.mxu1 %vm157_vm1, %v437_v3 }
 0x34c   :  { %6427 = vmatprep.mubr.msk.f32.mxu1 %vm157_vm1, %v438_v6 }
 0x34f   :  { %6428 = vmatmul.mubr.msk.f32.gmra.mxu1 %vm157_vm1, %v439_v5 }
 0x350   :  { %6430 = vmatprep.mubr.msk.f32.mxu1 %vm157_vm1, %v440_v12 }
 0x353   :  { %6431 = vmatmul.mubr.msk.f32.gmra.mxu1 %vm157_vm1, %v441_v15 }
 0x3ff   :  { %v6409_v16 = vpop.f32.mrf.mxu1  ;;  %v6443_v17 = vpop.f32.mrf.mxu0 }
 0x400   :  { %v7615_v41 = vadd.f32 %v6443_v17, %v5697_v26  ;;  %v7665_v57 = vadd.f32 %v6409_v16, %v7591_v18 }
 0x401   :  { %v535_v19 = vpop.f32.mrf.mxu1  ;;  %v745_v20 = vpop.f32.mrf.mxu0 }
 0x402   :  { %v7594_v21 = vadd.f32 %v7591_v18, %v535_v19  ;;  %v7619_v43 = vadd.f32 %v5697_v26, %v745_v20 }
 0x403   :  { %v6412_v22 = vpop.f32.mrf.mxu1  ;;  %v6446_v23 = vpop.f32.mrf.mxu0 }
 0x404   :  { %6462 = vmatprep.mubr.msk.f32.mxu1 %vm779_vm2, %v7594_v21  ;;  %v7607_v36 = vadd.f32 %v6446_v23, %v5697_v26  ;;  %v7675_v59 = vadd.f32 %v6412_v22, %v7591_v18 }
 0x405   :  { %v545_v24 = vpop.f32.mrf.mxu1  ;;  %v755_v25 = vpop.f32.mrf.mxu0 }
 0x406   :  { %v7611_v39 = vadd.f32 %v5697_v26, %v755_v25  ;;  %v7668_v58 = vadd.f32 %v7591_v18, %v545_v24 }
 0x407   :  { %v6415_v28 = vpop.f32.mrf.mxu1  ;;  %v6449_v29 = vpop.f32.mrf.mxu0 }
 0x408   :  { %v7601_v30 = vadd.f32 %v6449_v29, %v5697_v26  ;;  %v7685_v63 = vadd.f32 %v6415_v28, %v7591_v18 }
 0x409   :  { %v555_v31 = vpop.f32.mrf.mxu1  ;;  %v765_v32 = vpop.f32.mrf.mxu0 }
 0x40a   :  { %v7603_v33 = vadd.f32 %v5697_v26, %v765_v32  ;;  %6471 = vmatprep.subr.mxu0 %v7601_v30  ;;  %v7678_v61 = vadd.f32 %v7591_v18, %v555_v31 }
 0x40b   :  { %v6426_v34 = vpop.f32.mrf.mxu1  ;;  %6472 = vmatpush3.msra.mxu0 %v7601_v30 }
 0x40c   :  { %6473 = vmatprep.subr.mxu0 %v7603_v33  ;;  %v7650_v55 = vadd.f32 %v6426_v34, %v5686_v45 }
 0x40d   :  { %v640_v38 = vpop.f32.mrf.mxu1  ;;  %6474 = vmatpush3.msra.mxu0 %v7603_v33 }
 0x40e   :  { %6475 = vmatprep.subr.mxu0 %v7607_v36  ;;  %v7656_v56 = vadd.f32 %v5686_v45, %v640_v38 }
 0x40f   :  { %v6429_v40 = vpop.f32.mrf.mxu1  ;;  %6476 = vmatpush3.msra.mxu0 %v7607_v36 }
 0x410   :  { %6477 = vmatprep.subr.mxu0 %v7611_v39  ;;  %v7638_v52 = vadd.f32 %v6429_v40, %v5686_v45 }
 0x411   :  { %v650_v42 = vpop.f32.mrf.mxu1  ;;  %6478 = vmatpush3.msra.mxu0 %v7611_v39 }
 0x412   :  { %6479 = vmatprep.subr.mxu0 %v7615_v41  ;;  %v7644_v53 = vadd.f32 %v5686_v45, %v650_v42 }
 0x413   :  { %v6432_v47 = vpop.f32.mrf.mxu1  ;;  %6480 = vmatpush3.msra.mxu0 %v7615_v41 }
 0x414   :  { %v7626_v48 = vadd.f32 %v6432_v47, %v5686_v45  ;;  %6481 = vmatprep.subr.mxu0 %v7619_v43 }
 0x415   :  { %v660_v49 = vpop.f32.mrf.mxu1  ;;  %6482 = vmatpush3.msra.mxu0 %v7619_v43 }
 0x416   :  { %v7630_v51 = vadd.f32 %v5686_v45, %v660_v49  ;;  %6450 = vmatprep.subr.msk.mxu1 %vm779_vm2, %v7626_v48 }
 0x417   :  { %6451 = vmatpush3.xpose.msk.msra.mxu1 %vm779_vm2, %v7626_v48 }
 0x418   :  { %6452 = vmatprep.subr.msk.mxu1 %vm779_vm2, %v7630_v51 }
 0x41b   :  { %6453 = vmatpush3.xpose.msk.msra.mxu1 %vm779_vm2, %v7630_v51 }
 0x41c   :  { %6454 = vmatprep.subr.msk.mxu1 %vm779_vm2, %v7638_v52 }
 0x41f   :  { %6455 = vmatpush3.xpose.msk.msra.mxu1 %vm779_vm2, %v7638_v52 }
 0x420   :  { %6456 = vmatprep.subr.msk.mxu1 %vm779_vm2, %v7644_v53 }
 0x423   :  { %6457 = vmatpush3.xpose.msk.msra.mxu1 %vm779_vm2, %v7644_v53 }
 0x424   :  { %6458 = vmatprep.subr.msk.mxu1 %vm779_vm2, %v7650_v55 }
 0x427   :  { %6459 = vmatpush3.xpose.msk.msra.mxu1 %vm779_vm2, %v7650_v55 }
 0x428   :  { %6460 = vmatprep.subr.msk.mxu1 %vm779_vm2, %v7656_v56 }
 0x42b   :  { %6461 = vmatpush3.xpose.msk.msra.mxu1 %vm779_vm2, %v7656_v56 }
 0x42e   :  { %6463 = vmatmul.mubr.msk.f32.vlgmr.msra.gmra.mxu1 %vm779_vm2, %v7665_v57 }
 0x42f   :  { %6465 = vmatprep.mubr.msk.f32.mxu1 %vm779_vm2, %v7668_v58 }
 0x432   :  { %6466 = vmatmul.mubr.msk.f32.gmra.mxu1 %vm779_vm2, %v7675_v59 }
 0x433   :  { %6468 = vmatprep.mubr.msk.f32.mxu1 %vm779_vm2, %v7678_v61 }
 0x436   :  { %6469 = vmatmul.mubr.msk.f32.gmra.mxu1 %vm779_vm2, %v7685_v63 }
 0x4ee   :  { %v6464_v3 = vpop.f32.mrf.mxu1 }
 0x4ef   :  { %v888_v4 = vadd.f32 %v6464_v3, %v7689_v54 }
 0x4f0   :  { %v882_v6 = vpop.f32.mrf.mxu1 }
 0x4f1   :  { %v883_v60 = vadd.f32 %v882_v6, %v7689_v54  ;;  %v914_v62 = vsel %vm41_vm0, %v888_v4, -inf }
 0x4f2   :  { %915 = vmax.xlane.f32.xlu1 %v914_v62  ;;  %v6467_v9 = vpop.f32.mrf.mxu1 }
 0x4f3   :  { %v898_v10 = vadd.f32 %v6467_v9, %v7692_v8  ;;  %v911_v5 = vsel %vm41_vm0, %v883_v60, -inf }
 0x4f4   :  { %v892_v11 = vpop.f32.mrf.mxu1  ;;  %912 = vmax.xlane.f32.xlu0 %v911_v5 }
 0x4f5   :  { %v893_v12 = vadd.f32 %v892_v11, %v7689_v54  ;;  %v920_v7 = vsel %vm41_vm0, %v898_v10, -inf }
 0x4f6   :  { %921 = vmax.xlane.f32.xlu1 %v920_v7  ;;  %v6470_v14 = vpop.f32.mrf.mxu1 }
 0x4f7   :  { %v908_v15 = vadd.f32 %v6470_v14, %v7692_v8  ;;  %v917_v13 = vsel %vm41_vm0, %v893_v12, -inf }
 0x4f8   :  { %918 = vmax.xlane.f32.xlu0 %v917_v13  ;;  %v902_v16 = vpop.f32.mrf.mxu1 }
 0x4f9   :  { %v903_v17 = vadd.f32 %v902_v16, %v7692_v8  ;;  %v926_v18 = vsel %vm41_vm0, %v908_v15, -inf }
 0x4fa   :  { %927 = vmax.xlane.f32.xlu1 %v926_v18 }
 0x4fb   :  { %v923_v19 = vsel %vm41_vm0, %v903_v17, -inf }
 0x4fc   :  { %924 = vmax.xlane.f32.xlu0 %v923_v19 }
 0x57b   :  { %v916_v20 = vpop.xlane.xlu1 %915 }
 0x57c   :  { %v930_v22 = vsub.f32 %v888_v4, %v916_v20 }
 0x57d   :  { %v913_v23 = vpop.xlane.xlu0 %912 }
 0x57e   :  { %v937_v24 = vmul.f32 1.442695, %v930_v22  ;;  %v929_v25 = vsub.f32 %v883_v60, %v913_v23 }
 0x57f   :  { %v922_v40 = vpop.xlane.xlu1 %921 }
 0x580   :  { %7069 = vpow2.f32 %v937_v24  ;;  %v935_v26 = vmul.f32 1.442695, %v929_v25  ;;  %v932_v49 = vsub.f32 %v898_v10, %v922_v40 }
 0x581   :  { %v919_v34 = vpop.xlane.xlu0 %918 }
 0x582   :  { %7071 = vpow2.f32 %v935_v26  ;;  %v931_v38 = vsub.f32 %v893_v12, %v919_v34  ;;  %v941_v2 = vmul.f32 1.442695, %v932_v49 }
 0x583   :  { %v928_v0 = vpop.xlane.xlu1 %927 }
 0x584   :  { %v939_v45 = vmul.f32 1.442695, %v931_v38  ;;  %v934_v3 = vsub.f32 %v908_v15, %v928_v0 }
 0x585   :  { %v925_v42 = vpop.xlane.xlu0 %924 }
 0x586   :  { %v933_v47 = vsub.f32 %v903_v17, %v925_v42  ;;  %7073 = vpow2.f32 %v939_v45  ;;  %v945_v4 = vmul.f32 1.442695, %v934_v3 }
 0x588   :  { %v943_v1 = vmul.f32 1.442695, %v933_v47 }
 0x58a   :  { %7075 = vpow2.f32 %v943_v1 }
 0x58b   :  { %7077 = vpow2.f32 %v941_v2  ;;  %v5704_v2 = vld [vmem:[%s9116_s2 + $0x60] sm:$0xff] }
 0x58c   :  { %7079 = vpow2.f32 %v945_v4 }
 0x58d   :  { %v7070_v28 = vpop.eup %7069 }
 0x58e   :  { %v950_v29 = vsel %vm41_vm0, %v7070_v28, 0.0 }
 0x58f   :  { %v7072_v31 = vpop.eup %7071  ;;  %951 = vadd.xlane.f32.xlu1 %v950_v29 }
 0x590   :  { %v947_v32 = vsel %vm41_vm0, %v7072_v31, 0.0 }
 0x591   :  { %948 = vadd.xlane.f32.xlu0 %v947_v32 }
 0x593   :  { %v7074_v6 = vpop.eup %7073 }
 0x594   :  { %v953_v60 = vsel %vm41_vm0, %v7074_v6, 0.0 }
 0x597   :  { %v7076_v62 = vpop.eup %7075 }
 0x598   :  { %v7078_v9 = vpop.eup %7077  ;;  %v959_v5 = vsel %vm41_vm0, %v7076_v62, 0.0 }
 0x599   :  { %v956_v10 = vsel %vm41_vm0, %v7078_v9, 0.0  ;;  %v7080_v11 = vpop.eup %7079 }
 0x59a   :  { %v962_v12 = vsel %vm41_vm0, %v7080_v11, 0.0 }
 0x5a0   :  { %1110 = vrot.lane.b32.xlu1 %v7630_v51, %s7346_s21 }
 0x5a4   :  { %1108 = vrot.lane.b32.xlu1 %v7638_v52, %s7346_s21 }
 0x5a7   :  { %1112 = vrot.lane.b32.xlu0 %v7626_v48, %s7346_s21 }
 0x5a8   :  { %1106 = vrot.lane.b32.xlu1 %v7644_v53, %s7346_s21 }
 0x5c6   :  { %954 = vadd.xlane.f32.xlu0 %v953_v60 }
 0x5ca   :  { %960 = vadd.xlane.f32.xlu0 %v959_v5 }
 0x5cc   :  { %957 = vadd.xlane.f32.xlu1 %v956_v10 }
 0x5d0   :  { %963 = vadd.xlane.f32.xlu1 %v962_v12 }
 0x5e0   :  { %1104 = vrot.lane.b32.xlu0 %v7650_v55, %s7346_s21 }
 0x5e1   :  { %1102 = vrot.lane.b32.xlu1 %v7656_v56, %s7346_s21 }
 0x5e4   :  { %1090 = vrot.lane.b32.xlu0 %v7594_v21, %s7346_s21 }
 0x5e5   :  { %1092 = vrot.lane.b32.xlu1 %v7665_v57, %s7346_s21 }
 0x5e8   :  { %1094 = vrot.lane.b32.xlu0 %v7668_v58, %s7346_s21 }
 0x5e9   :  { %1096 = vrot.lane.b32.xlu1 %v7675_v59, %s7346_s21 }
 0x5ec   :  { %1098 = vrot.lane.b32.xlu0 %v7678_v61, %s7346_s21 }
 0x5ed   :  { %1100 = vrot.lane.b32.xlu1 %v7685_v63, %s7346_s21 }
 0x618   :  { %v952_v7 = vpop.xlane.xlu1 %951 }
 0x619   :  { %7081 = vrcp.f32 %v952_v7 }
 0x61a   :  { %v949_v14 = vpop.xlane.xlu0 %948 }
 0x61b   :  { %7083 = vrcp.f32 %v949_v14 }
 0x61c   :  { %v1111_v17 = vpop.permute.xlu1 %1110 }
 0x61e   :  { %v1113_v15 = vpop.permute.xlu0 %1112 }
 0x61f   :  { %6492 = vmatprep.subr.msk.mxu0 %vm779_vm2, %v1113_v15 }
 0x620   :  { %v1109_v20 = vpop.permute.xlu1 %1108 }
 0x624   :  { %v1107_v22 = vpop.permute.xlu1 %1106 }
 0x626   :  { %v7082_v13 = vpop.eup %7081 }
 0x627   :  { %v972_v19 = vmul.f32 %v7082_v13, %v7070_v28 }
 0x628   :  { %v7084_v16 = vpop.eup %7083 }
 0x629   :  { %v971_v18 = vmul.f32 %v7084_v16, %v7072_v31 }
 0x62b   :  { %6483 = vmatprep.mubr.msk.f32.mxu0 %vm41_vm0, %v971_v18 }
 0x62c   :  { %6484 = vmatmul.mubr.msk.f32.vlgmr.msra.gmra.mxu0 %vm41_vm0, %v972_v19 }
 0x62d   :  { %6493 = vmatpush3.xpose.msk.msra.mxu0 %vm779_vm2, %v1113_v15 }
 0x62e   :  { %6494 = vmatprep.subr.msk.mxu0 %vm779_vm2, %v1111_v17 }
 0x631   :  { %6495 = vmatpush3.xpose.msk.msra.mxu0 %vm779_vm2, %v1111_v17 }
 0x632   :  { %6496 = vmatprep.subr.msk.mxu0 %vm779_vm2, %v1109_v20 }
 0x635   :  { %6497 = vmatpush3.xpose.msk.msra.mxu0 %vm779_vm2, %v1109_v20 }
 0x636   :  { %6498 = vmatprep.subr.msk.mxu0 %vm779_vm2, %v1107_v22 }
 0x639   :  { %6499 = vmatpush3.xpose.msk.msra.mxu0 %vm779_vm2, %v1107_v22 }
 0x64f   :  { %v955_v23 = vpop.xlane.xlu0 %954 }
 0x650   :  { %7085 = vrcp.f32 %v955_v23 }
 0x653   :  { %v961_v24 = vpop.xlane.xlu0 %960 }
 0x654   :  { %7087 = vrcp.f32 %v961_v24 }
 0x655   :  { %v958_v25 = vpop.xlane.xlu1 %957 }
 0x656   :  { %7089 = vrcp.f32 %v958_v25 }
 0x657   :  { %v1105_v26 = vpop.permute.xlu0 %1104 }
 0x658   :  { %6500 = vmatprep.subr.msk.mxu0 %vm779_vm2, %v1105_v26 }
 0x659   :  { %v964_v28 = vpop.xlane.xlu1 %963  ;;  %6501 = vmatpush3.xpose.msk.msra.mxu0 %vm779_vm2, %v1105_v26 }
 0x65a   :  { %7091 = vrcp.f32 %v964_v28 }
 0x65b   :  { %v1091_v45 = vpop.permute.xlu0 %1090 }
 0x65d   :  { %v7086_v29 = vpop.eup %7085  ;;  %v1103_v31 = vpop.permute.xlu1 %1102 }
 0x65e   :  { %6502 = vmatprep.subr.msk.mxu0 %vm779_vm2, %v1103_v31  ;;  %v973_v32 = vmul.f32 %v7086_v29, %v7074_v6 }
 0x65f   :  { %6503 = vmatpush3.xpose.msk.msra.mxu0 %vm779_vm2, %v1103_v31  ;;  %v1095_v1 = vpop.permute.xlu0 %1094 }
 0x660   :  { %6486 = vmatprep.mubr.msk.f32.mxu0 %vm41_vm0, %v973_v32  ;;  %6545 = vmatprep.subr.mxu0 %v5704_v2 }
 0x661   :  { %v7088_v34 = vpop.eup %7087  ;;  %v1093_v0 = vpop.permute.xlu1 %1092 }
 0x662   :  { %v975_v42 = vmul.f32 %v7088_v34, %v7076_v62 }
 0x663   :  { %v7090_v38 = vpop.eup %7089  ;;  %v1099_v4 = vpop.permute.xlu0 %1098 }
 0x664   :  { %v974_v40 = vmul.f32 %v7090_v38, %v7078_v9 }
 0x665   :  { %v1097_v3 = vpop.permute.xlu1 %1096 }
 0x666   :  { %6487 = vmatmul.mubr.msk.f32.gmra.mxu0 %vm41_vm0, %v974_v40 }
 0x667   :  { %v7092_v47 = vpop.eup %7091  ;;  %6489 = vmatprep.mubr.msk.f32.mxu0 %vm41_vm0, %v975_v42 }
 0x668   :  { %v976_v49 = vmul.f32 %v7092_v47, %v7080_v11 }
 0x669   :  { %v1101_v6 = vpop.permute.xlu1 %1100 }
 0x66a   :  { %6490 = vmatmul.mubr.msk.f32.gmra.mxu0 %vm41_vm0, %v976_v49 }
 0x66b   :  { %6504 = vmatprep.mubr.msk.f32.mxu0 %vm779_vm2, %v1091_v45 }
 0x66e   :  { %6505 = vmatmul.mubr.msk.f32.vlgmr.msra.gmra.mxu0 %vm779_vm2, %v1093_v0 }
 0x66f   :  { %6507 = vmatprep.mubr.msk.f32.mxu0 %vm779_vm2, %v1095_v1  ;;  %6546 = vmatpush3.msra.mxu0 %v5704_v2 }
 0x672   :  { %6508 = vmatmul.mubr.msk.f32.gmra.mxu0 %vm779_vm2, %v1097_v3 }
 0x673   :  { %6510 = vmatprep.mubr.msk.f32.mxu0 %vm779_vm2, %v1099_v4 }
 0x676   :  { %6511 = vmatmul.mubr.msk.f32.gmra.mxu0 %vm779_vm2, %v1101_v6 }
 0x6ec   :  { %v6485_v60 = vpop.f32.mrf.mxu0 }
 0x6ee   :  { %v1061_v62 = vpop.f32.mrf.mxu0 }
 0x6ef   :  { %6547 = vmatprep.mubr.msk.f32.mxu0 %vm779_vm2, %v1061_v62 }
 0x6f0   :  { %6548 = vmatmul.mubr.msk.f32.vlgmr.msra.gmra.mxu0 %vm779_vm2, %v6485_v60 }
 0x726   :  { %v6488_v9 = vpop.f32.mrf.mxu0 }
 0x728   :  { %v1071_v5 = vpop.f32.mrf.mxu0 }
 0x729   :  { %6550 = vmatprep.mubr.msk.f32.mxu0 %vm779_vm2, %v1071_v5 }
 0x72a   :  { %v6491_v10 = vpop.f32.mrf.mxu0  ;;  %6551 = vmatmul.mubr.msk.f32.gmra.mxu0 %vm779_vm2, %v6488_v9 }
 0x72c   :  { %v1081_v11 = vpop.f32.mrf.mxu0 }
 0x72d   :  { %6553 = vmatprep.mubr.msk.f32.mxu0 %vm779_vm2, %v1081_v11 }
 0x72e   :  { %v6506_v12 = vpop.f32.mrf.mxu0  ;;  %6554 = vmatmul.mubr.msk.f32.gmra.mxu0 %vm779_vm2, %v6491_v10 }
 0x72f   :  { %v1210_v7 = vadd.f32 %v6506_v12, %v7689_v54 }
 0x730   :  { %v1204_v14 = vpop.f32.mrf.mxu0 }
 0x731   :  { %v1205_v15 = vadd.f32 %v1204_v14, %v7689_v54  ;;  %v1236_v13 = vsel %vm41_vm0, %v1210_v7, -inf }
 0x732   :  { %1237 = vmax.xlane.f32.xlu1 %v1236_v13  ;;  %v6509_v16 = vpop.f32.mrf.mxu0 }
 0x733   :  { %v1220_v17 = vadd.f32 %v6509_v16, %v7692_v8  ;;  %v1233_v18 = vsel %vm41_vm0, %v1205_v15, -inf }
 0x734   :  { %1234 = vmax.xlane.f32.xlu0 %v1233_v18  ;;  %v1214_v19 = vpop.f32.mrf.mxu0 }
 0x735   :  { %v1215_v22 = vadd.f32 %v1214_v19, %v7689_v54  ;;  %v1242_v24 = vsel %vm41_vm0, %v1220_v17, -inf }
 0x736   :  { %v6512_v20 = vpop.f32.mrf.mxu0 }
 0x737   :  { %v1230_v23 = vadd.f32 %v6512_v20, %v7692_v8  ;;  %v1239_v29 = vsel %vm41_vm0, %v1215_v22, -inf }
 0x738   :  { %1243 = vmax.xlane.f32.xlu0 %v1242_v24  ;;  %v1224_v25 = vpop.f32.mrf.mxu0 }
 0x739   :  { %v1248_v26 = vsel %vm41_vm0, %v1230_v23, -inf  ;;  %v1225_v28 = vadd.f32 %v1224_v25, %v7692_v8 }
 0x73a   :  { %1249 = vmax.xlane.f32.xlu1 %v1248_v26 }
 0x73b   :  { %v1245_v31 = vsel %vm41_vm0, %v1225_v28, -inf }
 0x73c   :  { %1240 = vmax.xlane.f32.xlu0 %v1239_v29 }
 0x740   :  { %1246 = vmax.xlane.f32.xlu0 %v1245_v31 }
 0x756   :  { %1315 = vrot.lane.b32.xlu0 %v7601_v30, %s7346_s21 }
 0x7bb   :  { %v1238_v32 = vpop.xlane.xlu1 %1237 }
 0x7bc   :  { %v1252_v34 = vsub.f32 %v1210_v7, %v1238_v32 }
 0x7bd   :  { %v1235_v38 = vpop.xlane.xlu0 %1234 }
 0x7be   :  { %v1259_v40 = vmul.f32 1.442695, %v1252_v34  ;;  %v1251_v42 = vsub.f32 %v1205_v15, %v1235_v38 }
 0x7c0   :  { %7093 = vpow2.f32 %v1259_v40  ;;  %v1257_v45 = vmul.f32 1.442695, %v1251_v42 }
 0x7c1   :  { %v1244_v47 = vpop.xlane.xlu0 %1243 }
 0x7c2   :  { %7095 = vpow2.f32 %v1257_v45  ;;  %v1254_v10 = vsub.f32 %v1220_v17, %v1244_v47 }
 0x7c3   :  { %v1250_v7 = vpop.xlane.xlu1 %1249 }
 0x7c4   :  { %v1263_v11 = vmul.f32 1.442695, %v1254_v10  ;;  %v1256_v14 = vsub.f32 %v1230_v23, %v1250_v7  ;;  %v5705_v23 = vld [vmem:[%s9116_s2 + $0x68] sm:$0xff] }
 0x7c5   :  { %v1241_v49 = vpop.xlane.xlu0 %1240 }
 0x7c6   :  { %v1253_v0 = vsub.f32 %v1215_v22, %v1241_v49  ;;  %v1267_v13 = vmul.f32 1.442695, %v1256_v14 }
 0x7c8   :  { %v1261_v1 = vmul.f32 1.442695, %v1253_v0 }
 0x7c9   :  { %v1247_v2 = vpop.xlane.xlu0 %1246 }
 0x7ca   :  { %7097 = vpow2.f32 %v1261_v1  ;;  %v1255_v12 = vsub.f32 %v1225_v28, %v1247_v2 }
 0x7cb   :  { %7099 = vpow2.f32 %v1263_v11 }
 0x7cc   :  { %v1265_v15 = vmul.f32 1.442695, %v1255_v12 }
 0x7cd   :  { %v7782_v3 = vpop.eup %7093  ;;  %v1316_v4 = vpop.permute.xlu0 %1315 }
 0x7ce   :  { %6513 = vmatprep.subr.mxu1 %v1316_v4  ;;  %v1272_v6 = vsel %vm41_vm0, %v7782_v3, 0.0  ;;  %7101 = vpow2.f32 %v1265_v15 }
 0x7cf   :  { %v7786_v60 = vpop.eup %7095  ;;  %1273 = vadd.xlane.f32.xlu1 %v1272_v6  ;;  %6514 = vmatpush3.msra.mxu1 %v1316_v4  ;;  %7103 = vpow2.f32 %v1267_v13 }
 0x7d0   :  { %v1269_v62 = vsel %vm41_vm0, %v7786_v60, 0.0 }
 0x7d1   :  { %1270 = vadd.xlane.f32.xlu0 %v1269_v62 }
 0x7d7   :  { %v7790_v9 = vpop.eup %7097 }
 0x7d8   :  { %v1275_v5 = vsel %vm41_vm0, %v7790_v9, 0.0  ;;  %v7806_v16 = vpop.eup %7099 }
 0x7d9   :  { %1276 = vadd.xlane.f32.xlu0 %v1275_v5  ;;  %v1278_v17 = vsel %vm41_vm0, %v7806_v16, 0.0 }
 0x7db   :  { %v7812_v18 = vpop.eup %7101 }
 0x7dc   :  { %v1281_v19 = vsel %vm41_vm0, %v7812_v18, 0.0  ;;  %v7818_v20 = vpop.eup %7103 }
 0x7dd   :  { %v1284_v22 = vsel %vm41_vm0, %v7818_v20, 0.0 }
 0x7e0   :  { %1313 = vrot.lane.b32.xlu1 %v7603_v33, %s7346_s21 }
 0x7ef   :  { %1311 = vrot.lane.b32.xlu0 %v7607_v36, %s7346_s21 }
 0x7f3   :  { %1309 = vrot.lane.b32.xlu0 %v7611_v39, %s7346_s21 }
 0x7f7   :  { %1307 = vrot.lane.b32.xlu0 %v7615_v41, %s7346_s21 }
 0x7fb   :  { %1305 = vrot.lane.b32.xlu0 %v7619_v43, %s7346_s21 }
 0x7ff   :  { %1684 = vrot.lane.b32.xlu0 %v7626_v48, %s7347_s24 }
 0x803   :  { %1682 = vrot.lane.b32.xlu0 %v7630_v51, %s7347_s24 }
 0x804   :  { %1279 = vadd.xlane.f32.xlu1 %v1278_v17 }
 0x807   :  { %1680 = vrot.lane.b32.xlu0 %v7638_v52, %s7347_s24 }
 0x808   :  { %1282 = vadd.xlane.f32.xlu1 %v1281_v19 }
 0x80b   :  { %1678 = vrot.lane.b32.xlu0 %v7644_v53, %s7347_s24 }
 0x80c   :  { %1285 = vadd.xlane.f32.xlu1 %v1284_v22 }
 0x80f   :  { %1676 = vrot.lane.b32.xlu0 %v7650_v55, %s7347_s24 }
 0x813   :  { %1662 = vrot.lane.b32.xlu0 %v7594_v21, %s7347_s24 }
 0x817   :  { %1664 = vrot.lane.b32.xlu0 %v7665_v57, %s7347_s24 }
 0x81b   :  { %1666 = vrot.lane.b32.xlu0 %v7668_v58, %s7347_s24 }
 0x81d   :  { %1674 = vrot.lane.b32.xlu1 %v7656_v56, %s7347_s24 }
 0x81f   :  { %1668 = vrot.lane.b32.xlu0 %v7675_v59, %s7347_s24 }
 0x821   :  { %1672 = vrot.lane.b32.xlu1 %v7685_v63, %s7347_s24 }
 0x823   :  { %1670 = vrot.lane.b32.xlu0 %v7678_v61, %s7347_s24 }
 0x825   :  { %2141 = vrot.lane.b32.xlu1 %v7630_v51, %s7348_s25 }
 0x827   :  { %2143 = vrot.lane.b32.xlu0 %v7626_v48, %s7348_s25 }
 0x829   :  { %2137 = vrot.lane.b32.xlu1 %v7644_v53, %s7348_s25 }
 0x82b   :  { %2139 = vrot.lane.b32.xlu0 %v7638_v52, %s7348_s25 }
 0x82d   :  { %2133 = vrot.lane.b32.xlu1 %v7656_v56, %s7348_s25 }
 0x82f   :  { %2135 = vrot.lane.b32.xlu0 %v7650_v55, %s7348_s25 }
 0x831   :  { %2123 = vrot.lane.b32.xlu1 %v7665_v57, %s7348_s25 }
 0x833   :  { %2121 = vrot.lane.b32.xlu0 %v7594_v21, %s7348_s25 }
 0x835   :  { %2127 = vrot.lane.b32.xlu1 %v7675_v59, %s7348_s25 }
 0x837   :  { %2125 = vrot.lane.b32.xlu0 %v7668_v58, %s7348_s25 }
 0x839   :  { %2131 = vrot.lane.b32.xlu1 %v7685_v63, %s7348_s25 }
 0x83b   :  { %2129 = vrot.lane.b32.xlu0 %v7678_v61, %s7348_s25 }
 0x858   :  { %v1274_v48 = vpop.xlane.xlu1 %1273 }
 0x85a   :  { %v1271_v51 = vpop.xlane.xlu0 %1270 }
 0x85b   :  { %7105 = vrcp.f32 %v1271_v51 }
 0x85c   :  { %v1314_v52 = vpop.permute.xlu1 %1313  ;;  %7107 = vrcp.f32 %v1274_v48 }
 0x85d   :  { %6515 = vmatprep.subr.mxu1 %v1314_v52 }
 0x85e   :  { %6516 = vmatpush3.msra.mxu1 %v1314_v52 }
 0x862   :  { %v1277_v53 = vpop.xlane.xlu0 %1276 }
 0x863   :  { %7109 = vrcp.f32 %v1277_v53 }
 0x866   :  { %v1312_v21 = vpop.permute.xlu0 %1311 }
 0x867   :  { %6517 = vmatprep.subr.mxu1 %v1312_v21 }
 0x868   :  { %v7106_v55 = vpop.eup %7105  ;;  %6518 = vmatpush3.msra.mxu1 %v1312_v21 }
 0x869   :  { %v1293_v56 = vmul.f32 %v7106_v55, %v7786_v60  ;;  %v7108_v59 = vpop.eup %7107 }
 0x86a   :  { %v1310_v57 = vpop.permute.xlu0 %1309  ;;  %v1294_v24 = vmul.f32 %v7108_v59, %v7782_v3 }
 0x86b   :  { %6519 = vmatprep.subr.mxu1 %v1310_v57  ;;  %6525 = vmatprep.mubr.msk.f32.mxu1 %vm41_vm0, %v1293_v56 }
 0x86c   :  { %6520 = vmatpush3.msra.mxu1 %v1310_v57 }
 0x86e   :  { %v1308_v58 = vpop.permute.xlu0 %1307 }
 0x86f   :  { %6521 = vmatprep.subr.mxu1 %v1308_v58 }
 0x870   :  { %6522 = vmatpush3.msra.mxu1 %v1308_v58  ;;  %v7110_v61 = vpop.eup %7109 }
 0x871   :  { %v1295_v25 = vmul.f32 %v7110_v61, %v7790_v9 }
 0x872   :  { %v1306_v63 = vpop.permute.xlu0 %1305 }
 0x873   :  { %6523 = vmatprep.subr.mxu1 %v1306_v63 }
 0x874   :  { %6524 = vmatpush3.msra.mxu1 %v1306_v63 }
 0x875   :  { %6526 = vmatmul.mubr.msk.f32.vlgmr.msra.gmra.mxu1 %vm41_vm0, %v1294_v24  ;;  %6534 = vmatprep.subr.mxu1 %v5705_v23 }
 0x876   :  { %6528 = vmatprep.mubr.msk.f32.mxu1 %vm41_vm0, %v1295_v25  ;;  %6535 = vmatpush3.msra.mxu1 %v5705_v23  ;;  %v1685_v26 = vpop.permute.xlu0 %1684 }
 0x877   :  { %6556 = vmatprep.subr.msk.mxu1 %vm779_vm2, %v1685_v26 }
 0x87a   :  { %v1683_v47 = vpop.permute.xlu0 %1682 }
 0x87e   :  { %v1681_v49 = vpop.permute.xlu0 %1680 }
 0x882   :  { %v1679_v0 = vpop.permute.xlu0 %1678 }
 0x886   :  { %v1677_v1 = vpop.permute.xlu0 %1676 }
 0x88a   :  { %v1663_v2 = vpop.permute.xlu0 %1662 }
 0x88d   :  { %v1280_v28 = vpop.xlane.xlu1 %1279 }
 0x88e   :  { %7111 = vrcp.f32 %v1280_v28  ;;  %v1665_v4 = vpop.permute.xlu0 %1664 }
 0x891   :  { %v1283_v29 = vpop.xlane.xlu1 %1282 }
 0x892   :  { %7113 = vrcp.f32 %v1283_v29  ;;  %v1667_v60 = vpop.permute.xlu0 %1666 }
 0x895   :  { %v1286_v31 = vpop.xlane.xlu1 %1285 }
 0x896   :  { %7115 = vrcp.f32 %v1286_v31  ;;  %v1669_v62 = vpop.permute.xlu0 %1668 }
 0x899   :  { %v1675_v5 = vpop.permute.xlu1 %1674 }
 0x89a   :  { %v1671_v9 = vpop.permute.xlu0 %1670 }
 0x89b   :  { %v7112_v32 = vpop.eup %7111 }
 0x89c   :  { %v1296_v34 = vmul.f32 %v7112_v32, %v7806_v16 }
 0x89d   :  { %v1673_v15 = vpop.permute.xlu1 %1672 }
 0x89e   :  { %6529 = vmatmul.mubr.msk.f32.gmra.mxu1 %vm41_vm0, %v1296_v34  ;;  %v2144_v10 = vpop.permute.xlu0 %2143 }
 0x89f   :  { %v7114_v38 = vpop.eup %7113 }
 0x8a0   :  { %v1297_v40 = vmul.f32 %v7114_v38, %v7812_v18 }
 0x8a1   :  { %v2142_v16 = vpop.permute.xlu1 %2141 }
 0x8a2   :  { %6531 = vmatprep.mubr.msk.f32.mxu1 %vm41_vm0, %v1297_v40  ;;  %v2140_v13 = vpop.permute.xlu0 %2139 }
 0x8a3   :  { %v7116_v42 = vpop.eup %7115 }
 0x8a4   :  { %v1298_v45 = vmul.f32 %v7116_v42, %v7818_v20 }
 0x8a5   :  { %v2138_v18 = vpop.permute.xlu1 %2137 }
 0x8a6   :  { %6532 = vmatmul.mubr.msk.f32.gmra.mxu1 %vm41_vm0, %v1298_v45  ;;  %v2136_v17 = vpop.permute.xlu0 %2135 }
 0x8a9   :  { %v2134_v20 = vpop.permute.xlu1 %2133 }
 0x8aa   :  { %v2122_v19 = vpop.permute.xlu0 %2121 }
 0x8ad   :  { %v2124_v22 = vpop.permute.xlu1 %2123 }
 0x8ae   :  { %v2126_v48 = vpop.permute.xlu0 %2125 }
 0x8b1   :  { %v2128_v51 = vpop.permute.xlu1 %2127 }
 0x8b2   :  { %v2130_v52 = vpop.permute.xlu0 %2129 }
 0x8b5   :  { %v2132_v53 = vpop.permute.xlu1 %2131 }
 0x935   :  { %v6527_v3 = vpop.f32.mrf.mxu1 }
 0x937   :  { %v1407_v6 = vpop.f32.mrf.mxu1 }
 0x938   :  { %6536 = vmatprep.mubr.msk.f32.mxu1 %vm779_vm2, %v1407_v6 }
 0x939   :  { %6537 = vmatmul.mubr.msk.f32.vlgmr.msra.gmra.mxu1 %vm779_vm2, %v6527_v3 }
 0x93a   :  { %6557 = vmatpush3.xpose.msk.msra.mxu1 %vm779_vm2, %v1685_v26 }
 0x93b   :  { %6558 = vmatprep.subr.msk.mxu1 %vm779_vm2, %v1683_v47 }
 0x93e   :  { %6559 = vmatpush3.xpose.msk.msra.mxu1 %vm779_vm2, %v1683_v47 }
 0x93f   :  { %6560 = vmatprep.subr.msk.mxu1 %vm779_vm2, %v1681_v49 }
 0x942   :  { %6561 = vmatpush3.xpose.msk.msra.mxu1 %vm779_vm2, %v1681_v49 }
 0x943   :  { %6562 = vmatprep.subr.msk.mxu1 %vm779_vm2, %v1679_v0 }
 0x946   :  { %6563 = vmatpush3.xpose.msk.msra.mxu1 %vm779_vm2, %v1679_v0 }
 0x947   :  { %6564 = vmatprep.subr.msk.mxu1 %vm779_vm2, %v1677_v1 }
 0x94a   :  { %6565 = vmatpush3.xpose.msk.msra.mxu1 %vm779_vm2, %v1677_v1 }
 0x94b   :  { %6566 = vmatprep.subr.msk.mxu1 %vm779_vm2, %v1675_v5 }
 0x94e   :  { %6567 = vmatpush3.xpose.msk.msra.mxu1 %vm779_vm2, %v1675_v5 }
 0x94f   :  { %6609 = vmatprep.subr.msk.mxu1 %vm779_vm2, %v2144_v10 }
 0x95e   :  { %v6530_v11 = vpop.f32.mrf.mxu1 }
 0x960   :  { %v1417_v12 = vpop.f32.mrf.mxu1 }
 0x961   :  { %6539 = vmatprep.mubr.msk.f32.mxu1 %vm779_vm2, %v1417_v12 }
 0x962   :  { %6540 = vmatmul.mubr.msk.f32.gmra.mxu1 %vm779_vm2, %v6530_v11 }
 0x966   :  { %v6533_v7 = vpop.f32.mrf.mxu1 }
 0x968   :  { %v1427_v14 = vpop.f32.mrf.mxu1 }
 0x969   :  { %6542 = vmatprep.mubr.msk.f32.mxu1 %vm779_vm2, %v1427_v14 }
 0x96a   :  { %6543 = vmatmul.mubr.msk.f32.gmra.mxu1 %vm779_vm2, %v6533_v7 }
 0x96b   :  { %6568 = vmatprep.mubr.msk.f32.mxu1 %vm779_vm2, %v1663_v2 }
 0x96e   :  { %6569 = vmatmul.mubr.msk.f32.vlgmr.msra.gmra.mxu1 %vm779_vm2, %v1665_v4 }
 0x96f   :  { %6610 = vmatpush3.xpose.msk.msra.mxu1 %vm779_vm2, %v2144_v10  ;;  %6571 = vmatprep.mubr.msk.f32.mxu1 %vm779_vm2, %v1667_v60 }
 0x970   :  { %6611 = vmatprep.subr.msk.mxu1 %vm779_vm2, %v2142_v16 }
 0x972   :  { %6572 = vmatmul.mubr.msk.f32.gmra.mxu1 %vm779_vm2, %v1669_v62 }
 0x973   :  { %6612 = vmatpush3.xpose.msk.msra.mxu1 %vm779_vm2, %v2142_v16  ;;  %6574 = vmatprep.mubr.msk.f32.mxu1 %vm779_vm2, %v1671_v9 }
 0x974   :  { %6613 = vmatprep.subr.msk.mxu1 %vm779_vm2, %v2140_v13 }
 0x976   :  { %6575 = vmatmul.mubr.msk.f32.gmra.mxu1 %vm779_vm2, %v1673_v15 }
 0x977   :  { %6614 = vmatpush3.xpose.msk.msra.mxu1 %vm779_vm2, %v2140_v13  ;;  %6621 = vmatprep.mubr.msk.f32.mxu1 %vm779_vm2, %v2122_v19 }
 0x978   :  { %6615 = vmatprep.subr.msk.mxu1 %vm779_vm2, %v2138_v18 }
 0x97b   :  { %6616 = vmatpush3.xpose.msk.msra.mxu1 %vm779_vm2, %v2138_v18 }
 0x97c   :  { %6617 = vmatprep.subr.msk.mxu1 %vm779_vm2, %v2136_v17 }
 0x97f   :  { %6618 = vmatpush3.xpose.msk.msra.mxu1 %vm779_vm2, %v2136_v17 }
 0x980   :  { %6619 = vmatprep.subr.msk.mxu1 %vm779_vm2, %v2134_v20 }
 0x983   :  { %6620 = vmatpush3.xpose.msk.msra.mxu1 %vm779_vm2, %v2134_v20 }
 0x986   :  { %6622 = vmatmul.mubr.msk.f32.vlgmr.msra.gmra.mxu1 %vm779_vm2, %v2124_v22 }
 0x987   :  { %6624 = vmatprep.mubr.msk.f32.mxu1 %vm779_vm2, %v2126_v48 }
 0x98a   :  { %6625 = vmatmul.mubr.msk.f32.gmra.mxu1 %vm779_vm2, %v2128_v51 }
 0x98b   :  { %6627 = vmatprep.mubr.msk.f32.mxu1 %vm779_vm2, %v2130_v52 }
 0x98e   :  { %6628 = vmatmul.mubr.msk.f32.gmra.mxu1 %vm779_vm2, %v2132_v53 }
 0x9f9   :  { %v7921_v21 = vpop.f32.mrf.mxu1 }
 0x9fb   :  { %v7923_v55 = vpop.f32.mrf.mxu1 }
 0xa22   :  { %v7925_v56 = vpop.f32.mrf.mxu1 }
 0xa24   :  { %v7927_v57 = vpop.f32.mrf.mxu1 }
 0xa2a   :  { %v7929_v58 = vpop.f32.mrf.mxu1 }
 0xa2c   :  { %v7931_v59 = vpop.f32.mrf.mxu1 }
 0xa2e   :  { %v6570_v61 = vpop.f32.mrf.mxu1 }
 0xa2f   :  { %v1782_v63 = vadd.f32 %v6570_v61, %v7689_v54 }
 0xa30   :  { %v1776_v23 = vpop.f32.mrf.mxu1 }
 0xa31   :  { %v1777_v24 = vadd.f32 %v1776_v23, %v7689_v54  ;;  %v1808_v25 = vsel %vm41_vm0, %v1782_v63, -inf }
 0xa32   :  { %1809 = vmax.xlane.f32.xlu1 %v1808_v25  ;;  %v6573_v26 = vpop.f32.mrf.mxu1 }
 0xa33   :  { %v1805_v28 = vsel %vm41_vm0, %v1777_v24, -inf  ;;  %v1792_v34 = vadd.f32 %v6573_v26, %v7692_v8 }
 0xa34   :  { %1806 = vmax.xlane.f32.xlu0 %v1805_v28  ;;  %v1786_v29 = vpop.f32.mrf.mxu1 }
 0xa35   :  { %v1787_v31 = vadd.f32 %v1786_v29, %v7689_v54  ;;  %v1814_v47 = vsel %vm41_vm0, %v1792_v34, -inf }
 0xa36   :  { %v6576_v32 = vpop.f32.mrf.mxu1 }
 0xa37   :  { %v1811_v38 = vsel %vm41_vm0, %v1787_v31, -inf  ;;  %v1802_v45 = vadd.f32 %v6576_v32, %v7692_v8 }
 0xa38   :  { %1812 = vmax.xlane.f32.xlu0 %v1811_v38  ;;  %v1796_v40 = vpop.f32.mrf.mxu1 }
 0xa39   :  { %v1797_v42 = vadd.f32 %v1796_v40, %v7692_v8  ;;  %v1820_v0 = vsel %vm41_vm0, %v1802_v45, -inf }
 0xa3b   :  { %v1817_v49 = vsel %vm41_vm0, %v1797_v42, -inf }
 0xa3c   :  { %1815 = vmax.xlane.f32.xlu0 %v1814_v47  ;;  %1818 = vmax.xlane.f32.xlu1 %v1817_v49 }
 0xa40   :  { %1821 = vmax.xlane.f32.xlu0 %v1820_v0 }
 0xa4d   :  { %1881 = vrot.lane.b32.xlu1 %v7601_v30, %s7347_s24 }
 0xa51   :  { %1877 = vrot.lane.b32.xlu1 %v7607_v36, %s7347_s24 }
 0xa55   :  { %1875 = vrot.lane.b32.xlu1 %v7611_v39, %s7347_s24 }
 0xa56   :  { %1879 = vrot.lane.b32.xlu0 %v7603_v33, %s7347_s24 }
 0xabb   :  { %v1810_v1 = vpop.xlane.xlu1 %1809 }
 0xabc   :  { %v1824_v2 = vsub.f32 %v1782_v63, %v1810_v1 }
 0xabd   :  { %v1807_v3 = vpop.xlane.xlu0 %1806 }
 0xabe   :  { %v1831_v4 = vmul.f32 1.442695, %v1824_v2  ;;  %v1823_v6 = vsub.f32 %v1777_v24, %v1807_v3 }
 0xac0   :  { %7117 = vpow2.f32 %v1831_v4  ;;  %v1829_v60 = vmul.f32 1.442695, %v1823_v6 }
 0xac1   :  { %v1813_v62 = vpop.xlane.xlu0 %1812 }
 0xac2   :  { %7119 = vpow2.f32 %v1829_v60  ;;  %v1825_v9 = vsub.f32 %v1787_v31, %v1813_v62  ;;  %v6623_v31 = vpop.f32.mrf.mxu1 }
 0xac4   :  { %v1833_v5 = vmul.f32 1.442695, %v1825_v9  ;;  %v2235_v32 = vpop.f32.mrf.mxu1 }
 0xac5   :  { %v1819_v10 = vpop.xlane.xlu1 %1818  ;;  %v1816_v11 = vpop.xlane.xlu0 %1815  ;;  %v7990_v0 = vadd.f32 %v2235_v32, %v7689_v54 }
 0xac6   :  { %7121 = vpow2.f32 %v1833_v5  ;;  %v1827_v12 = vsub.f32 %v1797_v42, %v1819_v10  ;;  %v1826_v7 = vsub.f32 %v1792_v34, %v1816_v11  ;;  %v6626_v34 = vpop.f32.mrf.mxu1  ;;  %v7982_v42 = vadd.f32 %v6623_v31, %v7689_v54 }
 0xac7   :  { %v2264_v3 = vsel %vm41_vm0, %v7990_v0, -inf  ;;  %v8000_v4 = vadd.f32 %v6626_v34, %v7692_v8 }
 0xac8   :  { %v1837_v14 = vmul.f32 1.442695, %v1827_v12  ;;  %v1835_v15 = vmul.f32 1.442695, %v1826_v7  ;;  %v2245_v38 = vpop.f32.mrf.mxu1  ;;  %v2267_v49 = vsel %vm41_vm0, %v7982_v42, -inf }
 0xac9   :  { %v1882_v13 = vpop.permute.xlu1 %1881  ;;  %v1822_v16 = vpop.xlane.xlu0 %1821  ;;  %v7995_v2 = vadd.f32 %v2245_v38, %v7689_v54  ;;  %v2273_v62 = vsel %vm41_vm0, %v8000_v4, -inf }
 0xaca   :  { %7123 = vpow2.f32 %v1837_v14  ;;  %v1828_v17 = vsub.f32 %v1802_v45, %v1822_v16  ;;  %6577 = vmatprep.subr.mxu0 %v1882_v13  ;;  %v6629_v40 = vpop.f32.mrf.mxu1 }
 0xacb   :  { %7125 = vpow2.f32 %v1835_v15  ;;  %6578 = vmatpush3.msra.mxu0 %v1882_v13  ;;  %v2270_v6 = vsel %vm41_vm0, %v7995_v2, -inf  ;;  %v8005_v60 = vadd.f32 %v6629_v40, %v7692_v8 }
 0xacc   :  { %v1839_v18 = vmul.f32 1.442695, %v1828_v17  ;;  %v2255_v45 = vpop.f32.mrf.mxu1  ;;  %v5706_v17 = vld [vmem:[%s9116_s2 + $0x70] sm:$0xff] }
 0xacd   :  { %v7953_v19 = vpop.eup %7117  ;;  %v1878_v20 = vpop.permute.xlu1 %1877  ;;  %v7985_v47 = vadd.f32 %v2255_v45, %v7692_v8  ;;  %v2279_v9 = vsel %vm41_vm0, %v8005_v60, -inf }
 0xace   :  { %v1880_v22 = vpop.permute.xlu0 %1879  ;;  %7127 = vpow2.f32 %v1839_v18  ;;  %v1844_v48 = vsel %vm41_vm0, %v7953_v19, 0.0 }
 0xacf   :  { %6579 = vmatprep.subr.mxu0 %v1880_v22  ;;  %v7957_v51 = vpop.eup %7119  ;;  %1845 = vadd.xlane.f32.xlu0 %v1844_v48  ;;  %v2276_v1 = vsel %vm41_vm0, %v7985_v47, -inf }
 0xad0   :  { %6580 = vmatpush3.msra.mxu0 %v1880_v22  ;;  %v1841_v52 = vsel %vm41_vm0, %v7957_v51, 0.0 }
 0xad1   :  { %6581 = vmatprep.subr.mxu0 %v1878_v20  ;;  %v1876_v53 = vpop.permute.xlu1 %1875  ;;  %1842 = vadd.xlane.f32.xlu1 %v1841_v52 }
 0xad2   :  { %6582 = vmatpush3.msra.mxu0 %v1878_v20 }
 0xad3   :  { %6583 = vmatprep.subr.mxu0 %v1876_v53  ;;  %v7961_v61 = vpop.eup %7121 }
 0xad4   :  { %6584 = vmatpush3.msra.mxu0 %v1876_v53  ;;  %v1847_v63 = vsel %vm41_vm0, %v7961_v61, 0.0 }
 0xad5   :  { %1848 = vadd.xlane.f32.xlu1 %v1847_v63 }
 0xad7   :  { %v7965_v23 = vpop.eup %7123 }
 0xad8   :  { %v7967_v24 = vpop.eup %7125  ;;  %v1853_v25 = vsel %vm41_vm0, %v7965_v23, 0.0 }
 0xad9   :  { %1854 = vadd.xlane.f32.xlu1 %v1853_v25  ;;  %v1850_v26 = vsel %vm41_vm0, %v7967_v24, 0.0 }
 0xada   :  { %1851 = vadd.xlane.f32.xlu0 %v1850_v26 }
 0xadb   :  { %v7973_v28 = vpop.eup %7127 }
 0xadc   :  { %v1856_v29 = vsel %vm41_vm0, %v7973_v28, 0.0 }
 0xade   :  { %1857 = vadd.xlane.f32.xlu0 %v1856_v29 }
 0xaea   :  { %1871 = vrot.lane.b32.xlu1 %v7619_v43, %s7347_s24 }
 0xaf4   :  { %1873 = vrot.lane.b32.xlu0 %v7615_v41, %s7347_s24 }
 0xb0e   :  { %2268 = vmax.xlane.f32.xlu1 %v2267_v49 }
 0xb12   :  { %2277 = vmax.xlane.f32.xlu1 %v2276_v1 }
 0xb13   :  { %2265 = vmax.xlane.f32.xlu0 %v2264_v3 }
 0xb17   :  { %2271 = vmax.xlane.f32.xlu0 %v2270_v6 }
 0xb1b   :  { %2274 = vmax.xlane.f32.xlu0 %v2273_v62 }
 0xb1f   :  { %2280 = vmax.xlane.f32.xlu0 %v2279_v9 }
 0xb23   :  { %2340 = vrot.lane.b32.xlu1 %v7601_v30, %s7348_s25 }
 0xb27   :  { %2336 = vrot.lane.b32.xlu1 %v7607_v36, %s7348_s25 }
 0xb2b   :  { %2334 = vrot.lane.b32.xlu1 %v7611_v39, %s7348_s25 }
 0xb35   :  { %2338 = vrot.lane.b32.xlu0 %v7603_v33, %s7348_s25 }
 0xb58   :  { %v1846_v10 = vpop.xlane.xlu0 %1845 }
 0xb5a   :  { %v1843_v5 = vpop.xlane.xlu1 %1842 }
 0xb5b   :  { %7129 = vrcp.f32 %v1843_v5 }
 0xb5c   :  { %7131 = vrcp.f32 %v1846_v10 }
 0xb5e   :  { %v1849_v11 = vpop.xlane.xlu1 %1848 }
 0xb5f   :  { %7133 = vrcp.f32 %v1849_v11 }
 0xb62   :  { %v1855_v12 = vpop.xlane.xlu1 %1854 }
 0xb63   :  { %7135 = vrcp.f32 %v1855_v12  ;;  %v1852_v7 = vpop.xlane.xlu0 %1851 }
 0xb64   :  { %7137 = vrcp.f32 %v1852_v7  ;;  %v8065_v7 = vpop.f32.mrf.mxu0 }
 0xb66   :  { %v1872_v13 = vpop.permute.xlu1 %1871 }
 0xb67   :  { %v1858_v30 = vpop.xlane.xlu0 %1857 }
 0xb68   :  { %v7130_v14 = vpop.eup %7129  ;;  %7139 = vrcp.f32 %v1858_v30  ;;  %v8067_v30 = vpop.f32.mrf.mxu0 }
 0xb69   :  { %v1865_v36 = vmul.f32 %v7130_v14, %v7957_v51  ;;  %v7132_v15 = vpop.eup %7131 }
 0xb6a   :  { %v1866_v18 = vmul.f32 %v7132_v15, %v7953_v19  ;;  %v8069_v14 = vpop.f32.mrf.mxu0 }
 0xb6b   :  { %v1874_v39 = vpop.permute.xlu0 %1873  ;;  %6589 = vmatprep.mubr.msk.f32.mxu0 %vm41_vm0, %v1865_v36 }
 0xb6c   :  { %v7134_v33 = vpop.eup %7133  ;;  %6585 = vmatprep.subr.mxu0 %v1874_v39  ;;  %v8071_v36 = vpop.f32.mrf.mxu0 }
 0xb6d   :  { %6586 = vmatpush3.msra.mxu0 %v1874_v39  ;;  %v1867_v16 = vmul.f32 %v7134_v33, %v7961_v61 }
 0xb6e   :  { %6587 = vmatprep.subr.mxu0 %v1872_v13  ;;  %v8073_v15 = vpop.f32.mrf.mxu0 }
 0xb6f   :  { %6588 = vmatpush3.msra.mxu0 %v1872_v13 }
 0xb70   :  { %v7136_v20 = vpop.eup %7135  ;;  %6590 = vmatmul.mubr.msk.f32.vlgmr.msra.gmra.mxu0 %vm41_vm0, %v1866_v18  ;;  %6598 = vmatprep.subr.mxu0 %v5706_v17  ;;  %v8075_v39 = vpop.f32.mrf.mxu0 }
 0xb71   :  { %v7138_v22 = vpop.eup %7137  ;;  %6592 = vmatprep.mubr.msk.f32.mxu0 %vm41_vm0, %v1867_v16  ;;  %v1869_v48 = vmul.f32 %v7136_v20, %v7965_v23  ;;  %6599 = vmatpush3.msra.mxu0 %v5706_v17 }
 0xb72   :  { %v1868_v51 = vmul.f32 %v7138_v22, %v7967_v24 }
 0xb74   :  { %6593 = vmatmul.mubr.msk.f32.gmra.mxu0 %vm41_vm0, %v1868_v51 }
 0xb75   :  { %v7140_v52 = vpop.eup %7139  ;;  %6595 = vmatprep.mubr.msk.f32.mxu0 %vm41_vm0, %v1869_v48 }
 0xb76   :  { %v1870_v19 = vmul.f32 %v7140_v52, %v7973_v28 }
 0xb78   :  { %6596 = vmatmul.mubr.msk.f32.gmra.mxu0 %vm41_vm0, %v1870_v19 }
 0xb97   :  { %v2269_v53 = vpop.xlane.xlu1 %2268 }
 0xb98   :  { %v2283_v61 = vsub.f32 %v7982_v42, %v2269_v53 }
 0xb9a   :  { %v2290_v63 = vmul.f32 1.442695, %v2283_v61 }
 0xb9b   :  { %v2278_v25 = vpop.xlane.xlu1 %2277 }
 0xb9c   :  { %7141 = vpow2.f32 %v2290_v63  ;;  %v2266_v26 = vpop.xlane.xlu0 %2265  ;;  %v2286_v24 = vsub.f32 %v7985_v47, %v2278_v25 }
 0xb9d   :  { %v2282_v23 = vsub.f32 %v7990_v0, %v2266_v26 }
 0xb9e   :  { %v2296_v34 = vmul.f32 1.442695, %v2286_v24 }
 0xb9f   :  { %v2288_v29 = vmul.f32 1.442695, %v2282_v23  ;;  %v2341_v31 = vpop.permute.xlu1 %2340 }
 0xba0   :  { %v2272_v32 = vpop.xlane.xlu0 %2271  ;;  %6630 = vmatprep.subr.mxu0 %v2341_v31 }
 0xba1   :  { %7143 = vpow2.f32 %v2288_v29  ;;  %v2284_v28 = vsub.f32 %v7995_v2, %v2272_v32 }
 0xba3   :  { %v2292_v38 = vmul.f32 1.442695, %v2284_v28  ;;  %v2337_v33 = vpop.permute.xlu1 %2336 }
 0xba4   :  { %v2275_v40 = vpop.xlane.xlu0 %2274 }
 0xba5   :  { %7145 = vpow2.f32 %v2292_v38  ;;  %v2285_v42 = vsub.f32 %v8000_v4, %v2275_v40 }
 0xba6   :  { %7147 = vpow2.f32 %v2296_v34 }
 0xba7   :  { %v2294_v45 = vmul.f32 1.442695, %v2285_v42 }
 0xba8   :  { %v2281_v49 = vpop.xlane.xlu0 %2280 }
 0xba9   :  { %v8039_v1 = vpop.eup %7141  ;;  %7149 = vpow2.f32 %v2294_v45  ;;  %v2287_v47 = vsub.f32 %v8005_v60, %v2281_v49  ;;  %v5707_v49 = vld [vmem:[%s9116_s2 + $0x78] sm:$0xff] }
 0xbaa   :  { %v2303_v0 = vsel %vm41_vm0, %v8039_v1, 0.0 }
 0xbab   :  { %v2298_v3 = vmul.f32 1.442695, %v2287_v47  ;;  %2304 = vadd.xlane.f32.xlu0 %v2303_v0  ;;  %v1634_v0 = vadd.f32 %v8067_v30, %v7923_v55  ;;  %v1654_v55 = vadd.f32 %v8075_v39, %v7931_v59  ;;  %v5804_v39 = vld [vmem:[%s9114_s1 + $0x7] ss:$0 sm:$0xff] }
 0xbac   :  { %v2339_v17 = vpop.permute.xlu0 %2338 }
 0xbad   :  { %7151 = vpow2.f32 %v2298_v3 }
 0xbae   :  { %v7144_v2 = vpop.eup %7143 }
 0xbaf   :  { %v2300_v6 = vsel %vm41_vm0, %v7144_v2, 0.0 }
 0xbb0   :  { %2301 = vadd.xlane.f32.xlu1 %v2300_v6  ;;  %v1649_v6 = vadd.f32 %v8069_v14, %v7925_v56 }
 0xbb2   :  { %v8045_v62 = vpop.eup %7145 }
 0xbb3   :  { %v2306_v4 = vsel %vm41_vm0, %v8045_v62, 0.0  ;;  %v8049_v9 = vpop.eup %7147 }
 0xbb4   :  { %2307 = vadd.xlane.f32.xlu1 %v2306_v4  ;;  %v2312_v60 = vsel %vm41_vm0, %v8049_v9, 0.0 }
 0xbb6   :  { %v8051_v5 = vpop.eup %7149 }
 0xbb7   :  { %v2309_v10 = vsel %vm41_vm0, %v8051_v5, 0.0 }
 0xbb8   :  { %2313 = vadd.xlane.f32.xlu1 %v2312_v60  ;;  %2310 = vadd.xlane.f32.xlu0 %v2309_v10  ;;  %v1659_v10 = vadd.f32 %v8073_v15, %v7929_v58 }
 0xbba   :  { %v8057_v11 = vpop.eup %7151 }
 0xbbb   :  { %v2315_v12 = vsel %vm41_vm0, %v8057_v11, 0.0 }
 0xbbc   :  { %2316 = vadd.xlane.f32.xlu0 %v2315_v12 }
 0xbc9   :  { %2330 = vrot.lane.b32.xlu1 %v7619_v43, %s7348_s25 }
 0xbd2   :  { %2332 = vrot.lane.b32.xlu0 %v7615_v41, %s7348_s25  ;;  %v2335_v41 = vpop.permute.xlu1 %2334 }
 0xc30   :  { %v6591_v13 = vpop.f32.mrf.mxu0 }
 0xc32   :  { %v1973_v16 = vpop.f32.mrf.mxu0 }
 0xc33   :  { %6600 = vmatprep.mubr.msk.f32.mxu0 %vm779_vm2, %v1973_v16 }
 0xc34   :  { %v6594_v43 = vpop.f32.mrf.mxu0  ;;  %6601 = vmatmul.mubr.msk.f32.vlgmr.msra.gmra.mxu0 %vm779_vm2, %v6591_v13  ;;  %v2305_v22 = vpop.xlane.xlu0 %2304 }
 0xc35   :  { %6631 = vmatpush3.msra.mxu0 %v2341_v31 }
 0xc36   :  { %6632 = vmatprep.subr.mxu0 %v2339_v17  ;;  %v1983_v18 = vpop.f32.mrf.mxu0 }
 0xc37   :  { %6633 = vmatpush3.msra.mxu0 %v2339_v17  ;;  %6603 = vmatprep.mubr.msk.f32.mxu0 %vm779_vm2, %v1983_v18 }
 0xc38   :  { %6634 = vmatprep.subr.mxu0 %v2337_v33  ;;  %v6597_v20 = vpop.f32.mrf.mxu0  ;;  %6604 = vmatmul.mubr.msk.f32.gmra.mxu0 %vm779_vm2, %v6594_v43 }
 0xc39   :  { %6635 = vmatpush3.msra.mxu0 %v2337_v33  ;;  %v2302_v48 = vpop.xlane.xlu1 %2301 }
 0xc3a   :  { %7153 = vrcp.f32 %v2302_v48  ;;  %6636 = vmatprep.subr.mxu0 %v2335_v41  ;;  %v1993_v51 = vpop.f32.mrf.mxu0 }
 0xc3b   :  { %6637 = vmatpush3.msra.mxu0 %v2335_v41  ;;  %6606 = vmatprep.mubr.msk.f32.mxu0 %vm779_vm2, %v1993_v51  ;;  %7155 = vrcp.f32 %v2305_v22 }
 0xc3c   :  { %6607 = vmatmul.mubr.msk.f32.gmra.mxu0 %vm779_vm2, %v6597_v20 }
 0xc3d   :  { %v2308_v52 = vpop.xlane.xlu1 %2307 }
 0xc3e   :  { %7157 = vrcp.f32 %v2308_v52 }
 0xc41   :  { %v2314_v19 = vpop.xlane.xlu1 %2313  ;;  %v2311_v53 = vpop.xlane.xlu0 %2310 }
 0xc42   :  { %7159 = vrcp.f32 %v2314_v19 }
 0xc43   :  { %7161 = vrcp.f32 %v2311_v53 }
 0xc45   :  { %v2317_v61 = vpop.xlane.xlu0 %2316  ;;  %v2331_v29 = vpop.permute.xlu1 %2330 }
 0xc46   :  { %7163 = vrcp.f32 %v2317_v61 }
 0xc47   :  { %v7154_v63 = vpop.eup %7153 }
 0xc48   :  { %v2324_v25 = vmul.f32 %v7154_v63, %v7144_v2  ;;  %v7156_v26 = vpop.eup %7155 }
 0xc49   :  { %v2333_v23 = vpop.permute.xlu0 %2332  ;;  %v2325_v31 = vmul.f32 %v7156_v26, %v8039_v1  ;;  %v1639_v1 = vadd.f32 %v8065_v7, %v7921_v21 }
 0xc4a   :  { %6638 = vmatprep.subr.mxu0 %v2333_v23  ;;  %6642 = vmatprep.mubr.msk.f32.mxu0 %vm41_vm0, %v2324_v25 }
 0xc4b   :  { %v7158_v24 = vpop.eup %7157  ;;  %6639 = vmatpush3.msra.mxu0 %v2333_v23 }
 0xc4c   :  { %6640 = vmatprep.subr.mxu0 %v2331_v29  ;;  %v2326_v32 = vmul.f32 %v7158_v24, %v8045_v62 }
 0xc4d   :  { %6641 = vmatpush3.msra.mxu0 %v2331_v29 }
 0xc4e   :  { %6643 = vmatmul.mubr.msk.f32.vlgmr.msra.gmra.mxu0 %vm41_vm0, %v2325_v31  ;;  %6651 = vmatprep.subr.mxu0 %v5707_v49 }
 0xc4f   :  { %v7160_v28 = vpop.eup %7159  ;;  %6645 = vmatprep.mubr.msk.f32.mxu0 %vm41_vm0, %v2326_v32  ;;  %6652 = vmatpush3.msra.mxu0 %v5707_v49 }
 0xc50   :  { %v7162_v34 = vpop.eup %7161  ;;  %v2328_v38 = vmul.f32 %v7160_v28, %v8049_v9  ;;  %v1644_v9 = vadd.f32 %v8071_v36, %v7927_v57 }
 0xc51   :  { %v2327_v40 = vmul.f32 %v7162_v34, %v8051_v5 }
 0xc53   :  { %v7164_v42 = vpop.eup %7163  ;;  %6646 = vmatmul.mubr.msk.f32.gmra.mxu0 %vm41_vm0, %v2327_v40 }
 0xc54   :  { %6648 = vmatprep.mubr.msk.f32.mxu0 %vm41_vm0, %v2328_v38  ;;  %v2329_v45 = vmul.f32 %v7164_v42, %v8057_v11 }
 0xc57   :  { %6649 = vmatmul.mubr.msk.f32.gmra.mxu0 %vm41_vm0, %v2329_v45 }
 0xcf4   :  { %v6602_v47 = vpop.f32.mrf.mxu0 }
 0xcf5   :  { %v2116_v3 = vadd.f32 %v6602_v47, %v1639_v1 }
 0xcf6   :  { %v2086_v2 = vpop.f32.mrf.mxu0 }
 0xcf7   :  { %v2115_v62 = vadd.f32 %v2086_v2, %v1634_v0 }
 0xcf8   :  { %v6605_v4 = vpop.f32.mrf.mxu0 }
 0xcf9   :  { %v2118_v5 = vadd.f32 %v6605_v4, %v1649_v6 }
 0xcfa   :  { %v2096_v60 = vpop.f32.mrf.mxu0 }
 0xcfb   :  { %v2117_v21 = vadd.f32 %v2096_v60, %v1644_v9 }
 0xcfc   :  { %v6608_v11 = vpop.f32.mrf.mxu0 }
 0xcfd   :  { %v2120_v12 = vadd.f32 %v6608_v11, %v1659_v10 }
 0xcfe   :  { %v2106_v7 = vpop.f32.mrf.mxu0 }
 0xcff   :  { %v2119_v30 = vadd.f32 %v2106_v7, %v1654_v55 }
 0xd0e   :  { %v6644_v33 = vpop.f32.mrf.mxu0 }
 0xd10   :  { %v2432_v56 = vpop.f32.mrf.mxu0 }
 0xd11   :  { %6653 = vmatprep.mubr.msk.f32.mxu0 %vm779_vm2, %v2432_v56 }
 0xd12   :  { %6654 = vmatmul.mubr.msk.f32.vlgmr.msra.gmra.mxu0 %vm779_vm2, %v6644_v33 }
 0xd13   :  { %v6647_v57 = vpop.f32.mrf.mxu0 }
 0xd15   :  { %v2442_v14 = vpop.f32.mrf.mxu0 }
 0xd16   :  { %6656 = vmatprep.mubr.msk.f32.mxu0 %vm779_vm2, %v2442_v14 }
 0xd17   :  { %v6650_v36 = vpop.f32.mrf.mxu0  ;;  %6657 = vmatmul.mubr.msk.f32.gmra.mxu0 %vm779_vm2, %v6647_v57 }
 0xd19   :  { %v2452_v58 = vpop.f32.mrf.mxu0 }
 0xd1a   :  { %6659 = vmatprep.mubr.msk.f32.mxu0 %vm779_vm2, %v2452_v58  ;;  %v2700_v58 = vld [vmem:[%s9117_s3 + $0x18] sm:$0xff] }
 0xd1b   :  { %6660 = vmatmul.mubr.msk.f32.gmra.mxu0 %vm779_vm2, %v6650_v36  ;;  %6662 = vmatprep.subr.mxu1 %v2700_v58 }
 0xd1c   :  { %6663 = vmatpush3.msra.mxu1 %v2700_v58  ;;  %v2876_v58 = vld [vmem:[%s9118_s5 + $0x38] sm:$0xff] }
 0xdd2   :  { %v6655_v59 = vpop.f32.mrf.mxu0 }
 0xdd3   :  { %v2575_v15 = vadd.f32 %v6655_v59, %v2116_v3  ;;  %v2699_v59 = vld [vmem:[%s9117_s3 + $0x10] sm:$0xff] }
 0xdd4   :  { %v2545_v13 = vpop.f32.mrf.mxu0  ;;  %6664 = vmatprep.subr.mxu1 %v2699_v59 }
 0xdd5   :  { %v2581_v16 = vadd.f32 %v2575_v15, %v7466_v35  ;;  %v2574_v43 = vadd.f32 %v2545_v13, %v2115_v62  ;;  %v2698_v15 = vld [vmem:[%s9117_s3 + $0x8] sm:$0xff]  ;;  %6665 = vmatpush3.msra.mxu1 %v2699_v59  ;;  %v2875_v59 = vld [vmem:[%s9118_s5 + $0x30] sm:$0xff] }
 0xdd6   :  { %6666 = vmatprep.subr.mxu1 %v2698_v15 }
 0xdd7   :  { %v8119_v41 = vadd.f32 %v5804_v39, %v2581_v16  ;;  %v2580_v17 = vadd.f32 %v2574_v43, %v7462_v27  ;;  %v6658_v18 = vpop.f32.mrf.mxu0  ;;  %6667 = vmatpush3.msra.mxu1 %v2698_v15  ;;  %v2874_v15 = vld [vmem:[%s9118_s5 + $0x28] sm:$0xff] }
 0xdd8   :  { %v2577_v20 = vadd.f32 %v6658_v18, %v2118_v5 }
 0xdd9   :  { %v8122_v22 = vadd.f32 %v5804_v39, %v2580_v17  ;;  %v2555_v48 = vpop.f32.mrf.mxu0  ;;  %v2602_v51 = vsel %vm157_vm1, %v8119_v41, 0.0 }
 0xdda   :  { %v2576_v52 = vadd.f32 %v2555_v48, %v2117_v21  ;;  %2603 = vadd.xlane.f32.xlu1 %v2602_v51  ;;  %v2583_v35 = vadd.f32 %v2577_v20, %v7474_v44 }
 0xddb   :  { %v6661_v19 = vpop.f32.mrf.mxu0  ;;  %v2599_v53 = vsel %vm157_vm1, %v8122_v22, 0.0 }
 0xddc   :  { %v2582_v61 = vadd.f32 %v2576_v52, %v7468_v37  ;;  %v2579_v63 = vadd.f32 %v6661_v19, %v2120_v12  ;;  %2600 = vadd.xlane.f32.xlu0 %v2599_v53  ;;  %v8132_v23 = vadd.f32 %v5804_v39, %v2583_v35 }
 0xddd   :  { %v2565_v27 = vpop.f32.mrf.mxu0 }
 0xdde   :  { %v8130_v25 = vadd.f32 %v5804_v39, %v2582_v61  ;;  %v2578_v26 = vadd.f32 %v2565_v27, %v2119_v30  ;;  %v2585_v24 = vadd.f32 %v2579_v63, %v7482_v50  ;;  %v2608_v37 = vsel %vm157_vm1, %v8132_v23, 0.0 }
 0xde0   :  { %v2584_v29 = vadd.f32 %v2578_v26, %v7476_v46  ;;  %v2605_v31 = vsel %vm157_vm1, %v8130_v25, 0.0  ;;  %v8140_v44 = vadd.f32 %v5804_v39, %v2585_v24 }
 0xde1   :  { %2606 = vadd.xlane.f32.xlu0 %v2605_v31 }
 0xde2   :  { %v8138_v32 = vadd.f32 %v5804_v39, %v2584_v29  ;;  %v2614_v50 = vsel %vm157_vm1, %v8140_v44, 0.0  ;;  %v2697_v39 = vld [vmem:[%s9117_s3] sm:$0xff] }
 0xde3   :  { %6668 = vmatprep.subr.mxu1 %v2697_v39 }
 0xde4   :  { %v2611_v28 = vsel %vm157_vm1, %v8138_v32, 0.0  ;;  %6669 = vmatpush3.msra.mxu1 %v2697_v39  ;;  %v2873_v39 = vld [vmem:[%s9118_s5 + $0x20] sm:$0xff] }
 0xde5   :  { %2609 = vadd.xlane.f32.xlu0 %v2608_v37  ;;  %2612 = vadd.xlane.f32.xlu1 %v2611_v28  ;;  %v5805_v28 = vld [vmem:[%s9114_s1 + $0x8] ss:$0 sm:$0xff] }
 0xde9   :  { %2615 = vadd.xlane.f32.xlu0 %v2614_v50 }
 0xe63   :  { %v2604_v46 = vpop.xlane.xlu1 %2603 }
 0xe64   :  { %v2618_v34 = vmul.f32 0.03125, %v2604_v46 }
 0xe65   :  { %v2601_v38 = vpop.xlane.xlu0 %2600 }
 0xe66   :  { %v8149_v40 = vsub.f32 %v8119_v41, %v2618_v34  ;;  %v2617_v42 = vmul.f32 0.03125, %v2601_v38  ;;  %v5806_v38 = vld [vmem:[%s9114_s1 + $0x9] ss:$0 sm:$0xff] }
 0xe68   :  { %v8152_v45 = vsub.f32 %v8122_v22, %v2617_v42  ;;  %v2630_v49 = vmul.f32 %v8149_v40, %v8149_v40 }
 0xe6a   :  { %v2607_v1 = vpop.xlane.xlu0 %2606  ;;  %v2638_v47 = vsel %vm157_vm1, %v2630_v49, 0.0  ;;  %v2629_v0 = vmul.f32 %v8152_v45, %v8152_v45 }
 0xe6b   :  { %v2619_v3 = vmul.f32 0.03125, %v2607_v1  ;;  %2639 = vadd.xlane.f32.xlu0 %v2638_v47 }
 0xe6c   :  { %v2635_v2 = vsel %vm157_vm1, %v2629_v0, 0.0 }
 0xe6d   :  { %v8161_v6 = vsub.f32 %v8130_v25, %v2619_v3  ;;  %2636 = vadd.xlane.f32.xlu1 %v2635_v2 }
 0xe6e   :  { %v2610_v62 = vpop.xlane.xlu0 %2609  ;;  %v2613_v4 = vpop.xlane.xlu1 %2612 }
 0xe6f   :  { %v2620_v9 = vmul.f32 0.03125, %v2610_v62  ;;  %v2621_v5 = vmul.f32 0.03125, %v2613_v4  ;;  %v2631_v60 = vmul.f32 %v8161_v6, %v8161_v6 }
 0xe71   :  { %v8166_v10 = vsub.f32 %v8132_v23, %v2620_v9  ;;  %v8169_v21 = vsub.f32 %v8138_v32, %v2621_v5  ;;  %v2641_v11 = vsel %vm157_vm1, %v2631_v60, 0.0 }
 0xe72   :  { %v2616_v55 = vpop.xlane.xlu0 %2615  ;;  %2642 = vadd.xlane.f32.xlu1 %v2641_v11 }
 0xe73   :  { %v2622_v12 = vmul.f32 0.03125, %v2616_v55  ;;  %v2632_v7 = vmul.f32 %v8166_v10, %v8166_v10  ;;  %v2633_v30 = vmul.f32 %v8169_v21, %v8169_v21 }
 0xe75   :  { %v8177_v33 = vsub.f32 %v8140_v44, %v2622_v12  ;;  %v2644_v56 = vsel %vm157_vm1, %v2632_v7, 0.0  ;;  %v2647_v57 = vsel %vm157_vm1, %v2633_v30, 0.0  ;;  %v2882_v30 = vld [vmem:[%s9118_s5 + $0x68] sm:$0xff] }
 0xe76   :  { %2645 = vadd.xlane.f32.xlu0 %v2644_v56  ;;  %2648 = vadd.xlane.f32.xlu1 %v2647_v57  ;;  %v2880_v56 = vld [vmem:[%s9118_s5 + $0x58] sm:$0xff]  ;;  %v2879_v57 = vld [vmem:[%s9118_s5 + $0x50] sm:$0xff] }
 0xe77   :  { %v2634_v14 = vmul.f32 %v8177_v33, %v8177_v33 }
 0xe79   :  { %v2650_v36 = vsel %vm157_vm1, %v2634_v14, 0.0  ;;  %v2878_v14 = vld [vmem:[%s9118_s5 + $0x48] sm:$0xff] }
 0xe7a   :  { %2651 = vadd.xlane.f32.xlu0 %v2650_v36  ;;  %v2877_v36 = vld [vmem:[%s9118_s5 + $0x40] sm:$0xff] }
 0xef4   :  { %v2640_v13 = vpop.xlane.xlu0 %2639 }
 0xef5   :  { %v2654_v16 = vmul.f32 0.03125, %v2640_v13  ;;  %v2872_v13 = vld [vmem:[%s9118_s5 + $0x18] sm:$0xff] }
 0xef6   :  { %v2637_v43 = vpop.xlane.xlu1 %2636 }
 0xef7   :  { %v2660_v17 = vadd.f32 1e-05, %v2654_v16  ;;  %v2653_v18 = vmul.f32 0.03125, %v2637_v43  ;;  %v2871_v16 = vld [vmem:[%s9118_s5 + $0x10] sm:$0xff]  ;;  %v2870_v43 = vld [vmem:[%s9118_s5 + $0x8] sm:$0xff] }
 0xef9   :  { %7165 = vrsqrt.f32 %v2660_v17  ;;  %v2659_v20 = vadd.f32 1e-05, %v2653_v18  ;;  %v2869_v17 = vld [vmem:[%s9118_s5] sm:$0xff] }
 0xefa   :  { %v5807_v18 = vld [vmem:[%s9119_s4] ss:$0 sm:$0xff] }
 0xefb   :  { %7167 = vrsqrt.f32 %v2659_v20  ;;  %v2643_v48 = vpop.xlane.xlu1 %2642 }
 0xefc   :  { %v2655_v51 = vmul.f32 0.03125, %v2643_v48 }
 0xefe   :  { %v2661_v52 = vadd.f32 1e-05, %v2655_v51 }
 0xeff   :  { %v2646_v19 = vpop.xlane.xlu0 %2645  ;;  %v2649_v53 = vpop.xlane.xlu1 %2648 }
 0xf00   :  { %7169 = vrsqrt.f32 %v2661_v52  ;;  %v2656_v35 = vmul.f32 0.03125, %v2646_v19  ;;  %v2657_v61 = vmul.f32 0.03125, %v2649_v53 }
 0xf02   :  { %v2662_v63 = vadd.f32 1e-05, %v2656_v35  ;;  %v2663_v27 = vadd.f32 1e-05, %v2657_v61 }
 0xf03   :  { %v2652_v26 = vpop.xlane.xlu0 %2651 }
 0xf04   :  { %7171 = vrsqrt.f32 %v2662_v63  ;;  %v2658_v24 = vmul.f32 0.03125, %v2652_v26 }
 0xf05   :  { %7173 = vrsqrt.f32 %v2663_v27 }
 0xf06   :  { %v7166_v29 = vpop.eup %7165  ;;  %v2664_v31 = vadd.f32 1e-05, %v2658_v24 }
 0xf07   :  { %v2672_v37 = vmul.f32 %v7166_v29, %v8149_v40 }
 0xf08   :  { %v7168_v50 = vpop.eup %7167  ;;  %7175 = vrsqrt.f32 %v2664_v31 }
 0xf09   :  { %v2671_v46 = vmul.f32 %v7168_v50, %v8152_v45  ;;  %v2682_v34 = vmul.f32 %v5805_v28, %v2672_v37 }
 0xf0b   :  { %v2681_v42 = vmul.f32 %v5805_v28, %v2671_v46  ;;  %v2692_v47 = vadd.f32 %v5806_v38, %v2682_v34 }
 0xf0d   :  { %v7170_v49 = vpop.eup %7169  ;;  %v2691_v1 = vadd.f32 %v5806_v38, %v2681_v42 }
 0xf0e   :  { %v2673_v0 = vmul.f32 %v7170_v49, %v8161_v6 }
 0xf0f   :  { %6670 = vmatprep.mubr.msk.f32.mxu1 %vm157_vm1, %v2691_v1 }
 0xf10   :  { %6671 = vmatmul.mubr.msk.f32.vlgmr.msra.gmra.mxu1 %vm157_vm1, %v2692_v47  ;;  %v2683_v40 = vmul.f32 %v5805_v28, %v2673_v0 }
 0xf11   :  { %v7172_v3 = vpop.eup %7171 }
 0xf12   :  { %v7174_v2 = vpop.eup %7173  ;;  %v2693_v62 = vadd.f32 %v5806_v38, %v2683_v40  ;;  %v2674_v45 = vmul.f32 %v7172_v3, %v8166_v10  ;;  %v2884_v10 = vld [vmem:[%s9118_s5 + $0x78] sm:$0xff] }
 0xf13   :  { %v2675_v4 = vmul.f32 %v7174_v2, %v8169_v21  ;;  %6679 = vmatprep.subr.mxu0 %v2884_v10  ;;  %v2883_v21 = vld [vmem:[%s9118_s5 + $0x70] sm:$0xff] }
 0xf14   :  { %6673 = vmatprep.mubr.msk.f32.mxu1 %vm157_vm1, %v2693_v62  ;;  %v2684_v9 = vmul.f32 %v5805_v28, %v2674_v45  ;;  %6680 = vmatpush3.msra.mxu0 %v2884_v10 }
 0xf15   :  { %v7176_v5 = vpop.eup %7175  ;;  %v2685_v60 = vmul.f32 %v5805_v28, %v2675_v4  ;;  %6681 = vmatprep.subr.mxu0 %v2883_v21 }
 0xf16   :  { %v2694_v11 = vadd.f32 %v5806_v38, %v2684_v9  ;;  %v2676_v6 = vmul.f32 %v7176_v5, %v8177_v33  ;;  %6682 = vmatpush3.msra.mxu0 %v2883_v21  ;;  %v2881_v33 = vld [vmem:[%s9118_s5 + $0x60] sm:$0xff] }
 0xf17   :  { %v2695_v55 = vadd.f32 %v5806_v38, %v2685_v60  ;;  %6683 = vmatprep.subr.mxu0 %v2882_v30 }
 0xf18   :  { %6674 = vmatmul.mubr.msk.f32.gmra.mxu1 %vm157_vm1, %v2694_v11  ;;  %v2686_v12 = vmul.f32 %v5805_v28, %v2676_v6  ;;  %6684 = vmatpush3.msra.mxu0 %v2882_v30 }
 0xf19   :  { %6676 = vmatprep.mubr.msk.f32.mxu1 %vm157_vm1, %v2695_v55  ;;  %6685 = vmatprep.subr.mxu0 %v2881_v33 }
 0xf1a   :  { %v2696_v7 = vadd.f32 %v5806_v38, %v2686_v12  ;;  %6686 = vmatpush3.msra.mxu0 %v2881_v33 }
 0xf1b   :  { %6687 = vmatprep.subr.mxu0 %v2880_v56 }
 0xf1c   :  { %6677 = vmatmul.mubr.msk.f32.gmra.mxu1 %vm157_vm1, %v2696_v7  ;;  %6688 = vmatpush3.msra.mxu0 %v2880_v56 }
 0xf1d   :  { %6689 = vmatprep.subr.mxu0 %v2879_v57 }
 0xf1e   :  { %6690 = vmatpush3.msra.mxu0 %v2879_v57 }
 0xf1f   :  { %6691 = vmatprep.subr.mxu0 %v2878_v14 }
 0xf20   :  { %6692 = vmatpush3.msra.mxu0 %v2878_v14 }
 0xf21   :  { %6693 = vmatprep.subr.mxu0 %v2877_v36 }
 0xf22   :  { %6694 = vmatpush3.msra.mxu0 %v2877_v36 }
 0xf23   :  { %6695 = vmatprep.subr.mxu0 %v2876_v58 }
 0xf24   :  { %6696 = vmatpush3.msra.mxu0 %v2876_v58 }
 0xf25   :  { %6697 = vmatprep.subr.mxu0 %v2875_v59 }
 0xf26   :  { %6698 = vmatpush3.msra.mxu0 %v2875_v59 }
 0xf27   :  { %6699 = vmatprep.subr.mxu0 %v2874_v15 }
 0xf28   :  { %6700 = vmatpush3.msra.mxu0 %v2874_v15  ;;  %v5820_v15 = vld [vmem:[%s9114_s1 + $0xa] ss:$0 sm:$0xff] }
 0xf29   :  { %6701 = vmatprep.subr.mxu0 %v2873_v39 }
 0xf2a   :  { %6702 = vmatpush3.msra.mxu0 %v2873_v39 }
 0xf2b   :  { %6703 = vmatprep.subr.mxu0 %v2872_v13 }
 0xf2c   :  { %6704 = vmatpush3.msra.mxu0 %v2872_v13 }
 0xf2d   :  { %6705 = vmatprep.subr.mxu0 %v2871_v16 }
 0xf2e   :  { %6706 = vmatpush3.msra.mxu0 %v2871_v16 }
 0xf2f   :  { %6707 = vmatprep.subr.mxu0 %v2870_v43 }
 0xf30   :  { %6708 = vmatpush3.msra.mxu0 %v2870_v43 }
 0xf31   :  { %6709 = vmatprep.subr.mxu0 %v2869_v17 }
 0xf32   :  { %6710 = vmatpush3.msra.mxu0 %v2869_v17 }
 0xfd0   :  { %v6672_v20 = vpop.f32.mrf.mxu1 }
 0xfd1   :  { %v2798_v48 = vadd.f32 %v6672_v20, %v5807_v18 }
 0xfd2   :  { %v2792_v51 = vpop.f32.mrf.mxu1 }
 0xfd3   :  { %v5815_v52 = vmul.f32 -1.702, %v2798_v48  ;;  %v2793_v19 = vadd.f32 %v5807_v18, %v2792_v51 }
 0xfd5   :  { %v2835_v53 = vmul.f32 1.442695, %v5815_v52  ;;  %v5814_v35 = vmul.f32 -1.702, %v2793_v19 }
 0xfd7   :  { %7177 = vpow2.f32 %v2835_v53  ;;  %v2833_v61 = vmul.f32 1.442695, %v5814_v35 }
 0xfd8   :  { %v6675_v63 = vpop.f32.mrf.mxu1 }
 0xfd9   :  { %7179 = vpow2.f32 %v2833_v61  ;;  %v2808_v27 = vadd.f32 %v6675_v63, %v5807_v18 }
 0xfda   :  { %v2802_v26 = vpop.f32.mrf.mxu1 }
 0xfdb   :  { %v5817_v24 = vmul.f32 -1.702, %v2808_v27  ;;  %v2803_v29 = vadd.f32 %v5807_v18, %v2802_v26 }
 0xfdc   :  { %v6678_v31 = vpop.f32.mrf.mxu1 }
 0xfdd   :  { %v2839_v37 = vmul.f32 1.442695, %v5817_v24  ;;  %v5816_v28 = vmul.f32 -1.702, %v2803_v29  ;;  %v2818_v50 = vadd.f32 %v6678_v31, %v5807_v18 }
 0xfde   :  { %v2812_v46 = vpop.f32.mrf.mxu1 }
 0xfdf   :  { %7181 = vpow2.f32 %v2839_v37  ;;  %v2837_v34 = vmul.f32 1.442695, %v5816_v28  ;;  %v5819_v38 = vmul.f32 -1.702, %v2818_v50  ;;  %v2813_v42 = vadd.f32 %v5807_v18, %v2812_v46 }
 0xfe1   :  { %7183 = vpow2.f32 %v2837_v34  ;;  %v2843_v49 = vmul.f32 1.442695, %v5819_v38  ;;  %v5818_v1 = vmul.f32 -1.702, %v2813_v42 }
 0xfe3   :  { %7185 = vpow2.f32 %v2843_v49  ;;  %v2841_v47 = vmul.f32 1.442695, %v5818_v1 }
 0xfe4   :  { %v7178_v0 = vpop.eup %7177 }
 0xfe5   :  { %v2846_v40 = vadd.f32 1.0, %v7178_v0  ;;  %7187 = vpow2.f32 %v2841_v47 }
 0xfe6   :  { %v7180_v3 = vpop.eup %7179 }
 0xfe7   :  { %v2845_v2 = vadd.f32 1.0, %v7180_v3  ;;  %7189 = vrcp.f32 %v2846_v40 }
 0xfe9   :  { %7191 = vrcp.f32 %v2845_v2 }
 0xfec   :  { %v7182_v62 = vpop.eup %7181 }
 0xfed   :  { %v2848_v45 = vadd.f32 1.0, %v7182_v62 }
 0xfee   :  { %v7184_v4 = vpop.eup %7183 }
 0xfef   :  { %v2847_v9 = vadd.f32 1.0, %v7184_v4  ;;  %7193 = vrcp.f32 %v2848_v45 }
 0xff0   :  { %v7186_v5 = vpop.eup %7185 }
 0xff1   :  { %7195 = vrcp.f32 %v2847_v9  ;;  %v2850_v60 = vadd.f32 1.0, %v7186_v5 }
 0xff2   :  { %v7188_v11 = vpop.eup %7187 }
 0xff3   :  { %v2849_v6 = vadd.f32 1.0, %v7188_v11  ;;  %7197 = vrcp.f32 %v2850_v60 }
 0xff4   :  { %v7190_v55 = vpop.eup %7189 }
 0xff5   :  { %7199 = vrcp.f32 %v2849_v6  ;;  %v2864_v10 = vmul.f32 %v7190_v55, %v2798_v48 }
 0xff6   :  { %v7192_v12 = vpop.eup %7191 }
 0xff7   :  { %v2863_v7 = vmul.f32 %v7192_v12, %v2793_v19 }
 0xff9   :  { %6711 = vmatprep.mubr.f32.mxu0 %v2863_v7 }
 0xffa   :  { %6712 = vmatmul.mubr.f32.vlgmr.msra.gmra.mxu0 %v2864_v10 }
 0xffc   :  { %v7194_v21 = vpop.eup %7193 }
 0xffd   :  { %v2866_v56 = vmul.f32 %v7194_v21, %v2808_v27 }
 0xffe   :  { %v7196_v30 = vpop.eup %7195 }
 0xfff   :  { %v2865_v33 = vmul.f32 %v7196_v30, %v2803_v29  ;;  %v5826_v30 = vld [vmem:[%s9116_s2 + $0x98] sm:$0xff] }
0x1000   :  { %v7198_v57 = vpop.eup %7197  ;;  %6720 = vmatprep.subr.mxu1 %v5826_v30 }
0x1001   :  { %6714 = vmatprep.mubr.f32.mxu0 %v2865_v33  ;;  %v2868_v58 = vmul.f32 %v7198_v57, %v2818_v50  ;;  %v5848_v33 = vld [vmem:[%s9116_s2 + $0xd8] sm:$0xff]  ;;  %v5847_v57 = vld [vmem:[%s9116_s2 + $0xd0] sm:$0xff]  ;;  %6721 = vmatpush3.msra.mxu1 %v5826_v30 }
0x1002   :  { %v7200_v14 = vpop.eup %7199  ;;  %6715 = vmatmul.mubr.f32.gmra.mxu0 %v2866_v56  ;;  %v5825_v56 = vld [vmem:[%s9116_s2 + $0x90] sm:$0xff]  ;;  %6754 = vmatprep.subr.mxu0 %v5848_v33 }
0x1003   :  { %v2867_v36 = vmul.f32 %v7200_v14, %v2813_v42  ;;  %6755 = vmatpush3.msra.mxu0 %v5848_v33  ;;  %v5824_v14 = vld [vmem:[%s9116_s2 + $0x88] sm:$0xff]  ;;  %6722 = vmatprep.subr.mxu1 %v5825_v56 }
0x1004   :  { %6756 = vmatprep.subr.mxu0 %v5847_v57  ;;  %6723 = vmatpush3.msra.mxu1 %v5825_v56  ;;  %v8403_v33 = vld [vmem:[%s9114_s1 + $0xd] ss:$0 sm:$0xff] }
0x1005   :  { %6717 = vmatprep.mubr.f32.mxu0 %v2867_v36  ;;  %v5846_v36 = vld [vmem:[%s9116_s2 + $0xc8] sm:$0xff]  ;;  %6757 = vmatpush3.msra.mxu0 %v5847_v57 }
0x1006   :  { %6718 = vmatmul.mubr.f32.gmra.mxu0 %v2868_v58  ;;  %v5823_v58 = vld [vmem:[%s9116_s2 + $0x80] sm:$0xff]  ;;  %6724 = vmatprep.subr.mxu1 %v5824_v14 }
0x1007   :  { %6758 = vmatprep.subr.mxu0 %v5846_v36  ;;  %6725 = vmatpush3.msra.mxu1 %v5824_v14 }
0x1008   :  { %6759 = vmatpush3.msra.mxu0 %v5846_v36  ;;  %6726 = vmatprep.subr.mxu1 %v5823_v58 }
0x1009   :  { %6727 = vmatpush3.msra.mxu1 %v5823_v58 }
0x10ba   :  { %v6713_v59 = vpop.f32.mrf.mxu0 }
0x10bb   :  { %v2981_v39 = vadd.f32 %v6713_v59, %v8119_v41  ;;  %v5845_v59 = vld [vmem:[%s9116_s2 + $0xc0] sm:$0xff] }
0x10bc   :  { %v2951_v13 = vpop.f32.mrf.mxu0  ;;  %6760 = vmatprep.subr.mxu0 %v5845_v59 }
0x10bd   :  { %v8269_v16 = vadd.f32 %v5820_v15, %v2981_v39  ;;  %v2980_v43 = vadd.f32 %v2951_v13, %v8122_v22  ;;  %6761 = vmatpush3.msra.mxu0 %v5845_v59 }
0x10bf   :  { %v8272_v17 = vadd.f32 %v5820_v15, %v2980_v43  ;;  %v3002_v18 = vsel %vm157_vm1, %v8269_v16, 0.0 }
0x10c0   :  { %3003 = vadd.xlane.f32.xlu0 %v3002_v18 }
0x10c1   :  { %v2999_v20 = vsel %vm157_vm1, %v8272_v17, 0.0 }
0x10c2   :  { %v6716_v48 = vpop.f32.mrf.mxu0  ;;  %3000 = vadd.xlane.f32.xlu1 %v2999_v20 }
0x10c3   :  { %v2983_v51 = vadd.f32 %v6716_v48, %v8132_v23 }
0x10c4   :  { %v2961_v52 = vpop.f32.mrf.mxu0 }
0x10c5   :  { %v8279_v41 = vadd.f32 %v5820_v15, %v2983_v51  ;;  %v2982_v19 = vadd.f32 %v2961_v52, %v8130_v25 }
0x10c6   :  { %v6719_v53 = vpop.f32.mrf.mxu0 }
0x10c7   :  { %v8282_v22 = vadd.f32 %v5820_v15, %v2982_v19  ;;  %v2985_v35 = vadd.f32 %v6719_v53, %v8140_v44  ;;  %v3008_v61 = vsel %vm157_vm1, %v8279_v41, 0.0 }
0x10c8   :  { %3009 = vadd.xlane.f32.xlu0 %v3008_v61  ;;  %v2971_v63 = vpop.f32.mrf.mxu0 }
0x10c9   :  { %v8287_v27 = vadd.f32 %v5820_v15, %v2985_v35  ;;  %v2984_v26 = vadd.f32 %v2971_v63, %v8138_v32  ;;  %v3005_v23 = vsel %vm157_vm1, %v8282_v22, 0.0 }
0x10ca   :  { %3006 = vadd.xlane.f32.xlu1 %v3005_v23 }
0x10cb   :  { %v8292_v24 = vadd.f32 %v5820_v15, %v2984_v26  ;;  %v3014_v25 = vsel %vm157_vm1, %v8287_v27, 0.0  ;;  %v5837_v15 = vld [vmem:[%s9116_s2 + $0xb8] sm:$0xff] }
0x10cc   :  { %3015 = vadd.xlane.f32.xlu0 %v3014_v25  ;;  %6737 = vmatprep.subr.mxu1 %v5837_v15 }
0x10cd   :  { %v3011_v44 = vsel %vm157_vm1, %v8292_v24, 0.0 }
0x10ce   :  { %3012 = vadd.xlane.f32.xlu1 %v3011_v44 }
0x1149   :  { %v3004_v29 = vpop.xlane.xlu0 %3003 }
0x114a   :  { %v3018_v31 = vmul.f32 0.03125, %v3004_v29 }
0x114b   :  { %v3001_v37 = vpop.xlane.xlu1 %3000 }
0x114c   :  { %v8299_v28 = vsub.f32 %v8269_v16, %v3018_v31  ;;  %v3017_v32 = vmul.f32 0.03125, %v3001_v37 }
0x114e   :  { %v8302_v50 = vsub.f32 %v8272_v17, %v3017_v32  ;;  %v3030_v46 = vmul.f32 %v8299_v28, %v8299_v28  ;;  %v5821_v32 = vld [vmem:[%s9114_s1 + $0xb] ss:$0 sm:$0xff] }
0x1150   :  { %v3038_v34 = vsel %vm157_vm1, %v3030_v46, 0.0  ;;  %v3029_v38 = vmul.f32 %v8302_v50, %v8302_v50 }
0x1151   :  { %v3010_v42 = vpop.xlane.xlu0 %3009  ;;  %3039 = vadd.xlane.f32.xlu0 %v3038_v34 }
0x1152   :  { %v3020_v49 = vmul.f32 0.03125, %v3010_v42  ;;  %v3035_v1 = vsel %vm157_vm1, %v3029_v38, 0.0  ;;  %v5822_v42 = vld [vmem:[%s9114_s1 + $0xc] ss:$0 sm:$0xff] }
0x1153   :  { %v3007_v47 = vpop.xlane.xlu1 %3006  ;;  %3036 = vadd.xlane.f32.xlu1 %v3035_v1 }
0x1154   :  { %v8311_v0 = vsub.f32 %v8279_v41, %v3020_v49  ;;  %v3019_v40 = vmul.f32 0.03125, %v3007_v47 }
0x1155   :  { %v3016_v3 = vpop.xlane.xlu0 %3015 }
0x1156   :  { %v8314_v2 = vsub.f32 %v8282_v22, %v3019_v40  ;;  %v3022_v62 = vmul.f32 0.03125, %v3016_v3  ;;  %v3032_v45 = vmul.f32 %v8311_v0, %v8311_v0 }
0x1157   :  { %v3013_v4 = vpop.xlane.xlu1 %3012 }
0x1158   :  { %v8319_v9 = vsub.f32 %v8287_v27, %v3022_v62  ;;  %v3021_v5 = vmul.f32 0.03125, %v3013_v4  ;;  %v3044_v60 = vsel %vm157_vm1, %v3032_v45, 0.0  ;;  %v3031_v11 = vmul.f32 %v8314_v2, %v8314_v2  ;;  %v5835_v45 = vld [vmem:[%s9116_s2 + $0xa8] sm:$0xff] }
0x1159   :  { %3045 = vadd.xlane.f32.xlu0 %v3044_v60 }
0x115a   :  { %v8325_v6 = vsub.f32 %v8292_v24, %v3021_v5  ;;  %v3041_v55 = vsel %vm157_vm1, %v3031_v11, 0.0  ;;  %v3034_v12 = vmul.f32 %v8319_v9, %v8319_v9 }
0x115b   :  { %3042 = vadd.xlane.f32.xlu1 %v3041_v55 }
0x115c   :  { %v3050_v7 = vsel %vm157_vm1, %v3034_v12, 0.0  ;;  %v3033_v10 = vmul.f32 %v8325_v6, %v8325_v6 }
0x115d   :  { %3051 = vadd.xlane.f32.xlu0 %v3050_v7 }
0x115e   :  { %v3047_v21 = vsel %vm157_vm1, %v3033_v10, 0.0 }
0x115f   :  { %3048 = vadd.xlane.f32.xlu1 %v3047_v21 }
0x11da   :  { %v3040_v39 = vpop.xlane.xlu0 %3039 }
0x11db   :  { %v3054_v13 = vmul.f32 0.03125, %v3040_v39 }
0x11dc   :  { %v3037_v43 = vpop.xlane.xlu1 %3036 }
0x11dd   :  { %v3060_v18 = vadd.f32 1e-05, %v3054_v13  ;;  %v3053_v20 = vmul.f32 0.03125, %v3037_v43  ;;  %v5849_v13 = vld [vmem:[%s9114_s1 + $0xf] ss:$0 sm:$0xff] }
0x11df   :  { %7201 = vrsqrt.f32 %v3060_v18  ;;  %v3059_v48 = vadd.f32 1e-05, %v3053_v20 }
0x11e1   :  { %7203 = vrsqrt.f32 %v3059_v48 }
0x11e2   :  { %v3046_v51 = vpop.xlane.xlu0 %3045 }
0x11e3   :  { %v3056_v52 = vmul.f32 0.03125, %v3046_v51 }
0x11e4   :  { %v3043_v19 = vpop.xlane.xlu1 %3042 }
0x11e5   :  { %v3062_v53 = vadd.f32 1e-05, %v3056_v52  ;;  %v3055_v35 = vmul.f32 0.03125, %v3043_v19 }
0x11e6   :  { %v3052_v61 = vpop.xlane.xlu0 %3051 }
0x11e7   :  { %7205 = vrsqrt.f32 %v3062_v53  ;;  %v3061_v63 = vadd.f32 1e-05, %v3055_v35  ;;  %v3058_v26 = vmul.f32 0.03125, %v3052_v61 }
0x11e8   :  { %v3049_v23 = vpop.xlane.xlu1 %3048 }
0x11e9   :  { %7207 = vrsqrt.f32 %v3061_v63  ;;  %v3064_v25 = vadd.f32 1e-05, %v3058_v26  ;;  %v3057_v44 = vmul.f32 0.03125, %v3049_v23 }
0x11eb   :  { %7209 = vrsqrt.f32 %v3064_v25  ;;  %v3063_v29 = vadd.f32 1e-05, %v3057_v44  ;;  %v5838_v44 = vld [vmem:[%s9114_s1 + $0xe] ss:$0 sm:$0xff] }
0x11ec   :  { %v7202_v31 = vpop.eup %7201 }
0x11ed   :  { %v3072_v37 = vmul.f32 %v7202_v31, %v8299_v28  ;;  %7211 = vrsqrt.f32 %v3063_v29  ;;  %v5836_v28 = vld [vmem:[%s9116_s2 + $0xb0] sm:$0xff] }
0x11ee   :  { %v7204_v46 = vpop.eup %7203 }
0x11ef   :  { %v3071_v34 = vmul.f32 %v7204_v46, %v8302_v50  ;;  %v3082_v38 = vmul.f32 %v5821_v32, %v3072_v37 }
0x11f1   :  { %v3081_v49 = vmul.f32 %v5821_v32, %v3071_v34  ;;  %v3092_v40 = vadd.f32 %v5822_v42, %v3082_v38 }
0x11f3   :  { %v3091_v1 = vadd.f32 %v5822_v42, %v3081_v49 }
0x11f4   :  { %v7206_v47 = vpop.eup %7205 }
0x11f5   :  { %6728 = vmatprep.mubr.msk.f32.mxu1 %vm157_vm1, %v3091_v1  ;;  %6762 = vmatprep.mubr.msk.f32.mxu0 %vm157_vm1, %v3091_v1  ;;  %v3074_v3 = vmul.f32 %v7206_v47, %v8311_v0  ;;  %v5834_v0 = vld [vmem:[%s9116_s2 + $0xa0] sm:$0xff] }
0x11f6   :  { %v7208_v50 = vpop.eup %7207  ;;  %6729 = vmatmul.mubr.msk.f32.vlgmr.msra.gmra.mxu1 %vm157_vm1, %v3092_v40  ;;  %6763 = vmatmul.mubr.msk.f32.vlgmr.msra.gmra.mxu0 %vm157_vm1, %v3092_v40 }
0x11f7   :  { %6738 = vmatpush3.msra.mxu1 %v5837_v15  ;;  %v3073_v62 = vmul.f32 %v7208_v50, %v8314_v2  ;;  %v3084_v5 = vmul.f32 %v5821_v32, %v3074_v3 }
0x11f8   :  { %v7210_v4 = vpop.eup %7209  ;;  %6739 = vmatprep.subr.mxu1 %v5836_v28 }
0x11f9   :  { %v3083_v60 = vmul.f32 %v5821_v32, %v3073_v62  ;;  %6740 = vmatpush3.msra.mxu1 %v5836_v28  ;;  %v3076_v11 = vmul.f32 %v7210_v4, %v8319_v9  ;;  %v3094_v7 = vadd.f32 %v5822_v42, %v3084_v5 }
0x11fa   :  { %v7212_v55 = vpop.eup %7211  ;;  %6741 = vmatprep.subr.mxu1 %v5835_v45 }
0x11fb   :  { %v3093_v12 = vadd.f32 %v5822_v42, %v3083_v60  ;;  %v3075_v2 = vmul.f32 %v7212_v55, %v8325_v6  ;;  %6742 = vmatpush3.msra.mxu1 %v5835_v45  ;;  %v3086_v10 = vmul.f32 %v5821_v32, %v3076_v11 }
0x11fc   :  { %6743 = vmatprep.subr.mxu1 %v5834_v0 }
0x11fd   :  { %6731 = vmatprep.mubr.msk.f32.mxu1 %vm157_vm1, %v3093_v12  ;;  %6765 = vmatprep.mubr.msk.f32.mxu0 %vm157_vm1, %v3093_v12  ;;  %v3085_v21 = vmul.f32 %v5821_v32, %v3075_v2  ;;  %v3096_v30 = vadd.f32 %v5822_v42, %v3086_v10 }
0x11fe   :  { %6732 = vmatmul.mubr.msk.f32.gmra.mxu1 %vm157_vm1, %v3094_v7  ;;  %6766 = vmatmul.mubr.msk.f32.gmra.mxu0 %vm157_vm1, %v3094_v7 }
0x11ff   :  { %v3095_v9 = vadd.f32 %v5822_v42, %v3085_v21  ;;  %6744 = vmatpush3.msra.mxu1 %v5834_v0 }
0x1201   :  { %6734 = vmatprep.mubr.msk.f32.mxu1 %vm157_vm1, %v3095_v9  ;;  %6768 = vmatprep.mubr.msk.f32.mxu0 %vm157_vm1, %v3095_v9 }
0x1202   :  { %6735 = vmatmul.mubr.msk.f32.gmra.mxu1 %vm157_vm1, %v3096_v30  ;;  %6769 = vmatmul.mubr.msk.f32.gmra.mxu0 %vm157_vm1, %v3096_v30 }
0x1203   :  { %6745 = vmatprep.mubr.msk.f32.mxu1 %vm157_vm1, %v3091_v1 }
0x1206   :  { %6746 = vmatmul.mubr.msk.f32.vlgmr.msra.gmra.mxu1 %vm157_vm1, %v3092_v40 }
0x1207   :  { %6748 = vmatprep.mubr.msk.f32.mxu1 %vm157_vm1, %v3093_v12 }
0x120a   :  { %6749 = vmatmul.mubr.msk.f32.gmra.mxu1 %vm157_vm1, %v3094_v7 }
0x120b   :  { %6751 = vmatprep.mubr.msk.f32.mxu1 %vm157_vm1, %v3095_v9 }
0x120e   :  { %6752 = vmatmul.mubr.msk.f32.gmra.mxu1 %vm157_vm1, %v3096_v30 }
0x12b6   :  { %v6730_v6 = vpop.f32.mrf.mxu1  ;;  %v6764_v56 = vpop.f32.mrf.mxu0 }
0x12b7   :  { %v8427_v26 = vadd.f32 %v6764_v56, %v5849_v13  ;;  %v8479_v49 = vadd.f32 %v6730_v6, %v8403_v33 }
0x12b8   :  { %v3191_v57 = vpop.f32.mrf.mxu1  ;;  %v3401_v36 = vpop.f32.mrf.mxu0 }
0x12b9   :  { %v8406_v14 = vadd.f32 %v8403_v33, %v3191_v57  ;;  %v8431_v25 = vadd.f32 %v5849_v13, %v3401_v36 }
0x12bb   :  { %6783 = vmatprep.mubr.msk.f32.mxu1 %vm779_vm2, %v8406_v14 }
0x12be   :  { %v6733_v58 = vpop.f32.mrf.mxu1  ;;  %v6767_v59 = vpop.f32.mrf.mxu0 }
0x12bf   :  { %v8419_v53 = vadd.f32 %v6767_v59, %v5849_v13  ;;  %v8489_v47 = vadd.f32 %v6733_v58, %v8403_v33 }
0x12c0   :  { %v3201_v15 = vpop.f32.mrf.mxu1  ;;  %v3411_v39 = vpop.f32.mrf.mxu0 }
0x12c1   :  { %v8423_v61 = vadd.f32 %v5849_v13, %v3411_v39  ;;  %v8482_v1 = vadd.f32 %v8403_v33, %v3201_v15 }
0x12c2   :  { %v6736_v43 = vpop.f32.mrf.mxu1  ;;  %v6770_v18 = vpop.f32.mrf.mxu0 }
0x12c3   :  { %v8413_v20 = vadd.f32 %v6770_v18, %v5849_v13  ;;  %v8499_v28 = vadd.f32 %v6736_v43, %v8403_v33 }
0x12c4   :  { %v3211_v48 = vpop.f32.mrf.mxu1  ;;  %v3421_v51 = vpop.f32.mrf.mxu0 }
0x12c5   :  { %v8415_v52 = vadd.f32 %v5849_v13, %v3421_v51  ;;  %6792 = vmatprep.subr.mxu0 %v8413_v20  ;;  %v8492_v40 = vadd.f32 %v8403_v33, %v3211_v48 }
0x12c6   :  { %v6747_v19 = vpop.f32.mrf.mxu1  ;;  %6793 = vmatpush3.msra.mxu0 %v8413_v20 }
0x12c7   :  { %6794 = vmatprep.subr.mxu0 %v8415_v52  ;;  %v8464_v38 = vadd.f32 %v6747_v19, %v5838_v44 }
0x12c8   :  { %v3296_v35 = vpop.f32.mrf.mxu1  ;;  %6795 = vmatpush3.msra.mxu0 %v8415_v52 }
0x12c9   :  { %6796 = vmatprep.subr.mxu0 %v8419_v53  ;;  %v8470_v42 = vadd.f32 %v5838_v44, %v3296_v35 }
0x12ca   :  { %v6750_v63 = vpop.f32.mrf.mxu1  ;;  %6797 = vmatpush3.msra.mxu0 %v8419_v53 }
0x12cb   :  { %6798 = vmatprep.subr.mxu0 %v8423_v61  ;;  %v8452_v46 = vadd.f32 %v6750_v63, %v5838_v44 }
0x12cc   :  { %v3306_v23 = vpop.f32.mrf.mxu1  ;;  %6799 = vmatpush3.msra.mxu0 %v8423_v61 }
0x12cd   :  { %6800 = vmatprep.subr.mxu0 %v8427_v26  ;;  %v8458_v34 = vadd.f32 %v5838_v44, %v3306_v23 }
0x12ce   :  { %v6753_v29 = vpop.f32.mrf.mxu1  ;;  %6801 = vmatpush3.msra.mxu0 %v8427_v26 }
0x12cf   :  { %v8438_v31 = vadd.f32 %v6753_v29, %v5838_v44  ;;  %6802 = vmatprep.subr.mxu0 %v8431_v25 }
0x12d0   :  { %v3316_v37 = vpop.f32.mrf.mxu1  ;;  %6803 = vmatpush3.msra.mxu0 %v8431_v25 }
0x12d1   :  { %v8442_v32 = vadd.f32 %v5838_v44, %v3316_v37  ;;  %3767 = vrot.lane.b32.xlu1 %v8438_v31, %s7346_s21  ;;  %6771 = vmatprep.subr.msk.mxu1 %vm779_vm2, %v8438_v31 }
0x12d2   :  { %6772 = vmatpush3.xpose.msk.msra.mxu1 %vm779_vm2, %v8438_v31 }
0x12d3   :  { %6773 = vmatprep.subr.msk.mxu1 %vm779_vm2, %v8442_v32 }
0x12d6   :  { %6774 = vmatpush3.xpose.msk.msra.mxu1 %vm779_vm2, %v8442_v32 }
0x12d7   :  { %6775 = vmatprep.subr.msk.mxu1 %vm779_vm2, %v8452_v46 }
0x12da   :  { %6776 = vmatpush3.xpose.msk.msra.mxu1 %vm779_vm2, %v8452_v46 }
0x12db   :  { %6777 = vmatprep.subr.msk.mxu1 %vm779_vm2, %v8458_v34 }
0x12de   :  { %6778 = vmatpush3.xpose.msk.msra.mxu1 %vm779_vm2, %v8458_v34 }
0x12df   :  { %6779 = vmatprep.subr.msk.mxu1 %vm779_vm2, %v8464_v38 }
0x12e2   :  { %6780 = vmatpush3.xpose.msk.msra.mxu1 %vm779_vm2, %v8464_v38 }
0x12e3   :  { %6781 = vmatprep.subr.msk.mxu1 %vm779_vm2, %v8470_v42 }
0x12e6   :  { %6782 = vmatpush3.xpose.msk.msra.mxu1 %vm779_vm2, %v8470_v42 }
0x12e9   :  { %6784 = vmatmul.mubr.msk.f32.vlgmr.msra.gmra.mxu1 %vm779_vm2, %v8479_v49 }
0x12ea   :  { %6786 = vmatprep.mubr.msk.f32.mxu1 %vm779_vm2, %v8482_v1 }
0x12ed   :  { %6787 = vmatmul.mubr.msk.f32.gmra.mxu1 %vm779_vm2, %v8489_v47 }
0x12ee   :  { %6789 = vmatprep.mubr.msk.f32.mxu1 %vm779_vm2, %v8492_v40 }
0x12f1   :  { %6790 = vmatmul.mubr.msk.f32.gmra.mxu1 %vm779_vm2, %v8499_v28 }
0x1343   :  { %v8503_v3 = vpop.permute.xlu1 %3767 }
0x1344   :  { %6813 = vmatprep.subr.msk.mxu0 %vm779_vm2, %v8503_v3 }
0x13a9   :  { %v6785_v50 = vpop.f32.mrf.mxu1 }
0x13aa   :  { %v3543_v62 = vadd.f32 %v6785_v50, %v7689_v54 }
0x13ab   :  { %v3537_v45 = vpop.f32.mrf.mxu1 }
0x13ac   :  { %v3538_v4 = vadd.f32 %v3537_v45, %v7689_v54  ;;  %v3569_v5 = vsel %vm41_vm0, %v3543_v62, -inf }
0x13ad   :  { %3570 = vmax.xlane.f32.xlu0 %v3569_v5  ;;  %v6788_v60 = vpop.f32.mrf.mxu1 }
0x13ae   :  { %v3553_v11 = vadd.f32 %v6788_v60, %v7692_v8  ;;  %v3566_v0 = vsel %vm41_vm0, %v3538_v4, -inf }
0x13af   :  { %v3547_v55 = vpop.f32.mrf.mxu1  ;;  %3567 = vmax.xlane.f32.xlu1 %v3566_v0 }
0x13b0   :  { %v3548_v12 = vadd.f32 %v3547_v55, %v7689_v54  ;;  %v3575_v2 = vsel %vm41_vm0, %v3553_v11, -inf }
0x13b1   :  { %3576 = vmax.xlane.f32.xlu0 %v3575_v2  ;;  %v6791_v7 = vpop.f32.mrf.mxu1 }
0x13b2   :  { %v3563_v10 = vadd.f32 %v6791_v7, %v7692_v8  ;;  %v3572_v21 = vsel %vm41_vm0, %v3548_v12, -inf }
0x13b3   :  { %3573 = vmax.xlane.f32.xlu1 %v3572_v21  ;;  %v3557_v30 = vpop.f32.mrf.mxu1 }
0x13b4   :  { %v3581_v9 = vsel %vm41_vm0, %v3563_v10, -inf  ;;  %v3558_v6 = vadd.f32 %v3557_v30, %v7692_v8 }
0x13b5   :  { %3582 = vmax.xlane.f32.xlu0 %v3581_v9 }
0x13b6   :  { %v3578_v33 = vsel %vm41_vm0, %v3558_v6, -inf }
0x13c4   :  { %3763 = vrot.lane.b32.xlu1 %v8452_v46, %s7346_s21 }
0x13cb   :  { %3765 = vrot.lane.b32.xlu0 %v8442_v32, %s7346_s21 }
0x13e8   :  { %3579 = vmax.xlane.f32.xlu1 %v3578_v33 }
0x13f9   :  { %3761 = vrot.lane.b32.xlu1 %v8458_v34, %s7346_s21 }
0x1436   :  { %v3571_v56 = vpop.xlane.xlu0 %3570 }
0x1437   :  { %v3585_v57 = vsub.f32 %v3543_v62, %v3571_v56 }
0x1438   :  { %v3568_v36 = vpop.xlane.xlu1 %3567 }
0x1439   :  { %v3592_v58 = vmul.f32 1.442695, %v3585_v57  ;;  %v3584_v59 = vsub.f32 %v3538_v4, %v3568_v36 }
0x143a   :  { %v3577_v48 = vpop.xlane.xlu0 %3576 }
0x143b   :  { %7213 = vpow2.f32 %v3592_v58  ;;  %v3590_v15 = vmul.f32 1.442695, %v3584_v59  ;;  %v3587_v19 = vsub.f32 %v3553_v11, %v3577_v48 }
0x143c   :  { %v3574_v51 = vpop.xlane.xlu1 %3573 }
0x143d   :  { %7215 = vpow2.f32 %v3590_v15  ;;  %v3586_v63 = vsub.f32 %v3548_v12, %v3574_v51  ;;  %v3596_v23 = vmul.f32 1.442695, %v3587_v19 }
0x143e   :  { %v3583_v35 = vpop.xlane.xlu0 %3582 }
0x143f   :  { %v3589_v44 = vsub.f32 %v3563_v10, %v3583_v35  ;;  %v3594_v29 = vmul.f32 1.442695, %v3586_v63  ;;  %7217 = vpow2.f32 %v3596_v23 }
0x1440   :  { %v3764_v37 = vpop.permute.xlu1 %3763 }
0x1441   :  { %v3600_v50 = vmul.f32 1.442695, %v3589_v44  ;;  %7219 = vpow2.f32 %v3594_v29 }
0x1442   :  { %v3766_v10 = vpop.permute.xlu0 %3765 }
0x1443   :  { %7221 = vpow2.f32 %v3600_v50 }
0x1448   :  { %v7214_v39 = vpop.eup %7213 }
0x1449   :  { %v3605_v13 = vsel %vm41_vm0, %v7214_v39, 0.0 }
0x144a   :  { %v7216_v43 = vpop.eup %7215  ;;  %3606 = vadd.xlane.f32.xlu0 %v3605_v13 }
0x144b   :  { %v3602_v18 = vsel %vm41_vm0, %v7216_v43, 0.0 }
0x144c   :  { %3603 = vadd.xlane.f32.xlu1 %v3602_v18  ;;  %v7218_v5 = vpop.eup %7217 }
0x144d   :  { %v3611_v0 = vsel %vm41_vm0, %v7218_v5, 0.0 }
0x144e   :  { %v7220_v60 = vpop.eup %7219 }
0x144f   :  { %v3608_v11 = vsel %vm41_vm0, %v7220_v60, 0.0 }
0x1450   :  { %v7222_v55 = vpop.eup %7221 }
0x1451   :  { %v3617_v12 = vsel %vm41_vm0, %v7222_v55, 0.0 }
0x145d   :  { %3757 = vrot.lane.b32.xlu1 %v8470_v42, %s7346_s21 }
0x1460   :  { %3759 = vrot.lane.b32.xlu0 %v8464_v38, %s7346_s21 }
0x1471   :  { %v3580_v62 = vpop.xlane.xlu1 %3579 }
0x1472   :  { %v3588_v45 = vsub.f32 %v3558_v6, %v3580_v62  ;;  %v5856_v62 = vld [vmem:[%s9116_s2 + $0xe0] sm:$0xff] }
0x1474   :  { %v3598_v4 = vmul.f32 1.442695, %v3588_v45 }
0x1475   :  { %v3762_v21 = vpop.permute.xlu1 %3761 }
0x1476   :  { %7223 = vpow2.f32 %v3598_v4 }
0x147f   :  { %3612 = vadd.xlane.f32.xlu0 %v3611_v0 }
0x1481   :  { %3609 = vadd.xlane.f32.xlu1 %v3608_v11 }
0x1483   :  { %v7224_v2 = vpop.eup %7223  ;;  %3618 = vadd.xlane.f32.xlu0 %v3617_v12 }
0x1484   :  { %v3614_v7 = vsel %vm41_vm0, %v7224_v2, 0.0 }
0x1485   :  { %3615 = vadd.xlane.f32.xlu1 %v3614_v7 }
0x1496   :  { %3747 = vrot.lane.b32.xlu1 %v8479_v49, %s7346_s21 }
0x1499   :  { %3745 = vrot.lane.b32.xlu0 %v8406_v14, %s7346_s21 }
0x149a   :  { %3751 = vrot.lane.b32.xlu1 %v8489_v47, %s7346_s21 }
0x149d   :  { %3749 = vrot.lane.b32.xlu0 %v8482_v1, %s7346_s21 }
0x149e   :  { %3755 = vrot.lane.b32.xlu1 %v8499_v28, %s7346_s21 }
0x14a1   :  { %3753 = vrot.lane.b32.xlu0 %v8492_v40, %s7346_s21 }
0x14d3   :  { %v3607_v9 = vpop.xlane.xlu0 %3606 }
0x14d4   :  { %7225 = vrcp.f32 %v3607_v9 }
0x14d5   :  { %v3604_v30 = vpop.xlane.xlu1 %3603 }
0x14d6   :  { %7227 = vrcp.f32 %v3604_v30 }
0x14d7   :  { %v3760_v36 = vpop.permute.xlu0 %3759 }
0x14d9   :  { %v3758_v58 = vpop.permute.xlu1 %3757 }
0x14e1   :  { %v7226_v6 = vpop.eup %7225 }
0x14e2   :  { %v3627_v57 = vmul.f32 %v7226_v6, %v7214_v39 }
0x14e3   :  { %v7228_v33 = vpop.eup %7227 }
0x14e4   :  { %v3626_v56 = vmul.f32 %v7228_v33, %v7216_v43 }
0x14e6   :  { %6804 = vmatprep.mubr.msk.f32.mxu0 %vm41_vm0, %v3626_v56 }
0x14e7   :  { %6805 = vmatmul.mubr.msk.f32.vlgmr.msra.gmra.mxu0 %vm41_vm0, %v3627_v57 }
0x14e8   :  { %6814 = vmatpush3.xpose.msk.msra.mxu0 %vm779_vm2, %v8503_v3 }
0x14e9   :  { %6815 = vmatprep.subr.msk.mxu0 %vm779_vm2, %v3766_v10 }
0x14ec   :  { %6816 = vmatpush3.xpose.msk.msra.mxu0 %vm779_vm2, %v3766_v10 }
0x14ed   :  { %6817 = vmatprep.subr.msk.mxu0 %vm779_vm2, %v3764_v37 }
0x14f0   :  { %6818 = vmatpush3.xpose.msk.msra.mxu0 %vm779_vm2, %v3764_v37 }
0x14f1   :  { %6819 = vmatprep.subr.msk.mxu0 %vm779_vm2, %v3762_v21 }
0x14f4   :  { %6820 = vmatpush3.xpose.msk.msra.mxu0 %vm779_vm2, %v3762_v21 }
0x14f5   :  { %6821 = vmatprep.subr.msk.mxu0 %vm779_vm2, %v3760_v36 }
0x14f8   :  { %6822 = vmatpush3.xpose.msk.msra.mxu0 %vm779_vm2, %v3760_v36 }
0x14f9   :  { %6823 = vmatprep.subr.msk.mxu0 %vm779_vm2, %v3758_v58 }
0x14fc   :  { %6824 = vmatpush3.xpose.msk.msra.mxu0 %vm779_vm2, %v3758_v58 }
0x14fd   :  { %6866 = vmatprep.subr.mxu0 %v5856_v62 }
0x1508   :  { %v3613_v3 = vpop.xlane.xlu0 %3612 }
0x1509   :  { %7229 = vrcp.f32 %v3613_v3 }
0x150a   :  { %v3610_v59 = vpop.xlane.xlu1 %3609 }
0x150b   :  { %7231 = vrcp.f32 %v3610_v59 }
0x150c   :  { %v3619_v15 = vpop.xlane.xlu0 %3618 }
0x150d   :  { %7233 = vrcp.f32 %v3619_v15 }
0x150e   :  { %v3616_v39 = vpop.xlane.xlu1 %3615 }
0x150f   :  { %7235 = vrcp.f32 %v3616_v39 }
0x1510   :  { %v3746_v35 = vpop.permute.xlu0 %3745 }
0x1512   :  { %v3748_v44 = vpop.permute.xlu1 %3747 }
0x1514   :  { %v3750_v29 = vpop.permute.xlu0 %3749 }
0x1516   :  { %v7230_v13 = vpop.eup %7229  ;;  %v3752_v37 = vpop.permute.xlu1 %3751 }
0x1517   :  { %v3629_v48 = vmul.f32 %v7230_v13, %v7218_v5 }
0x1518   :  { %v7232_v43 = vpop.eup %7231  ;;  %v3754_v50 = vpop.permute.xlu0 %3753 }
0x1519   :  { %v3628_v18 = vmul.f32 %v7232_v43, %v7220_v60 }
0x151a   :  { %v7234_v51 = vpop.eup %7233  ;;  %v3756_v45 = vpop.permute.xlu1 %3755 }
0x151b   :  { %6807 = vmatprep.mubr.msk.f32.mxu0 %vm41_vm0, %v3628_v18  ;;  %v3631_v23 = vmul.f32 %v7234_v51, %v7222_v55 }
0x151c   :  { %v7236_v19 = vpop.eup %7235  ;;  %6808 = vmatmul.mubr.msk.f32.gmra.mxu0 %vm41_vm0, %v3629_v48 }
0x151d   :  { %v3630_v63 = vmul.f32 %v7236_v19, %v7224_v2 }
0x151f   :  { %6810 = vmatprep.mubr.msk.f32.mxu0 %vm41_vm0, %v3630_v63 }
0x1520   :  { %6811 = vmatmul.mubr.msk.f32.gmra.mxu0 %vm41_vm0, %v3631_v23 }
0x1521   :  { %6825 = vmatprep.mubr.msk.f32.mxu0 %vm779_vm2, %v3746_v35 }
0x1524   :  { %6826 = vmatmul.mubr.msk.f32.vlgmr.msra.gmra.mxu0 %vm779_vm2, %v3748_v44 }
0x1525   :  { %6828 = vmatprep.mubr.msk.f32.mxu0 %vm779_vm2, %v3750_v29  ;;  %6867 = vmatpush3.msra.mxu0 %v5856_v62 }
0x1528   :  { %6829 = vmatmul.mubr.msk.f32.gmra.mxu0 %vm779_vm2, %v3752_v37 }
0x1529   :  { %6831 = vmatprep.mubr.msk.f32.mxu0 %vm779_vm2, %v3754_v50 }
0x152c   :  { %6832 = vmatmul.mubr.msk.f32.gmra.mxu0 %vm779_vm2, %v3756_v45 }
0x15a7   :  { %v6806_v4 = vpop.f32.mrf.mxu0 }
0x15a9   :  { %v3716_v5 = vpop.f32.mrf.mxu0 }
0x15aa   :  { %6868 = vmatprep.mubr.msk.f32.mxu0 %vm779_vm2, %v3716_v5 }
0x15ab   :  { %6869 = vmatmul.mubr.msk.f32.vlgmr.msra.gmra.mxu0 %vm779_vm2, %v6806_v4 }
0x15dc   :  { %v6809_v60 = vpop.f32.mrf.mxu0 }
0x15de   :  { %v3726_v0 = vpop.f32.mrf.mxu0 }
0x15df   :  { %6871 = vmatprep.mubr.msk.f32.mxu0 %vm779_vm2, %v3726_v0 }
0x15e0   :  { %v6812_v55 = vpop.f32.mrf.mxu0  ;;  %6872 = vmatmul.mubr.msk.f32.gmra.mxu0 %vm779_vm2, %v6809_v60 }
0x15e2   :  { %v3736_v11 = vpop.f32.mrf.mxu0 }
0x15e3   :  { %6874 = vmatprep.mubr.msk.f32.mxu0 %vm779_vm2, %v3736_v11 }
0x15e4   :  { %v6827_v12 = vpop.f32.mrf.mxu0  ;;  %6875 = vmatmul.mubr.msk.f32.gmra.mxu0 %vm779_vm2, %v6812_v55 }
0x15e5   :  { %v3865_v2 = vadd.f32 %v6827_v12, %v7689_v54 }
0x15e6   :  { %v3859_v7 = vpop.f32.mrf.mxu0 }
0x15e7   :  { %v3860_v10 = vadd.f32 %v3859_v7, %v7689_v54  ;;  %v3891_v21 = vsel %vm41_vm0, %v3865_v2, -inf }
0x15e8   :  { %3892 = vmax.xlane.f32.xlu1 %v3891_v21  ;;  %v6830_v9 = vpop.f32.mrf.mxu0 }
0x15e9   :  { %v3875_v30 = vadd.f32 %v6830_v9, %v7692_v8  ;;  %v3888_v6 = vsel %vm41_vm0, %v3860_v10, -inf }
0x15ea   :  { %3889 = vmax.xlane.f32.xlu0 %v3888_v6  ;;  %v3869_v33 = vpop.f32.mrf.mxu0 }
0x15eb   :  { %v3870_v57 = vadd.f32 %v3869_v33, %v7689_v54  ;;  %v3897_v36 = vsel %vm41_vm0, %v3875_v30, -inf }
0x15ec   :  { %v6833_v56 = vpop.f32.mrf.mxu0 }
0x15ed   :  { %v3885_v59 = vadd.f32 %v6833_v56, %v7692_v8  ;;  %v3894_v15 = vsel %vm41_vm0, %v3870_v57, -inf }
0x15ee   :  { %3898 = vmax.xlane.f32.xlu0 %v3897_v36  ;;  %v3879_v58 = vpop.f32.mrf.mxu0 }
0x15ef   :  { %v3880_v3 = vadd.f32 %v3879_v58, %v7692_v8  ;;  %v3903_v13 = vsel %vm41_vm0, %v3885_v59, -inf }
0x15f1   :  { %v3900_v39 = vsel %vm41_vm0, %v3880_v3, -inf }
0x15f2   :  { %3895 = vmax.xlane.f32.xlu0 %v3894_v15  ;;  %3901 = vmax.xlane.f32.xlu1 %v3900_v39 }
0x15f6   :  { %3904 = vmax.xlane.f32.xlu0 %v3903_v13 }
0x1671   :  { %v3893_v43 = vpop.xlane.xlu1 %3892 }
0x1672   :  { %v3907_v18 = vsub.f32 %v3865_v2, %v3893_v43 }
0x1673   :  { %v3890_v48 = vpop.xlane.xlu0 %3889 }
0x1674   :  { %v3914_v51 = vmul.f32 1.442695, %v3907_v18  ;;  %v3906_v19 = vsub.f32 %v3860_v10, %v3890_v48 }
0x1676   :  { %7237 = vpow2.f32 %v3914_v51  ;;  %v3912_v35 = vmul.f32 1.442695, %v3906_v19 }
0x1677   :  { %v3899_v63 = vpop.xlane.xlu0 %3898 }
0x1678   :  { %7239 = vpow2.f32 %v3912_v35  ;;  %v3909_v23 = vsub.f32 %v3875_v30, %v3899_v63 }
0x167a   :  { %v3918_v44 = vmul.f32 1.442695, %v3909_v23 }
0x167b   :  { %v3896_v29 = vpop.xlane.xlu0 %3895  ;;  %v3902_v10 = vpop.xlane.xlu1 %3901 }
0x167c   :  { %7241 = vpow2.f32 %v3918_v44  ;;  %v3908_v37 = vsub.f32 %v3870_v57, %v3896_v29  ;;  %v3910_v21 = vsub.f32 %v3880_v3, %v3902_v10 }
0x167e   :  { %v3916_v50 = vmul.f32 1.442695, %v3908_v37  ;;  %v3920_v9 = vmul.f32 1.442695, %v3910_v21 }
0x167f   :  { %v3905_v12 = vpop.xlane.xlu0 %3904 }
0x1680   :  { %7243 = vpow2.f32 %v3916_v50  ;;  %v3911_v2 = vsub.f32 %v3885_v59, %v3905_v12  ;;  %v5857_v59 = vld [vmem:[%s9116_s2 + $0xe8] sm:$0xff] }
0x1682   :  { %v3922_v7 = vmul.f32 1.442695, %v3911_v2 }
0x1683   :  { %v8592_v62 = vpop.eup %7237 }
0x1684   :  { %v3927_v45 = vsel %vm41_vm0, %v8592_v62, 0.0  ;;  %7245 = vpow2.f32 %v3922_v7 }
0x1685   :  { %v8596_v4 = vpop.eup %7239  ;;  %3928 = vadd.xlane.f32.xlu0 %v3927_v45  ;;  %7247 = vpow2.f32 %v3920_v9 }
0x1686   :  { %v3924_v5 = vsel %vm41_vm0, %v8596_v4, 0.0 }
0x1687   :  { %3925 = vadd.xlane.f32.xlu1 %v3924_v5 }
0x1689   :  { %v8600_v60 = vpop.eup %7241 }
0x168a   :  { %v3933_v0 = vsel %vm41_vm0, %v8600_v60, 0.0 }
0x168b   :  { %3934 = vadd.xlane.f32.xlu0 %v3933_v0 }
0x168d   :  { %v8604_v55 = vpop.eup %7243 }
0x168e   :  { %v3930_v11 = vsel %vm41_vm0, %v8604_v55, 0.0 }
0x168f   :  { %3931 = vadd.xlane.f32.xlu1 %v3930_v11 }
0x1691   :  { %v8618_v30 = vpop.eup %7245 }
0x1692   :  { %v3939_v6 = vsel %vm41_vm0, %v8618_v30, 0.0  ;;  %v8622_v33 = vpop.eup %7247 }
0x1693   :  { %v3936_v56 = vsel %vm41_vm0, %v8622_v33, 0.0 }
0x16a0   :  { %3970 = vrot.lane.b32.xlu1 %v8413_v20, %s7346_s21 }
0x16a1   :  { %3968 = vrot.lane.b32.xlu0 %v8415_v52, %s7346_s21 }
0x16a5   :  { %3966 = vrot.lane.b32.xlu0 %v8419_v53, %s7346_s21 }
0x16a9   :  { %3964 = vrot.lane.b32.xlu0 %v8423_v61, %s7346_s21 }
0x16ad   :  { %3962 = vrot.lane.b32.xlu0 %v8427_v26, %s7346_s21 }
0x16c4   :  { %3940 = vadd.xlane.f32.xlu1 %v3939_v6 }
0x16cc   :  { %3937 = vadd.xlane.f32.xlu0 %v3936_v56 }
0x16d5   :  { %4333 = vrot.lane.b32.xlu1 %v8458_v34, %s7347_s24 }
0x16d9   :  { %4321 = vrot.lane.b32.xlu1 %v8482_v1, %s7347_s24 }
0x16dd   :  { %4325 = vrot.lane.b32.xlu1 %v8492_v40, %s7347_s24 }
0x16e1   :  { %4798 = vrot.lane.b32.xlu1 %v8438_v31, %s7348_s25 }
0x16e2   :  { %3960 = vrot.lane.b32.xlu0 %v8431_v25, %s7346_s21 }
0x16e5   :  { %4794 = vrot.lane.b32.xlu1 %v8452_v46, %s7348_s25 }
0x16e6   :  { %4339 = vrot.lane.b32.xlu0 %v8438_v31, %s7347_s24 }
0x16e9   :  { %4790 = vrot.lane.b32.xlu1 %v8464_v38, %s7348_s25 }
0x16ea   :  { %4337 = vrot.lane.b32.xlu0 %v8442_v32, %s7347_s24 }
0x16ed   :  { %4776 = vrot.lane.b32.xlu1 %v8406_v14, %s7348_s25 }
0x16ee   :  { %4335 = vrot.lane.b32.xlu0 %v8452_v46, %s7347_s24 }
0x16f1   :  { %4780 = vrot.lane.b32.xlu1 %v8482_v1, %s7348_s25 }
0x16f2   :  { %4331 = vrot.lane.b32.xlu0 %v8464_v38, %s7347_s24 }
0x16f5   :  { %4784 = vrot.lane.b32.xlu1 %v8492_v40, %s7348_s25 }
0x16f6   :  { %4329 = vrot.lane.b32.xlu0 %v8470_v42, %s7347_s24 }
0x16fa   :  { %4317 = vrot.lane.b32.xlu0 %v8406_v14, %s7347_s24 }
0x16fe   :  { %4319 = vrot.lane.b32.xlu0 %v8479_v49, %s7347_s24 }
0x1702   :  { %4323 = vrot.lane.b32.xlu0 %v8489_v47, %s7347_s24 }
0x1706   :  { %4327 = vrot.lane.b32.xlu0 %v8499_v28, %s7347_s24 }
0x170a   :  { %4796 = vrot.lane.b32.xlu0 %v8442_v32, %s7348_s25 }
0x170e   :  { %4792 = vrot.lane.b32.xlu0 %v8458_v34, %s7348_s25  ;;  %v3929_v31 = vpop.xlane.xlu0 %3928 }
0x1710   :  { %v3926_v46 = vpop.xlane.xlu1 %3925 }
0x1711   :  { %7249 = vrcp.f32 %v3926_v46 }
0x1712   :  { %4788 = vrot.lane.b32.xlu0 %v8470_v42, %s7348_s25  ;;  %7251 = vrcp.f32 %v3929_v31 }
0x1714   :  { %v3935_v14 = vpop.xlane.xlu0 %3934 }
0x1716   :  { %4778 = vrot.lane.b32.xlu0 %v8479_v49, %s7348_s25 }
0x1718   :  { %v3969_v38 = vpop.permute.xlu0 %3968  ;;  %v3932_v1 = vpop.xlane.xlu1 %3931 }
0x1719   :  { %7253 = vrcp.f32 %v3932_v1 }
0x171a   :  { %4782 = vrot.lane.b32.xlu0 %v8489_v47, %s7348_s25  ;;  %7255 = vrcp.f32 %v3935_v14 }
0x171c   :  { %v3967_v40 = vpop.permute.xlu0 %3966  ;;  %v3971_v32 = vpop.permute.xlu1 %3970 }
0x171d   :  { %6834 = vmatprep.subr.mxu1 %v3971_v32 }
0x171e   :  { %v7250_v57 = vpop.eup %7249  ;;  %4786 = vrot.lane.b32.xlu0 %v8499_v28, %s7348_s25  ;;  %6835 = vmatpush3.msra.mxu1 %v3971_v32 }
0x171f   :  { %6836 = vmatprep.subr.mxu1 %v3969_v38  ;;  %v3948_v34 = vmul.f32 %v7250_v57, %v8596_v4  ;;  %v7252_v36 = vpop.eup %7251 }
0x1720   :  { %v3965_v42 = vpop.permute.xlu0 %3964  ;;  %6837 = vmatpush3.msra.mxu1 %v3969_v38  ;;  %v3949_v15 = vmul.f32 %v7252_v36, %v8592_v62 }
0x1721   :  { %6838 = vmatprep.subr.mxu1 %v3967_v40  ;;  %6846 = vmatprep.mubr.msk.f32.mxu1 %vm41_vm0, %v3948_v34 }
0x1722   :  { %6839 = vmatpush3.msra.mxu1 %v3967_v40 }
0x1723   :  { %6840 = vmatprep.subr.mxu1 %v3965_v42 }
0x1724   :  { %v3963_v49 = vpop.permute.xlu0 %3962  ;;  %6841 = vmatpush3.msra.mxu1 %v3965_v42 }
0x1725   :  { %6842 = vmatprep.subr.mxu1 %v3963_v49 }
0x1726   :  { %6843 = vmatpush3.msra.mxu1 %v3963_v49  ;;  %v7254_v58 = vpop.eup %7253 }
0x1727   :  { %v7256_v39 = vpop.eup %7255  ;;  %v3950_v13 = vmul.f32 %v7254_v58, %v8604_v55 }
0x1728   :  { %v3951_v18 = vmul.f32 %v7256_v39, %v8600_v60 }
0x174d   :  { %v3941_v47 = vpop.xlane.xlu1 %3940 }
0x174e   :  { %7257 = vrcp.f32 %v3941_v47 }
0x1751   :  { %v4334_v37 = vpop.permute.xlu1 %4333 }
0x1755   :  { %v3938_v28 = vpop.xlane.xlu0 %3937  ;;  %v4322_v5 = vpop.permute.xlu1 %4321 }
0x1756   :  { %7259 = vrcp.f32 %v3938_v28 }
0x1759   :  { %v3961_v3 = vpop.permute.xlu0 %3960  ;;  %v4326_v11 = vpop.permute.xlu1 %4325 }
0x175a   :  { %6844 = vmatprep.subr.mxu1 %v3961_v3 }
0x175b   :  { %6845 = vmatpush3.msra.mxu1 %v3961_v3  ;;  %v7258_v48 = vpop.eup %7257 }
0x175c   :  { %6847 = vmatmul.mubr.msk.f32.vlgmr.msra.gmra.mxu1 %vm41_vm0, %v3949_v15  ;;  %6855 = vmatprep.subr.mxu1 %v5857_v59  ;;  %v3953_v35 = vmul.f32 %v7258_v48, %v8618_v30 }
0x175d   :  { %v4340_v43 = vpop.permute.xlu0 %4339  ;;  %6849 = vmatprep.mubr.msk.f32.mxu1 %vm41_vm0, %v3950_v13  ;;  %6856 = vmatpush3.msra.mxu1 %v5857_v59  ;;  %v4799_v7 = vpop.permute.xlu1 %4798 }
0x175e   :  { %6877 = vmatprep.subr.msk.mxu1 %vm779_vm2, %v4340_v43 }
0x1760   :  { %6850 = vmatmul.mubr.msk.f32.gmra.mxu1 %vm41_vm0, %v3951_v18 }
0x1761   :  { %v4338_v63 = vpop.permute.xlu0 %4337  ;;  %v4795_v21 = vpop.permute.xlu1 %4794 }
0x1763   :  { %v7260_v51 = vpop.eup %7259 }
0x1764   :  { %v3952_v19 = vmul.f32 %v7260_v51, %v8622_v33 }
0x1765   :  { %v4336_v23 = vpop.permute.xlu0 %4335  ;;  %v4791_v30 = vpop.permute.xlu1 %4790 }
0x1766   :  { %6852 = vmatprep.mubr.msk.f32.mxu1 %vm41_vm0, %v3952_v19 }
0x1767   :  { %6853 = vmatmul.mubr.msk.f32.gmra.mxu1 %vm41_vm0, %v3953_v35 }
0x1769   :  { %v4332_v44 = vpop.permute.xlu0 %4331  ;;  %v4777_v33 = vpop.permute.xlu1 %4776 }
0x176d   :  { %v4330_v29 = vpop.permute.xlu0 %4329  ;;  %v4781_v46 = vpop.permute.xlu1 %4780 }
0x1771   :  { %v4318_v4 = vpop.permute.xlu0 %4317  ;;  %v4785_v38 = vpop.permute.xlu1 %4784 }
0x1775   :  { %v4320_v0 = vpop.permute.xlu0 %4319 }
0x1779   :  { %v4324_v2 = vpop.permute.xlu0 %4323 }
0x177d   :  { %v4328_v10 = vpop.permute.xlu0 %4327 }
0x1781   :  { %v4797_v9 = vpop.permute.xlu0 %4796 }
0x1785   :  { %v4793_v6 = vpop.permute.xlu0 %4792 }
0x1789   :  { %v4789_v56 = vpop.permute.xlu0 %4788 }
0x178d   :  { %v4779_v31 = vpop.permute.xlu0 %4778 }
0x1791   :  { %v4783_v14 = vpop.permute.xlu0 %4782 }
0x1795   :  { %v4787_v1 = vpop.permute.xlu0 %4786 }
0x181c   :  { %v6848_v50 = vpop.f32.mrf.mxu1 }
0x181e   :  { %v4062_v62 = vpop.f32.mrf.mxu1 }
0x181f   :  { %6857 = vmatprep.mubr.msk.f32.mxu1 %vm779_vm2, %v4062_v62 }
0x1820   :  { %v6851_v45 = vpop.f32.mrf.mxu1  ;;  %6858 = vmatmul.mubr.msk.f32.vlgmr.msra.gmra.mxu1 %vm779_vm2, %v6848_v50 }
0x1821   :  { %6878 = vmatpush3.xpose.msk.msra.mxu1 %vm779_vm2, %v4340_v43 }
0x1822   :  { %6879 = vmatprep.subr.msk.mxu1 %vm779_vm2, %v4338_v63  ;;  %v4072_v60 = vpop.f32.mrf.mxu1 }
0x1823   :  { %6860 = vmatprep.mubr.msk.f32.mxu1 %vm779_vm2, %v4072_v60 }
0x1824   :  { %6861 = vmatmul.mubr.msk.f32.gmra.mxu1 %vm779_vm2, %v6851_v45 }
0x1825   :  { %6880 = vmatpush3.xpose.msk.msra.mxu1 %vm779_vm2, %v4338_v63 }
0x1826   :  { %6881 = vmatprep.subr.msk.mxu1 %vm779_vm2, %v4336_v23 }
0x1827   :  { %v6854_v55 = vpop.f32.mrf.mxu1 }
0x1829   :  { %6882 = vmatpush3.xpose.msk.msra.mxu1 %vm779_vm2, %v4336_v23  ;;  %v4082_v12 = vpop.f32.mrf.mxu1 }
0x182a   :  { %6883 = vmatprep.subr.msk.mxu1 %vm779_vm2, %v4334_v37  ;;  %6863 = vmatprep.mubr.msk.f32.mxu1 %vm779_vm2, %v4082_v12 }
0x182b   :  { %6864 = vmatmul.mubr.msk.f32.gmra.mxu1 %vm779_vm2, %v6854_v55 }
0x182c   :  { %6889 = vmatprep.mubr.msk.f32.mxu1 %vm779_vm2, %v4318_v4 }
0x182d   :  { %6884 = vmatpush3.xpose.msk.msra.mxu1 %vm779_vm2, %v4334_v37 }
0x182e   :  { %6885 = vmatprep.subr.msk.mxu1 %vm779_vm2, %v4332_v44 }
0x1831   :  { %6886 = vmatpush3.xpose.msk.msra.mxu1 %vm779_vm2, %v4332_v44 }
0x1832   :  { %6887 = vmatprep.subr.msk.mxu1 %vm779_vm2, %v4330_v29 }
0x1835   :  { %6888 = vmatpush3.xpose.msk.msra.mxu1 %vm779_vm2, %v4330_v29 }
0x1836   :  { %6930 = vmatprep.subr.msk.mxu1 %vm779_vm2, %v4799_v7 }
0x1838   :  { %6890 = vmatmul.mubr.msk.f32.vlgmr.msra.gmra.mxu1 %vm779_vm2, %v4320_v0 }
0x1839   :  { %6892 = vmatprep.mubr.msk.f32.mxu1 %vm779_vm2, %v4322_v5  ;;  %6931 = vmatpush3.xpose.msk.msra.mxu1 %vm779_vm2, %v4799_v7 }
0x183a   :  { %6932 = vmatprep.subr.msk.mxu1 %vm779_vm2, %v4797_v9 }
0x183c   :  { %6893 = vmatmul.mubr.msk.f32.gmra.mxu1 %vm779_vm2, %v4324_v2 }
0x183d   :  { %6895 = vmatprep.mubr.msk.f32.mxu1 %vm779_vm2, %v4326_v11  ;;  %6933 = vmatpush3.xpose.msk.msra.mxu1 %vm779_vm2, %v4797_v9 }
0x183e   :  { %6934 = vmatprep.subr.msk.mxu1 %vm779_vm2, %v4795_v21 }
0x1840   :  { %6896 = vmatmul.mubr.msk.f32.gmra.mxu1 %vm779_vm2, %v4328_v10 }
0x1841   :  { %6935 = vmatpush3.xpose.msk.msra.mxu1 %vm779_vm2, %v4795_v21  ;;  %6942 = vmatprep.mubr.msk.f32.mxu1 %vm779_vm2, %v4777_v33 }
0x1842   :  { %6936 = vmatprep.subr.msk.mxu1 %vm779_vm2, %v4793_v6 }
0x1845   :  { %6937 = vmatpush3.xpose.msk.msra.mxu1 %vm779_vm2, %v4793_v6 }
0x1846   :  { %6938 = vmatprep.subr.msk.mxu1 %vm779_vm2, %v4791_v30 }
0x1849   :  { %6939 = vmatpush3.xpose.msk.msra.mxu1 %vm779_vm2, %v4791_v30 }
0x184a   :  { %6940 = vmatprep.subr.msk.mxu1 %vm779_vm2, %v4789_v56 }
0x184d   :  { %6941 = vmatpush3.xpose.msk.msra.mxu1 %vm779_vm2, %v4789_v56 }
0x1850   :  { %6943 = vmatmul.mubr.msk.f32.vlgmr.msra.gmra.mxu1 %vm779_vm2, %v4779_v31 }
0x1851   :  { %6945 = vmatprep.mubr.msk.f32.mxu1 %vm779_vm2, %v4781_v46 }
0x1854   :  { %6946 = vmatmul.mubr.msk.f32.gmra.mxu1 %vm779_vm2, %v4783_v14 }
0x1855   :  { %6948 = vmatprep.mubr.msk.f32.mxu1 %vm779_vm2, %v4785_v38 }
0x1858   :  { %6949 = vmatmul.mubr.msk.f32.gmra.mxu1 %vm779_vm2, %v4787_v1 }
0x18e0   :  { %v8733_v40 = vpop.f32.mrf.mxu1 }
0x18e2   :  { %v8735_v32 = vpop.f32.mrf.mxu1 }
0x18e4   :  { %v8737_v57 = vpop.f32.mrf.mxu1 }
0x18e6   :  { %v8739_v34 = vpop.f32.mrf.mxu1 }
0x18eb   :  { %v8741_v42 = vpop.f32.mrf.mxu1 }
0x18ed   :  { %v8743_v49 = vpop.f32.mrf.mxu1 }
0x18f8   :  { %v6891_v47 = vpop.f32.mrf.mxu1 }
0x18f9   :  { %v4437_v28 = vadd.f32 %v6891_v47, %v7689_v54 }
0x18fa   :  { %v4431_v36 = vpop.f32.mrf.mxu1 }
0x18fb   :  { %v4432_v58 = vadd.f32 %v4431_v36, %v7689_v54  ;;  %v4463_v3 = vsel %vm41_vm0, %v4437_v28, -inf }
0x18fc   :  { %4464 = vmax.xlane.f32.xlu0 %v4463_v3  ;;  %v6894_v59 = vpop.f32.mrf.mxu1 }
0x18fd   :  { %v4447_v15 = vadd.f32 %v6894_v59, %v7692_v8  ;;  %v4460_v39 = vsel %vm41_vm0, %v4432_v58, -inf }
0x18fe   :  { %4461 = vmax.xlane.f32.xlu1 %v4460_v39  ;;  %v4441_v13 = vpop.f32.mrf.mxu1 }
0x18ff   :  { %v4442_v43 = vadd.f32 %v4441_v13, %v7689_v54  ;;  %v4469_v51 = vsel %vm41_vm0, %v4447_v15, -inf }
0x1900   :  { %v6897_v18 = vpop.f32.mrf.mxu1 }
0x1901   :  { %v4457_v48 = vadd.f32 %v6897_v18, %v7692_v8  ;;  %v4466_v19 = vsel %vm41_vm0, %v4442_v43, -inf }
0x1902   :  { %4470 = vmax.xlane.f32.xlu1 %v4469_v51  ;;  %4467 = vmax.xlane.f32.xlu0 %v4466_v19  ;;  %v4451_v35 = vpop.f32.mrf.mxu1 }
0x1903   :  { %v4452_v63 = vadd.f32 %v4451_v35, %v7692_v8  ;;  %v4475_v23 = vsel %vm41_vm0, %v4457_v48, -inf }
0x1905   :  { %v4472_v44 = vsel %vm41_vm0, %v4452_v63, -inf }
0x1906   :  { %4476 = vmax.xlane.f32.xlu1 %v4475_v23  ;;  %4473 = vmax.xlane.f32.xlu0 %v4472_v44 }
0x1910   :  { %v6944_v13 = vpop.f32.mrf.mxu1 }
0x1911   :  { %v8794_v51 = vadd.f32 %v6944_v13, %v7689_v54 }
0x1913   :  { %v4922_v23 = vsel %vm41_vm0, %v8794_v51, -inf }
0x1917   :  { %4534 = vrot.lane.b32.xlu1 %v8415_v52, %s7347_s24 }
0x191b   :  { %4532 = vrot.lane.b32.xlu1 %v8419_v53, %s7347_s24 }
0x191c   :  { %4536 = vrot.lane.b32.xlu0 %v8413_v20, %s7347_s24 }
0x1920   :  { %4530 = vrot.lane.b32.xlu0 %v8423_v61, %s7347_s24 }
0x1985   :  { %v4465_v29 = vpop.xlane.xlu0 %4464 }
0x1986   :  { %v4479_v37 = vsub.f32 %v4437_v28, %v4465_v29 }
0x1987   :  { %v4462_v50 = vpop.xlane.xlu1 %4461 }
0x1988   :  { %v4486_v62 = vmul.f32 1.442695, %v4479_v37  ;;  %v4478_v45 = vsub.f32 %v4432_v58, %v4462_v50 }
0x198a   :  { %7261 = vpow2.f32 %v4486_v62  ;;  %v4484_v4 = vmul.f32 1.442695, %v4478_v45 }
0x198b   :  { %v4468_v5 = vpop.xlane.xlu0 %4467  ;;  %v4471_v60 = vpop.xlane.xlu1 %4470 }
0x198c   :  { %7263 = vpow2.f32 %v4484_v4  ;;  %v4480_v0 = vsub.f32 %v4442_v43, %v4468_v5  ;;  %v4481_v55 = vsub.f32 %v4447_v15, %v4471_v60  ;;  %v4890_v43 = vpop.f32.mrf.mxu1 }
0x198d   :  { %v8797_v19 = vadd.f32 %v4890_v43, %v7689_v54 }
0x198e   :  { %v4488_v11 = vmul.f32 1.442695, %v4480_v0  ;;  %v4490_v12 = vmul.f32 1.442695, %v4481_v55  ;;  %v6947_v18 = vpop.f32.mrf.mxu1 }
0x198f   :  { %v4474_v2 = vpop.xlane.xlu0 %4473  ;;  %v4477_v7 = vpop.xlane.xlu1 %4476  ;;  %v8805_v44 = vadd.f32 %v6947_v18, %v7692_v8  ;;  %v4919_v37 = vsel %vm41_vm0, %v8797_v19, -inf }
0x1990   :  { %7265 = vpow2.f32 %v4488_v11  ;;  %v4482_v10 = vsub.f32 %v4452_v63, %v4474_v2  ;;  %v4483_v21 = vsub.f32 %v4457_v48, %v4477_v7  ;;  %v4900_v48 = vpop.f32.mrf.mxu1  ;;  %v5858_v7 = vld [vmem:[%s9116_s2 + $0xf0] sm:$0xff] }
0x1991   :  { %7267 = vpow2.f32 %v4490_v12  ;;  %v8800_v63 = vadd.f32 %v4900_v48, %v7689_v54  ;;  %v4928_v45 = vsel %vm41_vm0, %v8805_v44, -inf }
0x1992   :  { %v4492_v9 = vmul.f32 1.442695, %v4482_v10  ;;  %v4494_v30 = vmul.f32 1.442695, %v4483_v21  ;;  %v6950_v35 = vpop.f32.mrf.mxu1 }
0x1993   :  { %v4537_v6 = vpop.permute.xlu0 %4536  ;;  %v4535_v33 = vpop.permute.xlu1 %4534  ;;  %v4925_v62 = vsel %vm41_vm0, %v8800_v63, -inf  ;;  %v8815_v54 = vadd.f32 %v6950_v35, %v7692_v8 }
0x1994   :  { %7269 = vpow2.f32 %v4492_v9  ;;  %6898 = vmatprep.subr.mxu0 %v4537_v6  ;;  %v4910_v29 = vpop.f32.mrf.mxu1 }
0x1995   :  { %7271 = vpow2.f32 %v4494_v30  ;;  %6899 = vmatpush3.msra.mxu0 %v4537_v6  ;;  %v8810_v50 = vadd.f32 %v4910_v29, %v7692_v8  ;;  %v4934_v5 = vsel %vm41_vm0, %v8815_v54, -inf }
0x1996   :  { %6900 = vmatprep.subr.mxu0 %v4535_v33 }
0x1997   :  { %v8765_v56 = vpop.eup %7261  ;;  %6901 = vmatpush3.msra.mxu0 %v4535_v33  ;;  %v4533_v31 = vpop.permute.xlu1 %4532  ;;  %v4931_v4 = vsel %vm41_vm0, %v8810_v50, -inf }
0x1998   :  { %6902 = vmatprep.subr.mxu0 %v4533_v31  ;;  %v4499_v46 = vsel %vm41_vm0, %v8765_v56, 0.0  ;;  %v4531_v38 = vpop.permute.xlu0 %4530 }
0x1999   :  { %v8769_v14 = vpop.eup %7263  ;;  %4500 = vadd.xlane.f32.xlu1 %v4499_v46  ;;  %6903 = vmatpush3.msra.mxu0 %v4533_v31 }
0x199a   :  { %6904 = vmatprep.subr.mxu0 %v4531_v38  ;;  %v4496_v1 = vsel %vm41_vm0, %v8769_v14, 0.0 }
0x199b   :  { %4497 = vadd.xlane.f32.xlu0 %v4496_v1  ;;  %6905 = vmatpush3.msra.mxu0 %v4531_v38 }
0x199d   :  { %v8773_v47 = vpop.eup %7265 }
0x199e   :  { %v8775_v28 = vpop.eup %7267  ;;  %v4502_v36 = vsel %vm41_vm0, %v8773_v47, 0.0 }
0x199f   :  { %4503 = vadd.xlane.f32.xlu0 %v4502_v36  ;;  %v4505_v58 = vsel %vm41_vm0, %v8775_v28, 0.0 }
0x19a0   :  { %4506 = vadd.xlane.f32.xlu1 %v4505_v58 }
0x19a1   :  { %v8781_v3 = vpop.eup %7269 }
0x19a2   :  { %v8783_v59 = vpop.eup %7271  ;;  %v4508_v15 = vsel %vm41_vm0, %v8781_v3, 0.0 }
0x19a3   :  { %4509 = vadd.xlane.f32.xlu0 %v4508_v15  ;;  %v4511_v39 = vsel %vm41_vm0, %v8783_v59, 0.0 }
0x19a4   :  { %4512 = vadd.xlane.f32.xlu1 %v4511_v39 }
0x19b5   :  { %4528 = vrot.lane.b32.xlu1 %v8427_v26, %s7347_s24 }
0x19b9   :  { %4526 = vrot.lane.b32.xlu0 %v8431_v25, %s7347_s24 }
0x19d8   :  { %4923 = vmax.xlane.f32.xlu0 %v4922_v23 }
0x19d9   :  { %4920 = vmax.xlane.f32.xlu1 %v4919_v37 }
0x19dc   :  { %4926 = vmax.xlane.f32.xlu0 %v4925_v62 }
0x19dd   :  { %4929 = vmax.xlane.f32.xlu1 %v4928_v45 }
0x19e0   :  { %4932 = vmax.xlane.f32.xlu0 %v4931_v4 }
0x19e1   :  { %4935 = vmax.xlane.f32.xlu1 %v4934_v5 }
0x19f2   :  { %4993 = vrot.lane.b32.xlu1 %v8415_v52, %s7348_s25 }
0x19f6   :  { %4991 = vrot.lane.b32.xlu1 %v8419_v53, %s7348_s25  ;;  %4995 = vrot.lane.b32.xlu0 %v8413_v20, %s7348_s25 }
0x19fa   :  { %4989 = vrot.lane.b32.xlu0 %v8423_v61, %s7348_s25 }
0x1a22   :  { %v4501_v8 = vpop.xlane.xlu1 %4500 }
0x1a23   :  { %7273 = vrcp.f32 %v4501_v8 }
0x1a24   :  { %v4498_v60 = vpop.xlane.xlu0 %4497 }
0x1a25   :  { %7275 = vrcp.f32 %v4498_v60 }
0x1a28   :  { %v4504_v0 = vpop.xlane.xlu0 %4503 }
0x1a29   :  { %7277 = vrcp.f32 %v4504_v0  ;;  %v4507_v55 = vpop.xlane.xlu1 %4506  ;;  %v8880_v0 = vpop.f32.mrf.mxu0 }
0x1a2a   :  { %7279 = vrcp.f32 %v4507_v55 }
0x1a2b   :  { %v8882_v55 = vpop.f32.mrf.mxu0 }
0x1a2c   :  { %v4510_v11 = vpop.xlane.xlu0 %4509 }
0x1a2d   :  { %7281 = vrcp.f32 %v4510_v11  ;;  %v4513_v52 = vpop.xlane.xlu1 %4512  ;;  %v8884_v11 = vpop.f32.mrf.mxu0 }
0x1a2e   :  { %7283 = vrcp.f32 %v4513_v52 }
0x1a2f   :  { %v8886_v52 = vpop.f32.mrf.mxu0 }
0x1a30   :  { %v7274_v12 = vpop.eup %7273  ;;  %v4527_v20 = vpop.permute.xlu0 %4526 }
0x1a31   :  { %v4529_v53 = vpop.permute.xlu1 %4528  ;;  %v4521_v10 = vmul.f32 %v7274_v12, %v8765_v56  ;;  %v8888_v12 = vpop.f32.mrf.mxu0 }
0x1a32   :  { %v7276_v2 = vpop.eup %7275  ;;  %6906 = vmatprep.subr.mxu0 %v4529_v53 }
0x1a33   :  { %6907 = vmatpush3.msra.mxu0 %v4529_v53  ;;  %v4520_v61 = vmul.f32 %v7276_v2, %v8769_v14  ;;  %v8890_v53 = vpop.f32.mrf.mxu0 }
0x1a34   :  { %6908 = vmatprep.subr.mxu0 %v4527_v20 }
0x1a35   :  { %6909 = vmatpush3.msra.mxu0 %v4527_v20  ;;  %6910 = vmatprep.mubr.msk.f32.mxu0 %vm41_vm0, %v4520_v61 }
0x1a36   :  { %v7278_v21 = vpop.eup %7277  ;;  %6911 = vmatmul.mubr.msk.f32.vlgmr.msra.gmra.mxu0 %vm41_vm0, %v4521_v10  ;;  %6919 = vmatprep.subr.mxu0 %v5858_v7 }
0x1a37   :  { %v7280_v9 = vpop.eup %7279  ;;  %v4522_v30 = vmul.f32 %v7278_v21, %v8773_v47  ;;  %6920 = vmatpush3.msra.mxu0 %v5858_v7 }
0x1a38   :  { %v4523_v6 = vmul.f32 %v7280_v9, %v8775_v28 }
0x1a39   :  { %6913 = vmatprep.mubr.msk.f32.mxu0 %vm41_vm0, %v4522_v30 }
0x1a3a   :  { %v7282_v33 = vpop.eup %7281  ;;  %6914 = vmatmul.mubr.msk.f32.gmra.mxu0 %vm41_vm0, %v4523_v6 }
0x1a3b   :  { %v7284_v56 = vpop.eup %7283  ;;  %v4524_v31 = vmul.f32 %v7282_v33, %v8781_v3 }
0x1a3c   :  { %v4525_v46 = vmul.f32 %v7284_v56, %v8783_v59 }
0x1a3d   :  { %6916 = vmatprep.mubr.msk.f32.mxu0 %vm41_vm0, %v4524_v31 }
0x1a3e   :  { %6917 = vmatmul.mubr.msk.f32.gmra.mxu0 %vm41_vm0, %v4525_v46 }
0x1a61   :  { %v4924_v14 = vpop.xlane.xlu0 %4923 }
0x1a62   :  { %v4938_v38 = vsub.f32 %v8794_v51, %v4924_v14  ;;  %v4921_v1 = vpop.xlane.xlu1 %4920 }
0x1a63   :  { %v4937_v47 = vsub.f32 %v8797_v19, %v4921_v1 }
0x1a64   :  { %v4945_v28 = vmul.f32 1.442695, %v4938_v38 }
0x1a65   :  { %v4943_v36 = vmul.f32 1.442695, %v4937_v47  ;;  %v4927_v58 = vpop.xlane.xlu0 %4926 }
0x1a66   :  { %7285 = vpow2.f32 %v4945_v28  ;;  %v4939_v15 = vsub.f32 %v8800_v63, %v4927_v58  ;;  %v4930_v39 = vpop.xlane.xlu1 %4929 }
0x1a67   :  { %7287 = vpow2.f32 %v4943_v36  ;;  %v4940_v3 = vsub.f32 %v8805_v44, %v4930_v39 }
0x1a68   :  { %v4947_v59 = vmul.f32 1.442695, %v4939_v15 }
0x1a69   :  { %v4949_v13 = vmul.f32 1.442695, %v4940_v3  ;;  %v4933_v43 = vpop.xlane.xlu0 %4932 }
0x1a6a   :  { %7289 = vpow2.f32 %v4947_v59  ;;  %v4941_v18 = vsub.f32 %v8810_v50, %v4933_v43  ;;  %v4936_v48 = vpop.xlane.xlu1 %4935 }
0x1a6b   :  { %7291 = vpow2.f32 %v4949_v13  ;;  %v4942_v51 = vsub.f32 %v8815_v54, %v4936_v48  ;;  %v5859_v48 = vld [vmem:[%s9116_s2 + $0xf8] sm:$0xff] }
0x1a6c   :  { %v4951_v19 = vmul.f32 1.442695, %v4941_v18 }
0x1a6d   :  { %v4953_v35 = vmul.f32 1.442695, %v4942_v51  ;;  %v4996_v23 = vpop.permute.xlu0 %4995  ;;  %v4294_v51 = vadd.f32 %v8880_v0, %v8733_v40 }
0x1a6e   :  { %7293 = vpow2.f32 %v4951_v19  ;;  %6951 = vmatprep.subr.mxu0 %v4996_v23  ;;  %v4994_v2 = vpop.permute.xlu1 %4993 }
0x1a6f   :  { %7295 = vpow2.f32 %v4953_v35  ;;  %v4289_v35 = vadd.f32 %v8882_v55, %v8735_v32  ;;  %v4309_v32 = vadd.f32 %v8890_v53, %v8743_v49 }
0x1a73   :  { %v8852_v63 = vpop.eup %7285 }
0x1a74   :  { %v8854_v29 = vpop.eup %7287  ;;  %v4958_v44 = vsel %vm41_vm0, %v8852_v63, 0.0 }
0x1a75   :  { %4959 = vadd.xlane.f32.xlu1 %v4958_v44  ;;  %v4955_v37 = vsel %vm41_vm0, %v8854_v29, 0.0 }
0x1a76   :  { %4956 = vadd.xlane.f32.xlu0 %v4955_v37 }
0x1a77   :  { %v8860_v50 = vpop.eup %7289 }
0x1a78   :  { %v8862_v62 = vpop.eup %7291  ;;  %v4961_v54 = vsel %vm41_vm0, %v8860_v50, 0.0 }
0x1a79   :  { %v4964_v45 = vsel %vm41_vm0, %v8862_v62, 0.0 }
0x1a7a   :  { %4962 = vadd.xlane.f32.xlu0 %v4961_v54  ;;  %4965 = vadd.xlane.f32.xlu1 %v4964_v45  ;;  %v4314_v45 = vadd.f32 %v8888_v12, %v8741_v42  ;;  %v5956_v12 = vld [vmem:[%s9114_s1 + $0x10] ss:$0 sm:$0xff] }
0x1a7b   :  { %v8868_v4 = vpop.eup %7293 }
0x1a7c   :  { %v8870_v5 = vpop.eup %7295  ;;  %v4967_v8 = vsel %vm41_vm0, %v8868_v4, 0.0 }
0x1a7d   :  { %v4970_v60 = vsel %vm41_vm0, %v8870_v5, 0.0 }
0x1a7e   :  { %4968 = vadd.xlane.f32.xlu0 %v4967_v8  ;;  %4971 = vadd.xlane.f32.xlu1 %v4970_v60 }
0x1a8f   :  { %4987 = vrot.lane.b32.xlu1 %v8427_v26, %s7348_s25  ;;  %v4992_v26 = vpop.permute.xlu1 %4991 }
0x1a94   :  { %4985 = vrot.lane.b32.xlu0 %v8431_v25, %s7348_s25  ;;  %v4990_v25 = vpop.permute.xlu0 %4989 }
0x1af6   :  { %v6912_v20 = vpop.f32.mrf.mxu0 }
0x1af8   :  { %v4628_v61 = vpop.f32.mrf.mxu0 }
0x1af9   :  { %6921 = vmatprep.mubr.msk.f32.mxu0 %vm779_vm2, %v4628_v61 }
0x1afa   :  { %v6915_v7 = vpop.f32.mrf.mxu0  ;;  %6922 = vmatmul.mubr.msk.f32.vlgmr.msra.gmra.mxu0 %vm779_vm2, %v6912_v20 }
0x1afb   :  { %6952 = vmatpush3.msra.mxu0 %v4996_v23 }
0x1afc   :  { %6953 = vmatprep.subr.mxu0 %v4994_v2  ;;  %v4638_v10 = vpop.f32.mrf.mxu0 }
0x1afd   :  { %6954 = vmatpush3.msra.mxu0 %v4994_v2  ;;  %6924 = vmatprep.mubr.msk.f32.mxu0 %vm779_vm2, %v4638_v10 }
0x1afe   :  { %6955 = vmatprep.subr.mxu0 %v4992_v26  ;;  %v6918_v21 = vpop.f32.mrf.mxu0  ;;  %6925 = vmatmul.mubr.msk.f32.gmra.mxu0 %vm779_vm2, %v6915_v7  ;;  %v4960_v9 = vpop.xlane.xlu1 %4959 }
0x1aff   :  { %v4957_v30 = vpop.xlane.xlu0 %4956  ;;  %6956 = vmatpush3.msra.mxu0 %v4992_v26  ;;  %7297 = vrcp.f32 %v4960_v9 }
0x1b00   :  { %7299 = vrcp.f32 %v4957_v30  ;;  %6957 = vmatprep.subr.mxu0 %v4990_v25  ;;  %v4648_v6 = vpop.f32.mrf.mxu0 }
0x1b01   :  { %6958 = vmatpush3.msra.mxu0 %v4990_v25  ;;  %6927 = vmatprep.mubr.msk.f32.mxu0 %vm779_vm2, %v4648_v6 }
0x1b02   :  { %6928 = vmatmul.mubr.msk.f32.gmra.mxu0 %vm779_vm2, %v6918_v21 }
0x1b03   :  { %v4963_v33 = vpop.xlane.xlu0 %4962  ;;  %v4966_v56 = vpop.xlane.xlu1 %4965 }
0x1b04   :  { %7301 = vrcp.f32 %v4963_v33 }
0x1b05   :  { %7303 = vrcp.f32 %v4966_v56 }
0x1b07   :  { %v4969_v31 = vpop.xlane.xlu0 %4968  ;;  %v4972_v46 = vpop.xlane.xlu1 %4971 }
0x1b08   :  { %7305 = vrcp.f32 %v4969_v31 }
0x1b09   :  { %7307 = vrcp.f32 %v4972_v46 }
0x1b0b   :  { %v4988_v14 = vpop.permute.xlu1 %4987  ;;  %v4986_v28 = vpop.permute.xlu0 %4985 }
0x1b0c   :  { %v7298_v38 = vpop.eup %7297  ;;  %6959 = vmatprep.subr.mxu0 %v4988_v14 }
0x1b0d   :  { %v7300_v1 = vpop.eup %7299  ;;  %v4980_v47 = vmul.f32 %v7298_v38, %v8852_v63  ;;  %6960 = vmatpush3.msra.mxu0 %v4988_v14 }
0x1b0e   :  { %6961 = vmatprep.subr.mxu0 %v4986_v28  ;;  %v4979_v36 = vmul.f32 %v7300_v1, %v8854_v29  ;;  %v4304_v29 = vadd.f32 %v8884_v11, %v8737_v57 }
0x1b0f   :  { %6962 = vmatpush3.msra.mxu0 %v4986_v28 }
0x1b10   :  { %6963 = vmatprep.mubr.msk.f32.mxu0 %vm41_vm0, %v4979_v36  ;;  %6972 = vmatprep.subr.mxu0 %v5859_v48 }
0x1b11   :  { %v7302_v58 = vpop.eup %7301  ;;  %6964 = vmatmul.mubr.msk.f32.vlgmr.msra.gmra.mxu0 %vm41_vm0, %v4980_v47 }
0x1b12   :  { %v7304_v15 = vpop.eup %7303  ;;  %v4981_v39 = vmul.f32 %v7302_v58, %v8860_v50  ;;  %6973 = vmatpush3.msra.mxu0 %v5859_v48  ;;  %v4299_v50 = vadd.f32 %v8886_v52, %v8739_v34 }
0x1b13   :  { %v4982_v3 = vmul.f32 %v7304_v15, %v8862_v62 }
0x1b14   :  { %6966 = vmatprep.mubr.msk.f32.mxu0 %vm41_vm0, %v4981_v39 }
0x1b15   :  { %v7306_v59 = vpop.eup %7305  ;;  %6967 = vmatmul.mubr.msk.f32.gmra.mxu0 %vm41_vm0, %v4982_v3 }
0x1b16   :  { %v7308_v13 = vpop.eup %7307  ;;  %v4983_v43 = vmul.f32 %v7306_v59, %v8868_v4 }
0x1b17   :  { %v4984_v18 = vmul.f32 %v7308_v13, %v8870_v5 }
0x1b18   :  { %6969 = vmatprep.mubr.msk.f32.mxu0 %vm41_vm0, %v4983_v43 }
0x1b19   :  { %6970 = vmatmul.mubr.msk.f32.gmra.mxu0 %vm41_vm0, %v4984_v18 }
0x1bba   :  { %v6923_v19 = vpop.f32.mrf.mxu0 }
0x1bbb   :  { %v4771_v23 = vadd.f32 %v6923_v19, %v4294_v51 }
0x1bbc   :  { %v4741_v63 = vpop.f32.mrf.mxu0 }
0x1bbd   :  { %v4770_v44 = vadd.f32 %v4741_v63, %v4289_v35 }
0x1bbe   :  { %v6926_v37 = vpop.f32.mrf.mxu0 }
0x1bbf   :  { %v4773_v62 = vadd.f32 %v6926_v37, %v4304_v29 }
0x1bc0   :  { %v4751_v54 = vpop.f32.mrf.mxu0 }
0x1bc1   :  { %v4772_v40 = vadd.f32 %v4751_v54, %v4299_v50 }
0x1bc2   :  { %v6929_v4 = vpop.f32.mrf.mxu0 }
0x1bc3   :  { %v4775_v5 = vadd.f32 %v6929_v4, %v4314_v45 }
0x1bc4   :  { %v4761_v8 = vpop.f32.mrf.mxu0 }
0x1bc5   :  { %v4774_v60 = vadd.f32 %v4761_v8, %v4309_v32 }
0x1bd1   :  { %v6965_v0 = vpop.f32.mrf.mxu0 }
0x1bd3   :  { %v5087_v57 = vpop.f32.mrf.mxu0 }
0x1bd4   :  { %6974 = vmatprep.mubr.msk.f32.mxu0 %vm779_vm2, %v5087_v57 }
0x1bd5   :  { %v6968_v55 = vpop.f32.mrf.mxu0  ;;  %6975 = vmatmul.mubr.msk.f32.vlgmr.msra.gmra.mxu0 %vm779_vm2, %v6965_v0 }
0x1bd7   :  { %v5097_v34 = vpop.f32.mrf.mxu0 }
0x1bd8   :  { %6977 = vmatprep.mubr.msk.f32.mxu0 %vm779_vm2, %v5097_v34  ;;  %v5962_v34 = vld [vmem:[%s9117_s3 + $0x38] sm:$0xff] }
0x1bd9   :  { %v6971_v11 = vpop.f32.mrf.mxu0  ;;  %6978 = vmatmul.mubr.msk.f32.gmra.mxu0 %vm779_vm2, %v6968_v55  ;;  %6983 = vmatprep.subr.mxu1 %v5962_v34 }
0x1bda   :  { %6984 = vmatpush3.msra.mxu1 %v5962_v34  ;;  %v5982_v34 = vld [vmem:[%s9118_s5 + $0xa8] sm:$0xff] }
0x1bdb   :  { %v5107_v42 = vpop.f32.mrf.mxu0 }
0x1bdc   :  { %6980 = vmatprep.mubr.msk.f32.mxu0 %vm779_vm2, %v5107_v42  ;;  %v5960_v42 = vld [vmem:[%s9117_s3 + $0x28] sm:$0xff] }
0x1bdd   :  { %6981 = vmatmul.mubr.msk.f32.gmra.mxu0 %vm779_vm2, %v6971_v11  ;;  %v5961_v11 = vld [vmem:[%s9117_s3 + $0x30] sm:$0xff] }
0x1bde   :  { %6985 = vmatprep.subr.mxu1 %v5961_v11 }
0x1bdf   :  { %6986 = vmatpush3.msra.mxu1 %v5961_v11  ;;  %v5981_v11 = vld [vmem:[%s9118_s5 + $0xa0] sm:$0xff] }
0x1be0   :  { %6987 = vmatprep.subr.mxu1 %v5960_v42 }
0x1be1   :  { %6988 = vmatpush3.msra.mxu1 %v5960_v42  ;;  %v5980_v42 = vld [vmem:[%s9118_s5 + $0x98] sm:$0xff] }
0x1c95   :  { %v6976_v49 = vpop.f32.mrf.mxu0 }
0x1c96   :  { %v5230_v52 = vadd.f32 %v6976_v49, %v4771_v23  ;;  %v5959_v49 = vld [vmem:[%s9117_s3 + $0x20] sm:$0xff] }
0x1c97   :  { %v5200_v53 = vpop.f32.mrf.mxu0  ;;  %6989 = vmatprep.subr.mxu1 %v5959_v49 }
0x1c98   :  { %v5236_v2 = vadd.f32 %v5230_v52, %v8269_v16  ;;  %v5229_v20 = vadd.f32 %v5200_v53, %v4770_v44  ;;  %6990 = vmatpush3.msra.mxu1 %v5959_v49  ;;  %v5979_v49 = vld [vmem:[%s9118_s5 + $0x90] sm:$0xff] }
0x1c99   :  { %v6979_v61 = vpop.f32.mrf.mxu0 }
0x1c9a   :  { %v8935_v26 = vadd.f32 %v5956_v12, %v5236_v2  ;;  %v5235_v7 = vadd.f32 %v5229_v20, %v8272_v17  ;;  %v5232_v25 = vadd.f32 %v6979_v61, %v4773_v62 }
0x1c9b   :  { %v5210_v10 = vpop.f32.mrf.mxu0 }
0x1c9c   :  { %v8938_v21 = vadd.f32 %v5956_v12, %v5235_v7  ;;  %v5238_v9 = vadd.f32 %v5232_v25, %v8279_v41  ;;  %v5231_v30 = vadd.f32 %v5210_v10, %v4772_v40  ;;  %v5257_v6 = vsel %vm157_vm1, %v8935_v26, 0.0 }
0x1c9d   :  { %5258 = vadd.xlane.f32.xlu0 %v5257_v6  ;;  %v6982_v33 = vpop.f32.mrf.mxu0 }
0x1c9e   :  { %v8943_v56 = vadd.f32 %v5956_v12, %v5238_v9  ;;  %v5237_v16 = vadd.f32 %v5231_v30, %v8282_v22  ;;  %v5234_v31 = vadd.f32 %v6982_v33, %v4775_v5  ;;  %v5254_v17 = vsel %vm157_vm1, %v8938_v21, 0.0 }
0x1c9f   :  { %5255 = vadd.xlane.f32.xlu1 %v5254_v17  ;;  %v5220_v46 = vpop.f32.mrf.mxu0 }
0x1ca0   :  { %v8948_v14 = vadd.f32 %v5956_v12, %v5237_v16  ;;  %v5240_v41 = vadd.f32 %v5234_v31, %v8287_v27  ;;  %v5233_v38 = vadd.f32 %v5220_v46, %v4774_v60  ;;  %v5263_v28 = vsel %vm157_vm1, %v8943_v56, 0.0 }
0x1ca2   :  { %v8951_v1 = vadd.f32 %v5956_v12, %v5240_v41  ;;  %v5239_v47 = vadd.f32 %v5233_v38, %v8292_v24  ;;  %v5260_v22 = vsel %vm157_vm1, %v8948_v14, 0.0 }
0x1ca3   :  { %5264 = vadd.xlane.f32.xlu1 %v5263_v28  ;;  %5261 = vadd.xlane.f32.xlu0 %v5260_v22 }
0x1ca4   :  { %v8958_v36 = vadd.f32 %v5956_v12, %v5239_v47  ;;  %v5269_v58 = vsel %vm157_vm1, %v8951_v1, 0.0  ;;  %v5957_v47 = vld [vmem:[%s9114_s1 + $0x11] ss:$0 sm:$0xff] }
0x1ca6   :  { %v5266_v27 = vsel %vm157_vm1, %v8958_v36, 0.0 }
0x1ca7   :  { %5270 = vadd.xlane.f32.xlu1 %v5269_v58  ;;  %5267 = vadd.xlane.f32.xlu0 %v5266_v27 }
0x1d26   :  { %v5259_v15 = vpop.xlane.xlu0 %5258 }
0x1d27   :  { %v5273_v24 = vmul.f32 0.03125, %v5259_v15  ;;  %v5958_v15 = vld [vmem:[%s9114_s1 + $0x12] ss:$0 sm:$0xff] }
0x1d28   :  { %v5256_v39 = vpop.xlane.xlu1 %5255 }
0x1d29   :  { %v8965_v3 = vsub.f32 %v8935_v26, %v5273_v24  ;;  %v5272_v59 = vmul.f32 0.03125, %v5256_v39 }
0x1d2b   :  { %v8968_v13 = vsub.f32 %v8938_v21, %v5272_v59  ;;  %v5285_v43 = vmul.f32 %v8965_v3, %v8965_v3 }
0x1d2c   :  { %v5265_v18 = vpop.xlane.xlu1 %5264  ;;  %v5262_v48 = vpop.xlane.xlu0 %5261 }
0x1d2d   :  { %v5275_v51 = vmul.f32 0.03125, %v5265_v18  ;;  %v5274_v19 = vmul.f32 0.03125, %v5262_v48  ;;  %v5293_v35 = vsel %vm157_vm1, %v5285_v43, 0.0  ;;  %v5284_v23 = vmul.f32 %v8968_v13, %v8968_v13 }
0x1d2e   :  { %5294 = vadd.xlane.f32.xlu1 %v5293_v35 }
0x1d2f   :  { %v8976_v63 = vsub.f32 %v8943_v56, %v5275_v51  ;;  %v8979_v29 = vsub.f32 %v8948_v14, %v5274_v19  ;;  %v5290_v44 = vsel %vm157_vm1, %v5284_v23, 0.0 }
0x1d30   :  { %v5271_v37 = vpop.xlane.xlu1 %5270  ;;  %5291 = vadd.xlane.f32.xlu0 %v5290_v44  ;;  %v5268_v50 = vpop.xlane.xlu0 %5267 }
0x1d31   :  { %v5277_v62 = vmul.f32 0.03125, %v5271_v37  ;;  %v5276_v54 = vmul.f32 0.03125, %v5268_v50  ;;  %v5287_v45 = vmul.f32 %v8976_v63, %v8976_v63  ;;  %v5286_v40 = vmul.f32 %v8979_v29, %v8979_v29 }
0x1d33   :  { %v8987_v4 = vsub.f32 %v8951_v1, %v5277_v62  ;;  %v8990_v32 = vsub.f32 %v8958_v36, %v5276_v54  ;;  %v5299_v5 = vsel %vm157_vm1, %v5287_v45, 0.0  ;;  %v5296_v8 = vsel %vm157_vm1, %v5286_v40, 0.0  ;;  %v5992_v45 = vld [vmem:[%s9118_s5 + $0xf8] sm:$0xff]  ;;  %v5991_v40 = vld [vmem:[%s9118_s5 + $0xf0] sm:$0xff] }
0x1d34   :  { %5300 = vadd.xlane.f32.xlu1 %v5299_v5  ;;  %5297 = vadd.xlane.f32.xlu0 %v5296_v8  ;;  %v5988_v5 = vld [vmem:[%s9118_s5 + $0xd8] sm:$0xff]  ;;  %v5987_v8 = vld [vmem:[%s9118_s5 + $0xd0] sm:$0xff] }
0x1d35   :  { %v5289_v60 = vmul.f32 %v8987_v4, %v8987_v4  ;;  %v5288_v0 = vmul.f32 %v8990_v32, %v8990_v32  ;;  %7000 = vmatprep.subr.mxu0 %v5992_v45 }
0x1d36   :  { %7001 = vmatpush3.msra.mxu0 %v5992_v45 }
0x1d37   :  { %v5305_v57 = vsel %vm157_vm1, %v5289_v60, 0.0  ;;  %v5302_v55 = vsel %vm157_vm1, %v5288_v0, 0.0  ;;  %7002 = vmatprep.subr.mxu0 %v5991_v40  ;;  %v5986_v60 = vld [vmem:[%s9118_s5 + $0xc8] sm:$0xff]  ;;  %v5985_v0 = vld [vmem:[%s9118_s5 + $0xc0] sm:$0xff] }
0x1d38   :  { %5306 = vadd.xlane.f32.xlu1 %v5305_v57  ;;  %5303 = vadd.xlane.f32.xlu0 %v5302_v55  ;;  %v5984_v57 = vld [vmem:[%s9118_s5 + $0xb8] sm:$0xff]  ;;  %v5983_v55 = vld [vmem:[%s9118_s5 + $0xb0] sm:$0xff] }
0x1d39   :  { %7003 = vmatpush3.msra.mxu0 %v5991_v40 }
0x1db7   :  { %v5295_v52 = vpop.xlane.xlu1 %5294 }
0x1db8   :  { %v5309_v12 = vmul.f32 0.03125, %v5295_v52  ;;  %v5978_v52 = vld [vmem:[%s9118_s5 + $0x88] sm:$0xff] }
0x1db9   :  { %v5292_v53 = vpop.xlane.xlu0 %5291 }
0x1dba   :  { %v5315_v2 = vadd.f32 1e-05, %v5309_v12  ;;  %v5308_v20 = vmul.f32 0.03125, %v5292_v53  ;;  %v5977_v12 = vld [vmem:[%s9118_s5 + $0x80] sm:$0xff] }
0x1dbb   :  { %v5964_v53 = vld [vmem:[%s9119_s4 + $0x1] ss:$0 sm:$0xff] }
0x1dbc   :  { %7309 = vrsqrt.f32 %v5315_v2  ;;  %v5314_v61 = vadd.f32 1e-05, %v5308_v20 }
0x1dbd   :  { %v5301_v7 = vpop.xlane.xlu1 %5300  ;;  %v5298_v25 = vpop.xlane.xlu0 %5297 }
0x1dbe   :  { %7311 = vrsqrt.f32 %v5314_v61  ;;  %v5311_v10 = vmul.f32 0.03125, %v5301_v7  ;;  %v5310_v9 = vmul.f32 0.03125, %v5298_v25 }
0x1dc0   :  { %v5317_v30 = vadd.f32 1e-05, %v5311_v10  ;;  %v5316_v6 = vadd.f32 1e-05, %v5310_v9 }
0x1dc1   :  { %v5307_v33 = vpop.xlane.xlu1 %5306  ;;  %v5304_v16 = vpop.xlane.xlu0 %5303 }
0x1dc2   :  { %7313 = vrsqrt.f32 %v5317_v30  ;;  %v5313_v31 = vmul.f32 0.03125, %v5307_v33  ;;  %v5312_v17 = vmul.f32 0.03125, %v5304_v16 }
0x1dc3   :  { %7315 = vrsqrt.f32 %v5316_v6 }
0x1dc4   :  { %v5319_v46 = vadd.f32 1e-05, %v5313_v31  ;;  %v5318_v41 = vadd.f32 1e-05, %v5312_v17 }
0x1dc6   :  { %7317 = vrsqrt.f32 %v5319_v46 }
0x1dc7   :  { %7319 = vrsqrt.f32 %v5318_v41 }
0x1dc9   :  { %v7310_v38 = vpop.eup %7309 }
0x1dca   :  { %v5327_v28 = vmul.f32 %v7310_v38, %v8965_v3 }
0x1dcb   :  { %v7312_v22 = vpop.eup %7311 }
0x1dcc   :  { %v5326_v58 = vmul.f32 %v7312_v22, %v8968_v13  ;;  %v5337_v27 = vmul.f32 %v5957_v47, %v5327_v28 }
0x1dce   :  { %v5336_v24 = vmul.f32 %v5957_v47, %v5326_v58  ;;  %v5347_v48 = vadd.f32 %v5958_v15, %v5337_v27 }
0x1dcf   :  { %v7314_v39 = vpop.eup %7313 }
0x1dd0   :  { %v7316_v59 = vpop.eup %7315  ;;  %v5346_v43 = vadd.f32 %v5958_v15, %v5336_v24  ;;  %v5329_v18 = vmul.f32 %v7314_v39, %v8976_v63 }
0x1dd1   :  { %v5328_v51 = vmul.f32 %v7316_v59, %v8979_v29 }
0x1dd2   :  { %6991 = vmatprep.mubr.msk.f32.mxu1 %vm157_vm1, %v5346_v43  ;;  %v5339_v3 = vmul.f32 %v5957_v47, %v5329_v18 }
0x1dd3   :  { %v7318_v19 = vpop.eup %7317  ;;  %6992 = vmatmul.mubr.msk.f32.vlgmr.msra.gmra.mxu1 %vm157_vm1, %v5347_v48  ;;  %v5338_v13 = vmul.f32 %v5957_v47, %v5328_v51 }
0x1dd4   :  { %v7320_v35 = vpop.eup %7319  ;;  %v5349_v23 = vadd.f32 %v5958_v15, %v5339_v3  ;;  %v5331_v44 = vmul.f32 %v7318_v19, %v8987_v4  ;;  %v5990_v4 = vld [vmem:[%s9118_s5 + $0xe8] sm:$0xff] }
0x1dd5   :  { %v5348_v37 = vadd.f32 %v5958_v15, %v5338_v13  ;;  %v5330_v50 = vmul.f32 %v7320_v35, %v8990_v32  ;;  %7004 = vmatprep.subr.mxu0 %v5990_v4  ;;  %v5989_v32 = vld [vmem:[%s9118_s5 + $0xe0] sm:$0xff] }
0x1dd6   :  { %v5341_v62 = vmul.f32 %v5957_v47, %v5331_v44  ;;  %7005 = vmatpush3.msra.mxu0 %v5990_v4 }
0x1dd7   :  { %6994 = vmatprep.mubr.msk.f32.mxu1 %vm157_vm1, %v5348_v37  ;;  %v5340_v63 = vmul.f32 %v5957_v47, %v5330_v50  ;;  %7006 = vmatprep.subr.mxu0 %v5989_v32 }
0x1dd8   :  { %6995 = vmatmul.mubr.msk.f32.gmra.mxu1 %vm157_vm1, %v5349_v23  ;;  %v5351_v29 = vadd.f32 %v5958_v15, %v5341_v62  ;;  %7007 = vmatpush3.msra.mxu0 %v5989_v32 }
0x1dd9   :  { %v5350_v54 = vadd.f32 %v5958_v15, %v5340_v63  ;;  %7008 = vmatprep.subr.mxu0 %v5988_v5 }
0x1dda   :  { %7009 = vmatpush3.msra.mxu0 %v5988_v5 }
0x1ddb   :  { %6997 = vmatprep.mubr.msk.f32.mxu1 %vm157_vm1, %v5350_v54  ;;  %7010 = vmatprep.subr.mxu0 %v5987_v8 }
0x1ddc   :  { %6998 = vmatmul.mubr.msk.f32.gmra.mxu1 %vm157_vm1, %v5351_v29  ;;  %7011 = vmatpush3.msra.mxu0 %v5987_v8 }
0x1ddd   :  { %7012 = vmatprep.subr.mxu0 %v5986_v60 }
0x1dde   :  { %7013 = vmatpush3.msra.mxu0 %v5986_v60 }
0x1ddf   :  { %7014 = vmatprep.subr.mxu0 %v5985_v0 }
0x1de0   :  { %7015 = vmatpush3.msra.mxu0 %v5985_v0 }
0x1de1   :  { %7016 = vmatprep.subr.mxu0 %v5984_v57 }
0x1de2   :  { %7017 = vmatpush3.msra.mxu0 %v5984_v57  ;;  %v5993_v57 = vld [vmem:[%s9114_s1 + $0x13] ss:$0 sm:$0xff] }
0x1de3   :  { %7018 = vmatprep.subr.mxu0 %v5983_v55 }
0x1de4   :  { %7019 = vmatpush3.msra.mxu0 %v5983_v55 }
0x1de5   :  { %7020 = vmatprep.subr.mxu0 %v5982_v34 }
0x1de6   :  { %7021 = vmatpush3.msra.mxu0 %v5982_v34 }
0x1de7   :  { %7022 = vmatprep.subr.mxu0 %v5981_v11 }
0x1de8   :  { %7023 = vmatpush3.msra.mxu0 %v5981_v11 }
0x1de9   :  { %7024 = vmatprep.subr.mxu0 %v5980_v42 }
0x1dea   :  { %7025 = vmatpush3.msra.mxu0 %v5980_v42 }
0x1deb   :  { %7026 = vmatprep.subr.mxu0 %v5979_v49 }
0x1dec   :  { %7027 = vmatpush3.msra.mxu0 %v5979_v49 }
0x1ded   :  { %7028 = vmatprep.subr.mxu0 %v5978_v52 }
0x1dee   :  { %7029 = vmatpush3.msra.mxu0 %v5978_v52 }
0x1def   :  { %7030 = vmatprep.subr.mxu0 %v5977_v12 }
0x1df0   :  { %7031 = vmatpush3.msra.mxu0 %v5977_v12 }
0x1e93   :  { %v6993_v2 = vpop.f32.mrf.mxu1 }
0x1e94   :  { %v5455_v20 = vadd.f32 %v6993_v2, %v5964_v53 }
0x1e95   :  { %v5449_v61 = vpop.f32.mrf.mxu1 }
0x1e96   :  { %v5972_v7 = vmul.f32 -1.702, %v5455_v20  ;;  %v5450_v25 = vadd.f32 %v5964_v53, %v5449_v61 }
0x1e98   :  { %v5492_v10 = vmul.f32 1.442695, %v5972_v7  ;;  %v5971_v9 = vmul.f32 -1.702, %v5450_v25  ;;  %v6996_v30 = vpop.f32.mrf.mxu1 }
0x1e99   :  { %v5465_v6 = vadd.f32 %v6996_v30, %v5964_v53 }
0x1e9a   :  { %7321 = vpow2.f32 %v5492_v10  ;;  %v5490_v33 = vmul.f32 1.442695, %v5971_v9  ;;  %v5459_v16 = vpop.f32.mrf.mxu1 }
0x1e9b   :  { %v5974_v31 = vmul.f32 -1.702, %v5465_v6  ;;  %v5460_v17 = vadd.f32 %v5964_v53, %v5459_v16 }
0x1e9c   :  { %7323 = vpow2.f32 %v5490_v33  ;;  %v6999_v46 = vpop.f32.mrf.mxu1 }
0x1e9d   :  { %v5496_v41 = vmul.f32 1.442695, %v5974_v31  ;;  %v5973_v38 = vmul.f32 -1.702, %v5460_v17  ;;  %v5475_v47 = vadd.f32 %v6999_v46, %v5964_v53 }
0x1e9e   :  { %v5469_v28 = vpop.f32.mrf.mxu1 }
0x1e9f   :  { %7325 = vpow2.f32 %v5496_v41  ;;  %v5494_v22 = vmul.f32 1.442695, %v5973_v38  ;;  %v5976_v58 = vmul.f32 -1.702, %v5475_v47  ;;  %v5470_v27 = vadd.f32 %v5964_v53, %v5469_v28 }
0x1ea1   :  { %7327 = vpow2.f32 %v5494_v22  ;;  %v5500_v15 = vmul.f32 1.442695, %v5976_v58  ;;  %v5975_v24 = vmul.f32 -1.702, %v5470_v27 }
0x1ea3   :  { %7329 = vpow2.f32 %v5500_v15  ;;  %v5498_v39 = vmul.f32 1.442695, %v5975_v24 }
0x1ea5   :  { %7331 = vpow2.f32 %v5498_v39 }
0x1ea7   :  { %v7322_v59 = vpop.eup %7321 }
0x1ea8   :  { %v5503_v43 = vadd.f32 1.0, %v7322_v59 }
0x1ea9   :  { %v7324_v18 = vpop.eup %7323 }
0x1eaa   :  { %v5502_v48 = vadd.f32 1.0, %v7324_v18  ;;  %7333 = vrcp.f32 %v5503_v43 }
0x1eac   :  { %v7326_v51 = vpop.eup %7325  ;;  %7335 = vrcp.f32 %v5502_v48 }
0x1ead   :  { %v5505_v3 = vadd.f32 1.0, %v7326_v51 }
0x1eae   :  { %v7328_v19 = vpop.eup %7327 }
0x1eaf   :  { %v5504_v13 = vadd.f32 1.0, %v7328_v19  ;;  %7337 = vrcp.f32 %v5505_v3 }
0x1eb0   :  { %v7330_v35 = vpop.eup %7329 }
0x1eb1   :  { %7339 = vrcp.f32 %v5504_v13  ;;  %v5507_v23 = vadd.f32 1.0, %v7330_v35 }
0x1eb2   :  { %v7332_v44 = vpop.eup %7331 }
0x1eb3   :  { %v5506_v37 = vadd.f32 1.0, %v7332_v44  ;;  %7341 = vrcp.f32 %v5507_v23 }
0x1eb5   :  { %7343 = vrcp.f32 %v5506_v37 }
0x1eb7   :  { %v7334_v50 = vpop.eup %7333 }
0x1eb8   :  { %v5521_v29 = vmul.f32 %v7334_v50, %v5455_v20 }
0x1eb9   :  { %v7336_v62 = vpop.eup %7335 }
0x1eba   :  { %v5520_v63 = vmul.f32 %v7336_v62, %v5450_v25 }
0x1ebc   :  { %7032 = vmatprep.mubr.f32.mxu0 %v5520_v63  ;;  %v7338_v54 = vpop.eup %7337 }
0x1ebd   :  { %7033 = vmatmul.mubr.f32.vlgmr.msra.gmra.mxu0 %v5521_v29  ;;  %v5523_v4 = vmul.f32 %v7338_v54, %v5465_v6 }
0x1ebe   :  { %v7340_v45 = vpop.eup %7339 }
0x1ebf   :  { %v5522_v40 = vmul.f32 %v7340_v45, %v5460_v17 }
0x1ec0   :  { %v7342_v32 = vpop.eup %7341 }
0x1ec1   :  { %7035 = vmatprep.mubr.f32.mxu0 %v5522_v40  ;;  %v5525_v60 = vmul.f32 %v7342_v32, %v5475_v47 }
0x1ec2   :  { %v7344_v5 = vpop.eup %7343  ;;  %7036 = vmatmul.mubr.f32.gmra.mxu0 %v5523_v4 }
0x1ec3   :  { %v5524_v8 = vmul.f32 %v7344_v5, %v5470_v27 }
0x1ec5   :  { %7038 = vmatprep.mubr.f32.mxu0 %v5524_v8 }
0x1ec6   :  { %7039 = vmatmul.mubr.f32.gmra.mxu0 %v5525_v60 }
0x1f7d   :  { %v7034_v0 = vpop.f32.mrf.mxu0 }
0x1f7e   :  { %v5639_v55 = vadd.f32 %v7034_v0, %v8935_v26 }
0x1f7f   :  { %v5609_v34 = vpop.f32.mrf.mxu0 }
0x1f80   :  { %v5650_v11 = vadd.f32 %v5993_v57, %v5639_v55  ;;  %v5638_v42 = vadd.f32 %v5609_v34, %v8938_v21 }
0x1f82   :  { %5656 = vst.msk [vmem:[%s9120_s6 + $0x8] sm:$0xff] %vm157_vm1, %v5650_v11  ;;  %v5649_v49 = vadd.f32 %v5993_v57, %v5638_v42  ;;  %v7037_v52 = vpop.f32.mrf.mxu0 }
0x1f83   :  { %v5641_v12 = vadd.f32 %v7037_v52, %v8943_v56 }
0x1f84   :  { %5655 = vst.msk [vmem:[%s9120_s6] sm:$0xff] %vm157_vm1, %v5649_v49  ;;  %v5619_v53 = vpop.f32.mrf.mxu0 }
0x1f85   :  { %v5652_v26 = vadd.f32 %v5993_v57, %v5641_v12  ;;  %v5640_v2 = vadd.f32 %v5619_v53, %v8948_v14 }
0x1f86   :  { %v7040_v20 = vpop.f32.mrf.mxu0 }
0x1f87   :  { %5658 = vst.msk [vmem:[%s9120_s6 + $0x18] sm:$0xff] %vm157_vm1, %v5652_v26  ;;  %v5651_v21 = vadd.f32 %v5993_v57, %v5640_v2  ;;  %v5643_v61 = vadd.f32 %v7040_v20, %v8951_v1 }
0x1f88   :  { %v5629_v7 = vpop.f32.mrf.mxu0 }
0x1f89   :  { %5657 = vst.msk [vmem:[%s9120_s6 + $0x10] sm:$0xff] %vm157_vm1, %v5651_v21  ;;  %v5654_v56 = vadd.f32 %v5993_v57, %v5643_v61  ;;  %v5642_v25 = vadd.f32 %v5629_v7, %v8958_v36 }
0x1f8b   :  { %5660 = vst.msk [vmem:[%s9120_s6 + $0x28] sm:$0xff] %vm157_vm1, %v5654_v56  ;;  %v5653_v14 = vadd.f32 %v5993_v57, %v5642_v25 }
0x1f8d   :  { %5659 = vst.msk [vmem:[%s9120_s6 + $0x20] sm:$0xff] %vm157_vm1, %v5653_v14 }

</bundles_post_ra>
